<compile_context>
chip_gen: v7x
topology: tpu7x:2x2x1
jax: 0.10.0
libtpu: 0.0.40
codegen_flags: <defaults>
</compile_context>

<pallas_src>
import functools

import jax
import jax.numpy as jnp
import numpy as np
from jax.experimental import pallas as pl
from jax.experimental.pallas import tpu as pltpu


# ----------------------------- small helpers ---------------------------------
def _erf_approx(x):
    # Abramowitz & Stegun 7.1.26 (|err| < 1.5e-7); only exp/mul/add (TPU-safe).
    a1, a2, a3, a4, a5 = 0.254829592, -0.284496736, 1.421413741, -1.453152027, 1.061405429
    p = 0.3275911
    s = jnp.where(x >= 0.0, 1.0, -1.0)
    ax = jnp.abs(x)
    t = 1.0 / (1.0 + p * ax)
    poly = ((((a5 * t + a4) * t + a3) * t + a2) * t + a1) * t
    return s * (1.0 - poly * jnp.exp(-ax * ax))


def _gelu_exact(x):
    # nn.GELU() default = exact erf GELU
    return 0.5 * x * (1.0 + _erf_approx(x * 0.7071067811865476))


def _layernorm(x, g, b, eps=1e-5):
    mu = jnp.mean(x, axis=-1, keepdims=True)
    var = jnp.mean((x - mu) ** 2, axis=-1, keepdims=True)
    return (x - mu) * jax.lax.rsqrt(var + eps) * g + b


def window_partition_j(x, ws):
    B, H, W, C = x.shape
    x = x.reshape(B, H // ws, ws, W // ws, ws, C)
    return x.transpose(0, 1, 3, 2, 4, 5).reshape(-1, ws, ws, C)


def window_reverse_j(windows, ws, H, W):
    B = windows.shape[0] // (H * W // ws // ws)
    x = windows.reshape(B, H // ws, W // ws, ws, ws, -1)
    return x.transpose(0, 1, 3, 2, 4, 5).reshape(B, H, W, -1)


def _pick_win(count, n_tok, max_rows=1024):
    """Largest divisor of `count` s.t. win*N <= max_rows and rows % 8 == 0.

    Bigger row tiles amortise the ~0.35us per-grid-step overhead and keep the
    QKV/proj matmuls MXU-sized; 1024 rows x typical C easily fits VMEM with
    double-buffering.
    """
    win = count  # full extent (grid=1) is always layout-legal
    for cand in range(1, count + 1):
        if count % cand == 0 and cand * n_tok <= max_rows and (cand * n_tok) % 8 == 0:
            win = cand
    return win


# ------------------------------ attention kernel -------------------------------
def _make_attn_kernel(num_heads, scale, win, n_tok, dim, has_mask, fuse_ln):
    hd = dim // num_heads
    rows = win * n_tok
    inv_nh = 1.0 / num_heads

    def kernel(*refs):
        if has_mask:
            (x_ref, mask_ref, bias_ref, g1_ref, b1_ref, qkvw_ref, qkvb_ref,
             projw_ref, projb_ref, out_ref, aval_ref, acc_ref) = refs
        else:
            (x_ref, bias_ref, g1_ref, b1_ref, qkvw_ref, qkvb_ref,
             projw_ref, projb_ref, out_ref, aval_ref, acc_ref) = refs
            mask_ref = None

        x = x_ref[...]                                     # (rows, C)
        if fuse_ln:
            mu = jnp.mean(x, axis=-1, keepdims=True)
            var = jnp.mean((x - mu) ** 2, axis=-1, keepdims=True)
            xn = (x - mu) * jax.lax.rsqrt(var + 1e-5) * g1_ref[...] + b1_ref[...]
        else:
            xn = x                                         # LN already applied (padding path)

        # One big QKV matmul for all WIN windows at once.
        qkv = jnp.dot(xn, qkvw_ref[...], preferred_element_type=jnp.float32) + qkvb_ref[...]

        bias = bias_ref[...]                               # (heads, N, N), loaded once
        mask = mask_ref[...] if has_mask else None         # (win, N, N)
        aval = jnp.zeros((win, 1, n_tok), jnp.float32)

        for h in range(num_heads):                         # static head loop
            q = qkv[:, h * hd:(h + 1) * hd].reshape(win, n_tok, hd) * scale
            k = qkv[:, dim + h * hd:dim + (h + 1) * hd].reshape(win, n_tok, hd)
            v = qkv[:, 2 * dim + h * hd:2 * dim + (h + 1) * hd].reshape(win, n_tok, hd)

            # window-batched attention for this head
            attn = jnp.einsum("wqd,wkd->wqk", q, k,
                              preferred_element_type=jnp.float32)   # (win, N, N)
            attn = attn + bias[h][None]
            if has_mask:
                attn = attn + mask
            m = jnp.max(attn, axis=-1, keepdims=True)
            e = jnp.exp(attn - m)
            p = e / jnp.sum(e, axis=-1, keepdims=True)
            aval = aval + p[:, 0:1, :]
            o_h = jnp.einsum("wqk,wkd->wqd", p, v,
                             preferred_element_type=jnp.float32)    # (win, N, hd)
            # write head output straight into the VMEM accumulator (no concat)
            acc_ref[:, h * hd:(h + 1) * hd] = o_h.reshape(rows, hd)

        o = acc_ref[...]                                   # (rows, C)
        out = jnp.dot(o, projw_ref[...], preferred_element_type=jnp.float32) + projb_ref[...]
        out_ref[...] = out
        aval_ref[...] = aval * inv_nh                      # (win, 1, N)

    return kernel


def _attention_call(xw_flat, mask, p, num_heads, nW, nWB, N, C, fuse_ln):
    has_mask = mask is not None
    win = _pick_win(nW if has_mask else nWB, N)
    rows = win * N
    nsteps = nWB // win
    scale = (C // num_heads) ** (-0.5)
    kernel = _make_attn_kernel(num_heads, scale, win, N, C, has_mask, fuse_ln)

    in_specs = [pl.BlockSpec((rows, C), lambda i: (i, 0))]            # token slab
    inputs = [xw_flat]
    if has_mask:
        mw = nW // win
        in_specs.append(pl.BlockSpec((win, N, N), lambda i: (i % mw, 0, 0)))
        inputs.append(mask)
    in_specs += [
        pl.BlockSpec((num_heads, N, N), lambda i: (0, 0, 0)),         # rel. pos. bias
        pl.BlockSpec((1, C), lambda i: (0, 0)),                       # ln1 gamma
        pl.BlockSpec((1, C), lambda i: (0, 0)),                       # ln1 beta
        pl.BlockSpec((C, 3 * C), lambda i: (0, 0)),                   # qkv W
        pl.BlockSpec((1, 3 * C), lambda i: (0, 0)),                   # qkv b
        pl.BlockSpec((C, C), lambda i: (0, 0)),                       # proj W
        pl.BlockSpec((1, C), lambda i: (0, 0)),                       # proj b
    ]
    inputs += [p["rel_bias"], p["ln1_g"], p["ln1_b"],
               p["qkv_w"], p["qkv_b"], p["proj_w"], p["proj_b"]]

    out, aval = pl.pallas_call(
        kernel,
        out_shape=(jax.ShapeDtypeStruct((nWB * N, C), jnp.float32),
                   jax.ShapeDtypeStruct((nWB, 1, N), jnp.float32)),
        grid=(nsteps,),
        in_specs=in_specs,
        out_specs=(pl.BlockSpec((rows, C), lambda i: (i, 0)),
                   pl.BlockSpec((win, 1, N), lambda i: (i, 0, 0))),
        scratch_shapes=[pltpu.VMEM((rows, C), jnp.float32)],
        compiler_params=pltpu.CompilerParams(dimension_semantics=("parallel",)),
    )(*inputs)
    return out, aval[:, 0, :]


# ------------------------------ MLP kernel --------------------------------------
def _mlp_kernel(s_ref, a_ref, g2_ref, b2_ref, w1_ref, b1_ref, w2_ref, b2b_ref, out_ref):
    x = s_ref[...] + a_ref[...]                            # residual-1 fused in-kernel
    mu = jnp.mean(x, axis=-1, keepdims=True)
    var = jnp.mean((x - mu) ** 2, axis=-1, keepdims=True)
    xn = (x - mu) * jax.lax.rsqrt(var + 1e-5) * g2_ref[...] + b2_ref[...]
    h = jnp.dot(xn, w1_ref[...], preferred_element_type=jnp.float32) + b1_ref[...]
    h = _gelu_exact(h)
    out_ref[...] = x + jnp.dot(h, w2_ref[...], preferred_element_type=jnp.float32) + b2b_ref[...]


def _mlp_call(shortcut, attn_res, p, tm_target=512):
    T, C = shortcut.shape
    Hd = p["fc1_w"].shape[1]
    tm = T if T <= tm_target else tm_target
    pad = (-T) % tm
    if pad:
        shortcut = jnp.pad(shortcut, ((0, pad), (0, 0)))
        attn_res = jnp.pad(attn_res, ((0, pad), (0, 0)))
    Tp = T + pad
    y = pl.pallas_call(
        _mlp_kernel,
        out_shape=jax.ShapeDtypeStruct((Tp, C), jnp.float32),
        grid=(Tp // tm,),
        in_specs=[
            pl.BlockSpec((tm, C), lambda i: (i, 0)),       # shortcut
            pl.BlockSpec((tm, C), lambda i: (i, 0)),       # attention residual
            pl.BlockSpec((1, C), lambda i: (0, 0)),
            pl.BlockSpec((1, C), lambda i: (0, 0)),
            pl.BlockSpec((C, Hd), lambda i: (0, 0)),
            pl.BlockSpec((1, Hd), lambda i: (0, 0)),
            pl.BlockSpec((Hd, C), lambda i: (0, 0)),
            pl.BlockSpec((1, C), lambda i: (0, 0)),
        ],
        out_specs=pl.BlockSpec((tm, C), lambda i: (i, 0)),
        compiler_params=pltpu.CompilerParams(dimension_semantics=("parallel",)),
    )(shortcut, attn_res, p["ln2_g"], p["ln2_b"],
      p["fc1_w"], p["fc1_b"], p["fc2_w"], p["fc2_b"])
    return y[:T]


# ------------------------------ forward pass ------------------------------------
def swin_block_pallas(x, attn_mask, p, H, W, window_size, shift_size, num_heads):
    B, L, C = x.shape
    ws = window_size
    assert L == H * W
    shortcut = x

    pad_r = (ws - W % ws) % ws
    pad_b = (ws - H % ws) % ws
    # With padding, LN1 must be applied BEFORE zero-padding (PyTorch semantics);
    # without padding it is fused into the attention kernel.
    fuse_ln = (pad_r == 0 and pad_b == 0)
    xr = x if fuse_ln else _layernorm(x, p["ln1_g"], p["ln1_b"])
    xr = xr.reshape(B, H, W, C)
    if not fuse_ln:
        xr = jnp.pad(xr, ((0, 0), (0, pad_b), (0, pad_r), (0, 0)))
    Hp, Wp = H + pad_b, W + pad_r

    if shift_size > 0:
        shifted = jnp.roll(xr, (-shift_size, -shift_size), axis=(1, 2))
        mask = attn_mask
    else:
        shifted = xr
        mask = None           # same as the PyTorch module: attn_mask forced to None

    N = ws * ws
    nW = (Hp // ws) * (Wp // ws)
    nWB = B * nW

    # TODO(synk): window partition/reverse stay as glue-JAX transposes; expressing
    # them via the attention BlockSpec index_map would need in-kernel sublane
    # transposes for the batched-window layout.
    xw = window_partition_j(shifted, ws).reshape(nWB * N, C)
    attn_out, attn_value = _attention_call(xw, mask, p, num_heads, nW, nWB, N, C, fuse_ln)

    o = attn_out.reshape(nWB, ws, ws, C)
    shifted = window_reverse_j(o, ws, Hp, Wp)
    if shift_size > 0:
        xr = jnp.roll(shifted, (shift_size, shift_size), axis=(1, 2))
    else:
        xr = shifted
    attn_res = xr[:, :H, :W, :].reshape(B * L, C)

    # DropPath / Dropout are identity (drop rates = 0 / eval mode)
    y = _mlp_call(shortcut.reshape(B * L, C), attn_res, p).reshape(B, L, C)
    return y, attn_value


# ------------------------------ parameters -------------------------------------
def init_params(key, dim, num_heads, window_size, mlp_ratio=4.0):
    hidden = int(dim * mlp_ratio)
    ws = window_size
    ks = jax.random.split(key, 9)
    wstd, bstd = 0.1, 0.02
    p = dict(
        ln1_g=jnp.ones((1, dim), jnp.float32),
        ln1_b=jnp.zeros((1, dim), jnp.float32),
        ln2_g=jnp.ones((1, dim), jnp.float32),
        ln2_b=jnp.zeros((1, dim), jnp.float32),
        qkv_w=jax.random.normal(ks[0], (dim, 3 * dim), jnp.float32) * wstd,
        qkv_b=jax.random.normal(ks[1], (1, 3 * dim), jnp.float32) * bstd,
        proj_w=jax.random.normal(ks[2], (dim, dim), jnp.float32) * wstd,
        proj_b=jax.random.normal(ks[3], (1, dim), jnp.float32) * bstd,
        fc1_w=jax.random.normal(ks[4], (dim, hidden), jnp.float32) * wstd,
        fc1_b=jax.random.normal(ks[5], (1, hidden), jnp.float32) * bstd,
        fc2_w=jax.random.normal(ks[6], (hidden, dim), jnp.float32) * wstd,
        fc2_b=jax.random.normal(ks[7], (1, dim), jnp.float32) * bstd,
    )
    # relative position bias (same construction as the PyTorch module)
    table = jax.random.normal(ks[8], ((2 * ws - 1) * (2 * ws - 1), num_heads),
                              jnp.float32) * 0.02
    coords = np.stack(np.meshgrid(np.arange(ws), np.arange(ws), indexing="ij"))
    cf = coords.reshape(2, -1)
    rel = (cf[:, :, None] - cf[:, None, :]).transpose(1, 2, 0)
    rel[:, :, 0] += ws - 1
    rel[:, :, 1] += ws - 1
    rel[:, :, 0] *= 2 * ws - 1
    idx = rel.sum(-1).reshape(-1)
    rel_bias = jnp.asarray(table)[idx].reshape(ws * ws, ws * ws, num_heads).transpose(2, 0, 1)
    p["rel_bias"] = rel_bias.astype(jnp.float32)
    return p


def make_attn_mask(H, W, ws, ss):
    """Same construction as Swin's BasicLayer.create_mask (for the shifted case)."""
    Hp = int(np.ceil(H / ws)) * ws
    Wp = int(np.ceil(W / ws)) * ws
    img_mask = np.zeros((1, Hp, Wp, 1), np.float32)
    slices = (slice(0, -ws), slice(-ws, -ss), slice(-ss, None))
    cnt = 0
    for h in slices:
        for w in slices:
            img_mask[:, h, w, :] = cnt
            cnt += 1
    mw = window_partition_j(jnp.asarray(img_mask), ws).reshape(-1, ws * ws)
    am = mw[:, None, :] - mw[:, :, None]
    return jnp.where(am != 0, -100.0, 0.0).astype(jnp.float32)


# ------------------------------ pure-JAX reference ------------------------------
def reference_forward(x, attn_mask, p, H, W, window_size, shift_size, num_heads):
    B, L, C = x.shape
    ws = window_size
    shortcut = x
    xn = _layernorm(x, p["ln1_g"], p["ln1_b"]).reshape(B, H, W, C)
    pad_r = (ws - W % ws) % ws
    pad_b = (ws - H % ws) % ws
    xn = jnp.pad(xn, ((0, 0), (0, pad_b), (0, pad_r), (0, 0)))
    Hp, Wp = H + pad_b, W + pad_r
    if shift_size > 0:
        shifted = jnp.roll(xn, (-shift_size, -shift_size), axis=(1, 2))
        mask = attn_mask
    else:
        shifted = xn
        mask = None
    xw = window_partition_j(shifted, ws).reshape(-1, ws * ws, C)
    B_, N, _ = xw.shape
    hd = C // num_heads
    scale = hd ** (-0.5)
    qkv = (xw @ p["qkv_w"] + p["qkv_b"]).reshape(B_, N, 3, num_heads, hd).transpose(2, 0, 3, 1, 4)
    q, k, v = qkv[0], qkv[1], qkv[2]
    attn = (q * scale) @ jnp.swapaxes(k, -2, -1)
    attn = attn + p["rel_bias"][None]
    if mask is not None:
        nW = mask.shape[0]
        attn = attn.reshape(B_ // nW, nW, num_heads, N, N) + mask[None, :, None]
        attn = attn.reshape(-1, num_heads, N, N)
    attn = jax.nn.softmax(attn, axis=-1)
    attn_value = attn.mean(axis=1)[:, 0, :]
    o = (attn @ v).transpose(0, 2, 1, 3).reshape(B_, N, C)
    o = (o @ p["proj_w"] + p["proj_b"]).reshape(-1, ws, ws, C)
    shifted = window_reverse_j(o, ws, Hp, Wp)
    if shift_size > 0:
        xr = jnp.roll(shifted, (shift_size, shift_size), axis=(1, 2))
    else:
        xr = shifted
    xr = xr[:, :H, :W, :].reshape(B, L, C)
    x = shortcut + xr
    yn = _layernorm(x, p["ln2_g"], p["ln2_b"])
    h = jax.nn.gelu(yn @ p["fc1_w"] + p["fc1_b"], approximate=False)
    y = x + (h @ p["fc2_w"] + p["fc2_b"])
    return y, attn_value


# ------------------------------------ main --------------------------------------
if __name__ == "__main__":
    B, H, W, C = 2, 8, 8, 32
    num_heads, window_size = 4, 4
    L = H * W
    key = jax.random.PRNGKey(0)
    kx, kp = jax.random.split(key)
    x = jax.random.normal(kx, (B, L, C), jnp.float32)
    params = init_params(kp, C, num_heads, window_size)
    nWB = B * (H // window_size) * (W // window_size)
    N = window_size * window_size

    # --- case 1: W-MSA (shift_size = 0, no mask) ---
    out0, av0 = swin_block_pallas(x, None, params, H, W, window_size, 0, num_heads)
    out0 = jax.block_until_ready(out0)
    av0 = jax.block_until_ready(av0)
    ref0, rav0 = reference_forward(x, None, params, H, W, window_size, 0, num_heads)
    assert out0.shape == (B, L, C) and av0.shape == (nWB, N)
    e0 = float(jnp.max(jnp.abs(out0 - ref0)))
    a0 = float(jnp.max(jnp.abs(av0 - rav0)))
    assert e0 < 1e-2 and a0 < 1e-3, (e0, a0)

    # --- case 2: SW-MSA (shift_size = ws//2, masked) ---
    shift = window_size // 2
    mask = make_attn_mask(H, W, window_size, shift)
    out1, av1 = swin_block_pallas(x, mask, params, H, W, window_size, shift, num_heads)
    out1 = jax.block_until_ready(out1)
    av1 = jax.block_until_ready(av1)
    ref1, rav1 = reference_forward(x, mask, params, H, W, window_size, shift, num_heads)
    assert out1.shape == (B, L, C) and av1.shape == (nWB, N)
    e1 = float(jnp.max(jnp.abs(out1 - ref1)))
    a1 = float(jnp.max(jnp.abs(av1 - rav1)))
    assert e1 < 1e-2 and a1 < 1e-3, (e1, a1)

    print("KERNEL_OK")
</pallas_src>

<mosaic_0001>
module attributes {stable_mosaic.version = 11 : i64} {
  func.func @kernel(%arg0: i32, %arg1: memref<128x32xf32, #tpu.memory_space<vmem>>, %arg2: memref<4x16x16xf32, #tpu.memory_space<vmem>>, %arg3: memref<1x32xf32, #tpu.memory_space<vmem>>, %arg4: memref<1x32xf32, #tpu.memory_space<vmem>>, %arg5: memref<32x96xf32, #tpu.memory_space<vmem>>, %arg6: memref<1x96xf32, #tpu.memory_space<vmem>>, %arg7: memref<32x32xf32, #tpu.memory_space<vmem>>, %arg8: memref<1x32xf32, #tpu.memory_space<vmem>>, %arg9: memref<128x32xf32, #tpu.memory_space<vmem>>, %arg10: memref<8x1x16xf32, #tpu.memory_space<vmem>>, %arg11: memref<128x32xf32, #tpu.memory_space<vmem>>) attributes {dimension_semantics = [#tpu.dimension_semantics<parallel>], iteration_bounds = array<i64: 1>, scalar_prefetch = 0 : i64, scratch_operands = 1 : i64, tpu.core_type = #tpu.core_type<tc>, window_params = [{transform_indices = @transform_0, window_bounds = array<i64: 128, 32>}, {pipeline_mode = #tpu.pipeline_mode<synchronous>, transform_indices = @transform_1, window_bounds = array<i64: 4, 16, 16>}, {pipeline_mode = #tpu.pipeline_mode<synchronous>, transform_indices = @transform_2, window_bounds = array<i64: 1, 32>}, {pipeline_mode = #tpu.pipeline_mode<synchronous>, transform_indices = @transform_3, window_bounds = array<i64: 1, 32>}, {pipeline_mode = #tpu.pipeline_mode<synchronous>, transform_indices = @transform_4, window_bounds = array<i64: 32, 96>}, {pipeline_mode = #tpu.pipeline_mode<synchronous>, transform_indices = @transform_5, window_bounds = array<i64: 1, 96>}, {pipeline_mode = #tpu.pipeline_mode<synchronous>, transform_indices = @transform_6, window_bounds = array<i64: 32, 32>}, {pipeline_mode = #tpu.pipeline_mode<synchronous>, transform_indices = @transform_7, window_bounds = array<i64: 1, 32>}, {transform_indices = @transform_8, window_bounds = array<i64: 128, 32>}, {transform_indices = @transform_9, window_bounds = array<i64: 8, 1, 16>}]} {
    %c0 = arith.constant 0 : index
    %c0_0 = arith.constant 0 : index
    %0 = vector.load %arg1[%c0, %c0_0] : memref<128x32xf32, #tpu.memory_space<vmem>>, vector<128x32xf32>
    %cst = arith.constant dense<0.000000e+00> : vector<128xf32>
    %1 = vector.multi_reduction <add>, %0, %cst [1] : vector<128x32xf32> to vector<128xf32>
    %2 = vector.shape_cast %1 : vector<128xf32> to vector<128x1xf32>
    %cst_1 = arith.constant 3.200000e+01 : f32
    %3 = vector.broadcast %cst_1 : f32 to vector<128x1xf32>
    %4 = arith.divf %2, %3 : vector<128x1xf32>
    %5 = vector.broadcast %4 : vector<128x1xf32> to vector<128x32xf32>
    %6 = arith.subf %0, %5 : vector<128x32xf32>
    %7 = arith.mulf %6, %6 : vector<128x32xf32>
    %cst_2 = arith.constant dense<0.000000e+00> : vector<128xf32>
    %8 = vector.multi_reduction <add>, %7, %cst_2 [1] : vector<128x32xf32> to vector<128xf32>
    %9 = vector.shape_cast %8 : vector<128xf32> to vector<128x1xf32>
    %cst_3 = arith.constant 3.200000e+01 : f32
    %10 = vector.broadcast %cst_3 : f32 to vector<128x1xf32>
    %11 = arith.divf %9, %10 : vector<128x1xf32>
    %12 = vector.broadcast %4 : vector<128x1xf32> to vector<128x32xf32>
    %13 = arith.subf %0, %12 : vector<128x32xf32>
    %cst_4 = arith.constant 9.99999974E-6 : f32
    %14 = vector.broadcast %cst_4 : f32 to vector<128x1xf32>
    %15 = arith.addf %11, %14 : vector<128x1xf32>
    %16 = math.rsqrt %15 : vector<128x1xf32>
    %17 = vector.broadcast %16 : vector<128x1xf32> to vector<128x32xf32>
    %18 = arith.mulf %13, %17 : vector<128x32xf32>
    %c0_5 = arith.constant 0 : index
    %c0_6 = arith.constant 0 : index
    %19 = vector.load %arg3[%c0_5, %c0_6] : memref<1x32xf32, #tpu.memory_space<vmem>>, vector<1x32xf32>
    %20 = vector.broadcast %19 : vector<1x32xf32> to vector<128x32xf32>
    %21 = arith.mulf %18, %20 : vector<128x32xf32>
    %c0_7 = arith.constant 0 : index
    %c0_8 = arith.constant 0 : index
    %22 = vector.load %arg4[%c0_7, %c0_8] : memref<1x32xf32, #tpu.memory_space<vmem>>, vector<1x32xf32>
    %23 = vector.broadcast %22 : vector<1x32xf32> to vector<128x32xf32>
    %24 = arith.addf %21, %23 : vector<128x32xf32>
    %c0_9 = arith.constant 0 : index
    %c0_10 = arith.constant 0 : index
    %25 = vector.load %arg5[%c0_9, %c0_10] : memref<32x96xf32, #tpu.memory_space<vmem>>, vector<32x96xf32>
    %cst_11 = arith.constant dense<0.000000e+00> : vector<128x96xf32>
    %26 = tpu.matmul %24, %25, %cst_11 {dimension_numbers = #tpu.dot_dimension_numbers<[1], [0], [0], [1], [0, 0, 1, 1], [], []>} : vector<128x32xf32>, vector<32x96xf32>, vector<128x96xf32> -> vector<128x96xf32>
    %c0_12 = arith.constant 0 : index
    %c0_13 = arith.constant 0 : index
    %27 = vector.load %arg6[%c0_12, %c0_13] : memref<1x96xf32, #tpu.memory_space<vmem>>, vector<1x96xf32>
    %28 = vector.broadcast %27 : vector<1x96xf32> to vector<128x96xf32>
    %29 = arith.addf %26, %28 : vector<128x96xf32>
    %c0_14 = arith.constant 0 : index
    %c0_15 = arith.constant 0 : index
    %c0_16 = arith.constant 0 : index
    %30 = vector.load %arg2[%c0_14, %c0_15, %c0_16] : memref<4x16x16xf32, #tpu.memory_space<vmem>>, vector<4x16x16xf32>
    %cst_17 = arith.constant 0.000000e+00 : f32
    %31 = vector.broadcast %cst_17 : f32 to vector<8x1x16xf32>
    %32 = vector.extract_strided_slice %29 {offsets = [0, 0], sizes = [128, 8], strides = [1, 1]} : vector<128x96xf32> to vector<128x8xf32>
    %33 = vector.shape_cast %32 : vector<128x8xf32> to vector<8x16x8xf32>
    %cst_18 = arith.constant 0.353553385 : f32
    %34 = vector.broadcast %cst_18 : f32 to vector<8x16x8xf32>
    %35 = arith.mulf %33, %34 : vector<8x16x8xf32>
    %36 = vector.extract_strided_slice %29 {offsets = [0, 32], sizes = [128, 8], strides = [1, 1]} : vector<128x96xf32> to vector<128x8xf32>
    %37 = vector.shape_cast %36 : vector<128x8xf32> to vector<8x16x8xf32>
    %38 = vector.extract_strided_slice %29 {offsets = [0, 64], sizes = [128, 8], strides = [1, 1]} : vector<128x96xf32> to vector<128x8xf32>
    %39 = vector.shape_cast %38 : vector<128x8xf32> to vector<8x16x8xf32>
    "tpu.trace_start"() <{level = 10 : i32, message = "wqd,wkd->wqk"}> : () -> ()
    %cst_19 = arith.constant dense<0.000000e+00> : vector<8x16x16xf32>
    %40 = tpu.matmul %35, %37, %cst_19 {dimension_numbers = #tpu.dot_dimension_numbers<[2], [2], [1], [1], [0, 0, 0, 1, 1, 1], [0], [0]>} : vector<8x16x8xf32>, vector<8x16x8xf32>, vector<8x16x16xf32> -> vector<8x16x16xf32>
    "tpu.trace_stop"() : () -> ()
    %41 = vector.extract_strided_slice %30 {offsets = [0, 0, 0], sizes = [1, 16, 16], strides = [1, 1, 1]} : vector<4x16x16xf32> to vector<1x16x16xf32>
    %42 = vector.shape_cast %41 : vector<1x16x16xf32> to vector<16x16xf32>
    %43 = vector.shape_cast %42 : vector<16x16xf32> to vector<1x16x16xf32>
    %44 = vector.broadcast %43 : vector<1x16x16xf32> to vector<8x16x16xf32>
    %45 = arith.addf %40, %44 : vector<8x16x16xf32>
    %cst_20 = arith.constant dense<0xFF800000> : vector<8x16xf32>
    %46 = vector.multi_reduction <maximumf>, %45, %cst_20 [2] : vector<8x16x16xf32> to vector<8x16xf32>
    %47 = vector.shape_cast %46 : vector<8x16xf32> to vector<8x16x1xf32>
    %48 = vector.broadcast %47 : vector<8x16x1xf32> to vector<8x16x16xf32>
    %49 = arith.subf %45, %48 : vector<8x16x16xf32>
    %50 = math.exp %49 : vector<8x16x16xf32>
    %cst_21 = arith.constant dense<0.000000e+00> : vector<8x16xf32>
    %51 = vector.multi_reduction <add>, %50, %cst_21 [2] : vector<8x16x16xf32> to vector<8x16xf32>
    %52 = vector.shape_cast %51 : vector<8x16xf32> to vector<8x16x1xf32>
    %53 = vector.broadcast %52 : vector<8x16x1xf32> to vector<8x16x16xf32>
    %54 = arith.divf %50, %53 : vector<8x16x16xf32>
    %55 = vector.extract_strided_slice %54 {offsets = [0, 0, 0], sizes = [8, 1, 16], strides = [1, 1, 1]} : vector<8x16x16xf32> to vector<8x1x16xf32>
    %56 = arith.addf %31, %55 : vector<8x1x16xf32>
    "tpu.trace_start"() <{level = 10 : i32, message = "wqk,wkd->wqd"}> : () -> ()
    %cst_22 = arith.constant dense<0.000000e+00> : vector<8x16x8xf32>
    %57 = tpu.matmul %54, %39, %cst_22 {dimension_numbers = #tpu.dot_dimension_numbers<[2], [1], [1], [2], [0, 0, 0, 1, 1, 2], [0], [0]>} : vector<8x16x16xf32>, vector<8x16x8xf32>, vector<8x16x8xf32> -> vector<8x16x8xf32>
    "tpu.trace_stop"() : () -> ()
    %58 = vector.shape_cast %57 : vector<8x16x8xf32> to vector<128x8xf32>
    %c0_23 = arith.constant 0 : index
    %c0_24 = arith.constant 0 : index
    %59 = vector.load %arg11[%c0_23, %c0_24] : memref<128x32xf32, #tpu.memory_space<vmem>>, vector<128x8xf32>
    tpu.vector_store %arg11[%c0_23, %c0_24], %58 {strides = array<i32>} : memref<128x32xf32, #tpu.memory_space<vmem>>, vector<128x8xf32>,
    %60 = vector.extract_strided_slice %29 {offsets = [0, 8], sizes = [128, 8], strides = [1, 1]} : vector<128x96xf32> to vector<128x8xf32>
    %61 = vector.shape_cast %60 : vector<128x8xf32> to vector<8x16x8xf32>
    %cst_25 = arith.constant 0.353553385 : f32
    %62 = vector.broadcast %cst_25 : f32 to vector<8x16x8xf32>
    %63 = arith.mulf %61, %62 : vector<8x16x8xf32>
    %64 = vector.extract_strided_slice %29 {offsets = [0, 40], sizes = [128, 8], strides = [1, 1]} : vector<128x96xf32> to vector<128x8xf32>
    %65 = vector.shape_cast %64 : vector<128x8xf32> to vector<8x16x8xf32>
    %66 = vector.extract_strided_slice %29 {offsets = [0, 72], sizes = [128, 8], strides = [1, 1]} : vector<128x96xf32> to vector<128x8xf32>
    %67 = vector.shape_cast %66 : vector<128x8xf32> to vector<8x16x8xf32>
    "tpu.trace_start"() <{level = 10 : i32, message = "wqd,wkd->wqk"}> : () -> ()
    %cst_26 = arith.constant dense<0.000000e+00> : vector<8x16x16xf32>
    %68 = tpu.matmul %63, %65, %cst_26 {dimension_numbers = #tpu.dot_dimension_numbers<[2], [2], [1], [1], [0, 0, 0, 1, 1, 1], [0], [0]>} : vector<8x16x8xf32>, vector<8x16x8xf32>, vector<8x16x16xf32> -> vector<8x16x16xf32>
    "tpu.trace_stop"() : () -> ()
    %69 = vector.extract_strided_slice %30 {offsets = [1, 0, 0], sizes = [1, 16, 16], strides = [1, 1, 1]} : vector<4x16x16xf32> to vector<1x16x16xf32>
    %70 = vector.shape_cast %69 : vector<1x16x16xf32> to vector<16x16xf32>
    %71 = vector.shape_cast %70 : vector<16x16xf32> to vector<1x16x16xf32>
    %72 = vector.broadcast %71 : vector<1x16x16xf32> to vector<8x16x16xf32>
    %73 = arith.addf %68, %72 : vector<8x16x16xf32>
    %cst_27 = arith.constant dense<0xFF800000> : vector<8x16xf32>
    %74 = vector.multi_reduction <maximumf>, %73, %cst_27 [2] : vector<8x16x16xf32> to vector<8x16xf32>
    %75 = vector.shape_cast %74 : vector<8x16xf32> to vector<8x16x1xf32>
    %76 = vector.broadcast %75 : vector<8x16x1xf32> to vector<8x16x16xf32>
    %77 = arith.subf %73, %76 : vector<8x16x16xf32>
    %78 = math.exp %77 : vector<8x16x16xf32>
    %cst_28 = arith.constant dense<0.000000e+00> : vector<8x16xf32>
    %79 = vector.multi_reduction <add>, %78, %cst_28 [2] : vector<8x16x16xf32> to vector<8x16xf32>
    %80 = vector.shape_cast %79 : vector<8x16xf32> to vector<8x16x1xf32>
    %81 = vector.broadcast %80 : vector<8x16x1xf32> to vector<8x16x16xf32>
    %82 = arith.divf %78, %81 : vector<8x16x16xf32>
    %83 = vector.extract_strided_slice %82 {offsets = [0, 0, 0], sizes = [8, 1, 16], strides = [1, 1, 1]} : vector<8x16x16xf32> to vector<8x1x16xf32>
    %84 = arith.addf %56, %83 : vector<8x1x16xf32>
    "tpu.trace_start"() <{level = 10 : i32, message = "wqk,wkd->wqd"}> : () -> ()
    %cst_29 = arith.constant dense<0.000000e+00> : vector<8x16x8xf32>
    %85 = tpu.matmul %82, %67, %cst_29 {dimension_numbers = #tpu.dot_dimension_numbers<[2], [1], [1], [2], [0, 0, 0, 1, 1, 2], [0], [0]>} : vector<8x16x16xf32>, vector<8x16x8xf32>, vector<8x16x8xf32> -> vector<8x16x8xf32>
    "tpu.trace_stop"() : () -> ()
    %86 = vector.shape_cast %85 : vector<8x16x8xf32> to vector<128x8xf32>
    %c0_30 = arith.constant 0 : index
    %c8 = arith.constant 8 : index
    %87 = vector.load %arg11[%c0_30, %c8] : memref<128x32xf32, #tpu.memory_space<vmem>>, vector<128x8xf32>
    tpu.vector_store %arg11[%c0_30, %c8], %86 {strides = array<i32>} : memref<128x32xf32, #tpu.memory_space<vmem>>, vector<128x8xf32>,
    %88 = vector.extract_strided_slice %29 {offsets = [0, 16], sizes = [128, 8], strides = [1, 1]} : vector<128x96xf32> to vector<128x8xf32>
    %89 = vector.shape_cast %88 : vector<128x8xf32> to vector<8x16x8xf32>
    %cst_31 = arith.constant 0.353553385 : f32
    %90 = vector.broadcast %cst_31 : f32 to vector<8x16x8xf32>
    %91 = arith.mulf %89, %90 : vector<8x16x8xf32>
    %92 = vector.extract_strided_slice %29 {offsets = [0, 48], sizes = [128, 8], strides = [1, 1]} : vector<128x96xf32> to vector<128x8xf32>
    %93 = vector.shape_cast %92 : vector<128x8xf32> to vector<8x16x8xf32>
    %94 = vector.extract_strided_slice %29 {offsets = [0, 80], sizes = [128, 8], strides = [1, 1]} : vector<128x96xf32> to vector<128x8xf32>
    %95 = vector.shape_cast %94 : vector<128x8xf32> to vector<8x16x8xf32>
    "tpu.trace_start"() <{level = 10 : i32, message = "wqd,wkd->wqk"}> : () -> ()
    %cst_32 = arith.constant dense<0.000000e+00> : vector<8x16x16xf32>
    %96 = tpu.matmul %91, %93, %cst_32 {dimension_numbers = #tpu.dot_dimension_numbers<[2], [2], [1], [1], [0, 0, 0, 1, 1, 1], [0], [0]>} : vector<8x16x8xf32>, vector<8x16x8xf32>, vector<8x16x16xf32> -> vector<8x16x16xf32>
    "tpu.trace_stop"() : () -> ()
    %97 = vector.extract_strided_slice %30 {offsets = [2, 0, 0], sizes = [1, 16, 16], strides = [1, 1, 1]} : vector<4x16x16xf32> to vector<1x16x16xf32>
    %98 = vector.shape_cast %97 : vector<1x16x16xf32> to vector<16x16xf32>
    %99 = vector.shape_cast %98 : vector<16x16xf32> to vector<1x16x16xf32>
    %100 = vector.broadcast %99 : vector<1x16x16xf32> to vector<8x16x16xf32>
    %101 = arith.addf %96, %100 : vector<8x16x16xf32>
    %cst_33 = arith.constant dense<0xFF800000> : vector<8x16xf32>
    %102 = vector.multi_reduction <maximumf>, %101, %cst_33 [2] : vector<8x16x16xf32> to vector<8x16xf32>
    %103 = vector.shape_cast %102 : vector<8x16xf32> to vector<8x16x1xf32>
    %104 = vector.broadcast %103 : vector<8x16x1xf32> to vector<8x16x16xf32>
    %105 = arith.subf %101, %104 : vector<8x16x16xf32>
    %106 = math.exp %105 : vector<8x16x16xf32>
    %cst_34 = arith.constant dense<0.000000e+00> : vector<8x16xf32>
    %107 = vector.multi_reduction <add>, %106, %cst_34 [2] : vector<8x16x16xf32> to vector<8x16xf32>
    %108 = vector.shape_cast %107 : vector<8x16xf32> to vector<8x16x1xf32>
    %109 = vector.broadcast %108 : vector<8x16x1xf32> to vector<8x16x16xf32>
    %110 = arith.divf %106, %109 : vector<8x16x16xf32>
    %111 = vector.extract_strided_slice %110 {offsets = [0, 0, 0], sizes = [8, 1, 16], strides = [1, 1, 1]} : vector<8x16x16xf32> to vector<8x1x16xf32>
    %112 = arith.addf %84, %111 : vector<8x1x16xf32>
    "tpu.trace_start"() <{level = 10 : i32, message = "wqk,wkd->wqd"}> : () -> ()
    %cst_35 = arith.constant dense<0.000000e+00> : vector<8x16x8xf32>
    %113 = tpu.matmul %110, %95, %cst_35 {dimension_numbers = #tpu.dot_dimension_numbers<[2], [1], [1], [2], [0, 0, 0, 1, 1, 2], [0], [0]>} : vector<8x16x16xf32>, vector<8x16x8xf32>, vector<8x16x8xf32> -> vector<8x16x8xf32>
    "tpu.trace_stop"() : () -> ()
    %114 = vector.shape_cast %113 : vector<8x16x8xf32> to vector<128x8xf32>
    %c0_36 = arith.constant 0 : index
    %c16 = arith.constant 16 : index
    %115 = vector.load %arg11[%c0_36, %c16] : memref<128x32xf32, #tpu.memory_space<vmem>>, vector<128x8xf32>
    tpu.vector_store %arg11[%c0_36, %c16], %114 {strides = array<i32>} : memref<128x32xf32, #tpu.memory_space<vmem>>, vector<128x8xf32>,
    %116 = vector.extract_strided_slice %29 {offsets = [0, 24], sizes = [128, 8], strides = [1, 1]} : vector<128x96xf32> to vector<128x8xf32>
    %117 = vector.shape_cast %116 : vector<128x8xf32> to vector<8x16x8xf32>
    %cst_37 = arith.constant 0.353553385 : f32
    %118 = vector.broadcast %cst_37 : f32 to vector<8x16x8xf32>
    %119 = arith.mulf %117, %118 : vector<8x16x8xf32>
    %120 = vector.extract_strided_slice %29 {offsets = [0, 56], sizes = [128, 8], strides = [1, 1]} : vector<128x96xf32> to vector<128x8xf32>
    %121 = vector.shape_cast %120 : vector<128x8xf32> to vector<8x16x8xf32>
    %122 = vector.extract_strided_slice %29 {offsets = [0, 88], sizes = [128, 8], strides = [1, 1]} : vector<128x96xf32> to vector<128x8xf32>
    %123 = vector.shape_cast %122 : vector<128x8xf32> to vector<8x16x8xf32>
    "tpu.trace_start"() <{level = 10 : i32, message = "wqd,wkd->wqk"}> : () -> ()
    %cst_38 = arith.constant dense<0.000000e+00> : vector<8x16x16xf32>
    %124 = tpu.matmul %119, %121, %cst_38 {dimension_numbers = #tpu.dot_dimension_numbers<[2], [2], [1], [1], [0, 0, 0, 1, 1, 1], [0], [0]>} : vector<8x16x8xf32>, vector<8x16x8xf32>, vector<8x16x16xf32> -> vector<8x16x16xf32>
    "tpu.trace_stop"() : () -> ()
    %125 = vector.extract_strided_slice %30 {offsets = [3, 0, 0], sizes = [1, 16, 16], strides = [1, 1, 1]} : vector<4x16x16xf32> to vector<1x16x16xf32>
    %126 = vector.shape_cast %125 : vector<1x16x16xf32> to vector<16x16xf32>
    %127 = vector.shape_cast %126 : vector<16x16xf32> to vector<1x16x16xf32>
    %128 = vector.broadcast %127 : vector<1x16x16xf32> to vector<8x16x16xf32>
    %129 = arith.addf %124, %128 : vector<8x16x16xf32>
    %cst_39 = arith.constant dense<0xFF800000> : vector<8x16xf32>
    %130 = vector.multi_reduction <maximumf>, %129, %cst_39 [2] : vector<8x16x16xf32> to vector<8x16xf32>
    %131 = vector.shape_cast %130 : vector<8x16xf32> to vector<8x16x1xf32>
    %132 = vector.broadcast %131 : vector<8x16x1xf32> to vector<8x16x16xf32>
    %133 = arith.subf %129, %132 : vector<8x16x16xf32>
    %134 = math.exp %133 : vector<8x16x16xf32>
    %cst_40 = arith.constant dense<0.000000e+00> : vector<8x16xf32>
    %135 = vector.multi_reduction <add>, %134, %cst_40 [2] : vector<8x16x16xf32> to vector<8x16xf32>
    %136 = vector.shape_cast %135 : vector<8x16xf32> to vector<8x16x1xf32>
    %137 = vector.broadcast %136 : vector<8x16x1xf32> to vector<8x16x16xf32>
    %138 = arith.divf %134, %137 : vector<8x16x16xf32>
    %139 = vector.extract_strided_slice %138 {offsets = [0, 0, 0], sizes = [8, 1, 16], strides = [1, 1, 1]} : vector<8x16x16xf32> to vector<8x1x16xf32>
    %140 = arith.addf %112, %139 : vector<8x1x16xf32>
    "tpu.trace_start"() <{level = 10 : i32, message = "wqk,wkd->wqd"}> : () -> ()
    %cst_41 = arith.constant dense<0.000000e+00> : vector<8x16x8xf32>
    %141 = tpu.matmul %138, %123, %cst_41 {dimension_numbers = #tpu.dot_dimension_numbers<[2], [1], [1], [2], [0, 0, 0, 1, 1, 2], [0], [0]>} : vector<8x16x16xf32>, vector<8x16x8xf32>, vector<8x16x8xf32> -> vector<8x16x8xf32>
    "tpu.trace_stop"() : () -> ()
    %142 = vector.shape_cast %141 : vector<8x16x8xf32> to vector<128x8xf32>
    %c0_42 = arith.constant 0 : index
    %c24 = arith.constant 24 : index
    %143 = vector.load %arg11[%c0_42, %c24] : memref<128x32xf32, #tpu.memory_space<vmem>>, vector<128x8xf32>
    tpu.vector_store %arg11[%c0_42, %c24], %142 {strides = array<i32>} : memref<128x32xf32, #tpu.memory_space<vmem>>, vector<128x8xf32>,
    %c0_43 = arith.constant 0 : index
    %c0_44 = arith.constant 0 : index
    %144 = vector.load %arg11[%c0_43, %c0_44] : memref<128x32xf32, #tpu.memory_space<vmem>>, vector<128x32xf32>
    %c0_45 = arith.constant 0 : index
    %c0_46 = arith.constant 0 : index
    %145 = vector.load %arg7[%c0_45, %c0_46] : memref<32x32xf32, #tpu.memory_space<vmem>>, vector<32x32xf32>
    %cst_47 = arith.constant dense<0.000000e+00> : vector<128x32xf32>
    %146 = tpu.matmul %144, %145, %cst_47 {dimension_numbers = #tpu.dot_dimension_numbers<[1], [0], [0], [1], [0, 0, 1, 1], [], []>} : vector<128x32xf32>, vector<32x32xf32>, vector<128x32xf32> -> vector<128x32xf32>
    %c0_48 = arith.constant 0 : index
    %c0_49 = arith.constant 0 : index
    %147 = vector.load %arg8[%c0_48, %c0_49] : memref<1x32xf32, #tpu.memory_space<vmem>>, vector<1x32xf32>
    %148 = vector.broadcast %147 : vector<1x32xf32> to vector<128x32xf32>
    %149 = arith.addf %146, %148 : vector<128x32xf32>
    %c0_50 = arith.constant 0 : index
    %c0_51 = arith.constant 0 : index
    %150 = vector.load %arg9[%c0_50, %c0_51] : memref<128x32xf32, #tpu.memory_space<vmem>>, vector<128x32xf32>
    tpu.vector_store %arg9[%c0_50, %c0_51], %149 {strides = array<i32>} : memref<128x32xf32, #tpu.memory_space<vmem>>, vector<128x32xf32>,
    %cst_52 = arith.constant 2.500000e-01 : f32
    %151 = vector.broadcast %cst_52 : f32 to vector<8x1x16xf32>
    %152 = arith.mulf %140, %151 : vector<8x1x16xf32>
    %c0_53 = arith.constant 0 : index
    %c0_54 = arith.constant 0 : index
    %c0_55 = arith.constant 0 : index
    %153 = vector.load %arg10[%c0_53, %c0_54, %c0_55] : memref<8x1x16xf32, #tpu.memory_space<vmem>>, vector<8x1x16xf32>
    tpu.vector_store %arg10[%c0_53, %c0_54, %c0_55], %152 {strides = array<i32>} : memref<8x1x16xf32, #tpu.memory_space<vmem>>, vector<8x1x16xf32>,
    return
  }
  func.func @transform_0(%arg0: i32) -> (i32, i32) {
    %c0_i32 = arith.constant 0 : i32
    %c0_i32_0 = arith.constant 0 : i32
    return %arg0, %c0_i32 : i32, i32
  }
  func.func @transform_1(%arg0: i32) -> (i32, i32, i32) {
    %c0_i32 = arith.constant 0 : i32
    %c0_i32_0 = arith.constant 0 : i32
    %c0_i32_1 = arith.constant 0 : i32
    %c0_i32_2 = arith.constant 0 : i32
    return %c0_i32, %c0_i32_0, %c0_i32_1 : i32, i32, i32
  }
  func.func @transform_2(%arg0: i32) -> (i32, i32) {
    %c0_i32 = arith.constant 0 : i32
    %c0_i32_0 = arith.constant 0 : i32
    %c0_i32_1 = arith.constant 0 : i32
    return %c0_i32, %c0_i32_0 : i32, i32
  }
  func.func @transform_3(%arg0: i32) -> (i32, i32) {
    %c0_i32 = arith.constant 0 : i32
    %c0_i32_0 = arith.constant 0 : i32
    %c0_i32_1 = arith.constant 0 : i32
    return %c0_i32, %c0_i32_0 : i32, i32
  }
  func.func @transform_4(%arg0: i32) -> (i32, i32) {
    %c0_i32 = arith.constant 0 : i32
    %c0_i32_0 = arith.constant 0 : i32
    %c0_i32_1 = arith.constant 0 : i32
    return %c0_i32, %c0_i32_0 : i32, i32
  }
  func.func @transform_5(%arg0: i32) -> (i32, i32) {
    %c0_i32 = arith.constant 0 : i32
    %c0_i32_0 = arith.constant 0 : i32
    %c0_i32_1 = arith.constant 0 : i32
    return %c0_i32, %c0_i32_0 : i32, i32
  }
  func.func @transform_6(%arg0: i32) -> (i32, i32) {
    %c0_i32 = arith.constant 0 : i32
    %c0_i32_0 = arith.constant 0 : i32
    %c0_i32_1 = arith.constant 0 : i32
    return %c0_i32, %c0_i32_0 : i32, i32
  }
  func.func @transform_7(%arg0: i32) -> (i32, i32) {
    %c0_i32 = arith.constant 0 : i32
    %c0_i32_0 = arith.constant 0 : i32
    %c0_i32_1 = arith.constant 0 : i32
    return %c0_i32, %c0_i32_0 : i32, i32
  }
  func.func @transform_8(%arg0: i32) -> (i32, i32) {
    %c0_i32 = arith.constant 0 : i32
    %c0_i32_0 = arith.constant 0 : i32
    return %arg0, %c0_i32 : i32, i32
  }
  func.func @transform_9(%arg0: i32) -> (i32, i32, i32) {
    %c0_i32 = arith.constant 0 : i32
    %c0_i32_0 = arith.constant 0 : i32
    %c0_i32_1 = arith.constant 0 : i32
    return %arg0, %c0_i32, %c0_i32_0 : i32, i32, i32
  }
}

</mosaic_0001>

<bundles_post_ra>
// kernel: tpu_custom_call.1
= control target key start
LH: loop header
LB: loop body
LE: loop exit
PB: predicated region body
PF: predicated region fallthrough
CT: control target
= control target key end

     0   :  { %vm48_vm0 = vcmask 261120   ;;  %s11767_s0 = inlined_call_operand.vmem [shape: f32[128,32], index: 0, kind: input, shape index: {}]   ;;  %s11768_s1 = inlined_call_operand.vmem [shape: f32[4,16,16], index: 1, kind: input, shape index: {}]   ;;  %s11769_s2 = inlined_call_operand.vmem [shape: f32[1,32], index: 2, kind: input, shape index: {}]   ;;  %s11770_s3 = inlined_call_operand.vmem [shape: f32[1,32], index: 3, kind: input, shape index: {}]   ;;  %s11771_s4 = inlined_call_operand.vmem [shape: f32[32,96], index: 4, kind: input, shape index: {}]   ;;  %s11772_s5 = inlined_call_operand.vmem [shape: f32[1,96], index: 5, kind: input, shape index: {}]   ;;  %s11773_s6 = inlined_call_operand.vmem [shape: f32[32,32], index: 6, kind: input, shape index: {}]   ;;  %s11774_s7 = inlined_call_operand.vmem [shape: f32[1,32], index: 7, kind: input, shape index: {}]   ;;  %s11775_s8 = inlined_call_operand.vmem [shape: f32[128,32], index: 8, kind: output, shape index: {0}]   ;;  %s11776_s9 = inlined_call_operand.hbm [shape: f32[8,1,16], index: 9, kind: output, shape index: {1}]  }
   0x1   :  { %v32_v0 = vld [vmem:[%s11767_s0] sm:$0xff]  ;;  %v34_v1 = vld [vmem:[%s11767_s0 + $0x10] sm:$0xff]  ;;  %v33_v2 = vld [vmem:[%s11767_s0 + $0x8] sm:$0xff] }
   0x2   :  { %v49_v3 = vsel %vm48_vm0, %v32_v0, 0.0  ;;  %v55_v4 = vsel %vm48_vm0, %v34_v1, 0.0  ;;  %v35_v5 = vld [vmem:[%s11767_s0 + $0x18] sm:$0xff]  ;;  %v52_v6 = vsel %vm48_vm0, %v33_v2, 0.0  ;;  %v36_v8 = vld [vmem:[%s11767_s0 + $0x20] sm:$0xff]  ;;  %v37_v9 = vld [vmem:[%s11767_s0 + $0x28] sm:$0xff] }
   0x3   :  { %50 = vadd.xlane.f32.xlu0 %v49_v3  ;;  %56 = vadd.xlane.f32.xlu1 %v55_v4  ;;  %v58_v7 = vsel %vm48_vm0, %v35_v5, 0.0 }
   0x4   :  { %15 = vsyncpa [#allocation4], 0  ;;  %v61_v10 = vsel %vm48_vm0, %v36_v8, 0.0  ;;  %v64_v11 = vsel %vm48_vm0, %v37_v9, 0.0  ;;  %v9615_v12 = vld [vmem:[%s11767_s0 + $0x30] sm:$0xff]  ;;  %v9620_v13 = vld [vmem:[%s11767_s0 + $0x38] sm:$0xff] }
   0x5   :  { %v67_v14 = vsel %vm48_vm0, %v9615_v12, 0.0  ;;  %v70_v15 = vsel %vm48_vm0, %v9620_v13, 0.0  ;;  %v9629_v16 = vld [vmem:[%s11767_s0 + $0x40] sm:$0xff]  ;;  %v9634_v17 = vld [vmem:[%s11767_s0 + $0x48] sm:$0xff]  ;;  %v9643_v20 = vld [vmem:[%s11767_s0 + $0x50] sm:$0xff]  ;;  %vm538_vm1 = vcmask 64512  }
   0x6   :  { %v73_v18 = vsel %vm48_vm0, %v9629_v16, 0.0  ;;  %v76_v19 = vsel %vm48_vm0, %v9634_v17, 0.0  ;;  %v9648_v21 = vld [vmem:[%s11767_s0 + $0x58] sm:$0xff]  ;;  %v79_v22 = vsel %vm48_vm0, %v9643_v20, 0.0  ;;  %v9657_v24 = vld [vmem:[%s11767_s0 + $0x60] sm:$0xff]  ;;  %v9662_v25 = vld [vmem:[%s11767_s0 + $0x68] sm:$0xff] }
   0x7   :  { %53 = vadd.xlane.f32.xlu0 %v52_v6  ;;  %59 = vadd.xlane.f32.xlu1 %v58_v7  ;;  %v82_v23 = vsel %vm48_vm0, %v9648_v21, 0.0  ;;  %v85_v26 = vsel %vm48_vm0, %v9657_v24, 0.0  ;;  %v88_v27 = vsel %vm48_vm0, %v9662_v25, 0.0  ;;  %v9671_v28 = vld [vmem:[%s11767_s0 + $0x70] sm:$0xff]  ;;  %v9676_v29 = vld [vmem:[%s11767_s0 + $0x78] sm:$0xff]  ;;  %s9522_s30 = smov 96   ;;  %vm9959_vm2 = vmpackc.low %vm538_vm1, %vm538_vm1 }
   0x8   :  { %v91_v30 = vsel %vm48_vm0, %v9671_v28, 0.0  ;;  %v94_v31 = vsel %vm48_vm0, %v9676_v29, 0.0  ;;  %s9524_s10 = smov 88   ;;  %vm1261_vm3 = vcmask 130048   ;;  %s9525_s15 = smov 120   ;;  %vm7469_vm4 = vcmask 122880  }
   0x9   :  { %s9526_s16 = smov 56   ;;  %s9527_s17 = smov 80   ;;  %vm3830_vm5 = vcmask 130112   ;;  %vm5519_vm6 = vcmask 195712   ;;  %vm7208_vm7 = vcmask 261312  }
   0xa   :  { %s9528_s21 = smov 112   ;;  %s9529_s22 = smov 48  }
   0xb   :  { %62 = vadd.xlane.f32.xlu0 %v61_v10  ;;  %65 = vadd.xlane.f32.xlu1 %v64_v11  ;;  %s9530_s23 = smov 72   ;;  %s9531_s27 = smov 104  }
   0xc   :  { %s9532_s28 = smov 40   ;;  %s9535_s18 = smov 24  }
   0xf   :  { %68 = vadd.xlane.f32.xlu0 %v67_v14  ;;  %71 = vadd.xlane.f32.xlu1 %v70_v15 }
  0x13   :  { %74 = vadd.xlane.f32.xlu0 %v73_v18  ;;  %77 = vadd.xlane.f32.xlu1 %v76_v19 }
  0x17   :  { %80 = vadd.xlane.f32.xlu0 %v79_v22  ;;  %83 = vadd.xlane.f32.xlu1 %v82_v23 }
  0x1b   :  { %86 = vadd.xlane.f32.xlu0 %v85_v26  ;;  %89 = vadd.xlane.f32.xlu1 %v88_v27 }
  0x1f   :  { %92 = vadd.xlane.f32.xlu0 %v91_v30  ;;  %95 = vadd.xlane.f32.xlu1 %v94_v31 }
  0x90   :  { %v51_v32 = vpop.xlane.xlu0 %50  ;;  %v57_v33 = vpop.xlane.xlu1 %56 }
  0x91   :  { %v98_v34 = vmul.f32 0.03125, %v51_v32  ;;  %v100_v35 = vmul.f32 0.03125, %v57_v33 }
  0x93   :  { %v9682_v36 = vsub.f32 %v32_v0, %v98_v34  ;;  %v9684_v37 = vsub.f32 %v34_v1, %v100_v35 }
  0x94   :  { %v54_v38 = vpop.xlane.xlu0 %53  ;;  %v60_v39 = vpop.xlane.xlu1 %59 }
  0x95   :  { %v99_v40 = vmul.f32 0.03125, %v54_v38  ;;  %v101_v41 = vmul.f32 0.03125, %v60_v39  ;;  %v130_v42 = vmul.f32 %v9682_v36, %v9682_v36  ;;  %v132_v43 = vmul.f32 %v9684_v37, %v9684_v37 }
  0x97   :  { %v9690_v44 = vsub.f32 %v33_v2, %v99_v40  ;;  %v9692_v45 = vsub.f32 %v35_v5, %v101_v41  ;;  %v146_v46 = vsel %vm48_vm0, %v130_v42, 0.0  ;;  %v152_v49 = vsel %vm48_vm0, %v132_v43, 0.0 }
  0x98   :  { %147 = vadd.xlane.f32.xlu0 %v146_v46  ;;  %v63_v47 = vpop.xlane.xlu0 %62  ;;  %v66_v48 = vpop.xlane.xlu1 %65 }
  0x99   :  { %v102_v50 = vmul.f32 0.03125, %v63_v47  ;;  %v103_v51 = vmul.f32 0.03125, %v66_v48  ;;  %v131_v52 = vmul.f32 %v9690_v44, %v9690_v44  ;;  %v133_v53 = vmul.f32 %v9692_v45, %v9692_v45 }
  0x9b   :  { %v9700_v54 = vsub.f32 %v36_v8, %v102_v50  ;;  %v9702_v55 = vsub.f32 %v37_v9, %v103_v51  ;;  %v149_v56 = vsel %vm48_vm0, %v131_v52, 0.0  ;;  %v155_v59 = vsel %vm48_vm0, %v133_v53, 0.0  ;;  %v305_v53 = vld [vmem:[%s11771_s4 + $0x8] sm:$0xff] }
  0x9c   :  { %153 = vadd.xlane.f32.xlu0 %v152_v49  ;;  %150 = vadd.xlane.f32.xlu1 %v149_v56  ;;  %v69_v57 = vpop.xlane.xlu0 %68  ;;  %v72_v58 = vpop.xlane.xlu1 %71 }
  0x9d   :  { %v104_v60 = vmul.f32 0.03125, %v69_v57  ;;  %v105_v61 = vmul.f32 0.03125, %v72_v58  ;;  %v134_v62 = vmul.f32 %v9700_v54, %v9700_v54  ;;  %v135_v63 = vmul.f32 %v9702_v55, %v9702_v55  ;;  %v306_v57 = vld [vmem:[%s11771_s4 + $0x10] sm:$0xff]  ;;  %v307_v58 = vld [vmem:[%s11771_s4 + $0x18] sm:$0xff] }
  0x9f   :  { %v9711_v0 = vsub.f32 %v9615_v12, %v104_v60  ;;  %v9714_v1 = vsub.f32 %v9620_v13, %v105_v61  ;;  %v158_v2 = vsel %vm48_vm0, %v134_v62, 0.0  ;;  %v161_v5 = vsel %vm48_vm0, %v135_v63, 0.0 }
  0xa0   :  { %156 = vadd.xlane.f32.xlu1 %v155_v59  ;;  %159 = vadd.xlane.f32.xlu0 %v158_v2  ;;  %v75_v3 = vpop.xlane.xlu0 %74  ;;  %v78_v4 = vpop.xlane.xlu1 %77  ;;  %v8538_v59 = vpack.c.bf16 %v307_v58, %v306_v57 }
  0xa1   :  { %v106_v6 = vmul.f32 0.03125, %v75_v3  ;;  %v107_v7 = vmul.f32 0.03125, %v78_v4  ;;  %v136_v8 = vmul.f32 %v9711_v0, %v9711_v0  ;;  %v137_v9 = vmul.f32 %v9714_v1, %v9714_v1 }
  0xa3   :  { %v9723_v10 = vsub.f32 %v9629_v16, %v106_v6  ;;  %v9726_v11 = vsub.f32 %v9634_v17, %v107_v7  ;;  %v164_v12 = vsel %vm48_vm0, %v136_v8, 0.0  ;;  %v167_v15 = vsel %vm48_vm0, %v137_v9, 0.0 }
  0xa4   :  { %162 = vadd.xlane.f32.xlu1 %v161_v5  ;;  %165 = vadd.xlane.f32.xlu0 %v164_v12  ;;  %v81_v13 = vpop.xlane.xlu0 %80  ;;  %v84_v14 = vpop.xlane.xlu1 %83 }
  0xa5   :  { %v108_v18 = vmul.f32 0.03125, %v81_v13  ;;  %v109_v19 = vmul.f32 0.03125, %v84_v14  ;;  %v138_v22 = vmul.f32 %v9723_v10, %v9723_v10  ;;  %v139_v16 = vmul.f32 %v9726_v11, %v9726_v11 }
  0xa7   :  { %v9735_v23 = vsub.f32 %v9643_v20, %v108_v18  ;;  %v9738_v17 = vsub.f32 %v9648_v21, %v109_v19  ;;  %v170_v26 = vsel %vm48_vm0, %v138_v22, 0.0  ;;  %v173_v31 = vsel %vm48_vm0, %v139_v16, 0.0 }
  0xa8   :  { %168 = vadd.xlane.f32.xlu1 %v167_v15  ;;  %171 = vadd.xlane.f32.xlu0 %v170_v26  ;;  %v87_v27 = vpop.xlane.xlu0 %86  ;;  %v90_v30 = vpop.xlane.xlu1 %89 }
  0xa9   :  { %v110_v32 = vmul.f32 0.03125, %v87_v27  ;;  %v111_v33 = vmul.f32 0.03125, %v90_v30  ;;  %v140_v34 = vmul.f32 %v9735_v23, %v9735_v23  ;;  %v141_v20 = vmul.f32 %v9738_v17, %v9738_v17  ;;  %v9787_v30 = vld [vmem:[%s11769_s2] ss:$0 sm:$0xff] }
  0xab   :  { %v9747_v35 = vsub.f32 %v9657_v24, %v110_v32  ;;  %v9750_v21 = vsub.f32 %v9662_v25, %v111_v33  ;;  %v176_v38 = vsel %vm48_vm0, %v140_v34, 0.0  ;;  %v179_v41 = vsel %vm48_vm0, %v141_v20, 0.0 }
  0xac   :  { %174 = vadd.xlane.f32.xlu1 %v173_v31  ;;  %177 = vadd.xlane.f32.xlu0 %v176_v38  ;;  %v93_v39 = vpop.xlane.xlu0 %92  ;;  %v96_v40 = vpop.xlane.xlu1 %95  ;;  %v9793_v38 = vld [vmem:[%s11770_s3] ss:$0 sm:$0xff] }
  0xad   :  { %v112_v42 = vmul.f32 0.03125, %v93_v39  ;;  %v113_v43 = vmul.f32 0.03125, %v96_v40  ;;  %v142_v46 = vmul.f32 %v9747_v35, %v9747_v35  ;;  %v143_v24 = vmul.f32 %v9750_v21, %v9750_v21 }
  0xaf   :  { %v9759_v47 = vsub.f32 %v9671_v28, %v112_v42  ;;  %v9762_v25 = vsub.f32 %v9676_v29, %v113_v43  ;;  %v182_v48 = vsel %vm48_vm0, %v142_v46, 0.0  ;;  %v185_v49 = vsel %vm48_vm0, %v143_v24, 0.0  ;;  %v304_v29 = vld [vmem:[%s11771_s4] sm:$0xff] }
  0xb0   :  { %180 = vadd.xlane.f32.xlu1 %v179_v41  ;;  %183 = vadd.xlane.f32.xlu0 %v182_v48  ;;  %v8534_v56 = vpack.c.bf16 %v305_v53, %v304_v29 }
  0xb1   :  { %v144_v50 = vmul.f32 %v9759_v47, %v9759_v47  ;;  %v145_v51 = vmul.f32 %v9762_v25, %v9762_v25 }
  0xb2   :  { %8535 = vmatprep.subr.bf16.mxu0 %v8534_v56  ;;  %8870 = vmatprep.subr.bf16.mxu1 %v8534_v56 }
  0xb3   :  { %v188_v52 = vsel %vm48_vm0, %v144_v50, 0.0  ;;  %v191_v28 = vsel %vm48_vm0, %v145_v51, 0.0  ;;  %8537 = vmatpush3.bf16.msra.mxu0 %v8534_v56  ;;  %8872 = vmatpush3.bf16.msra.mxu1 %v8534_v56 }
  0xb4   :  { %186 = vadd.xlane.f32.xlu1 %v185_v49  ;;  %189 = vadd.xlane.f32.xlu0 %v188_v52 }
  0xb5   :  { %8539 = vmatprep.subr.bf16.mxu0 %v8538_v59  ;;  %8871 = vmatprep.subr.bf16.mxu1 %v8538_v59 }
  0xb7   :  { %8541 = vmatpush3.bf16.msra.mxu0 %v8538_v59  ;;  %8873 = vmatpush3.bf16.msra.mxu1 %v8538_v59 }
  0xb8   :  { %192 = vadd.xlane.f32.xlu1 %v191_v28 }
 0x125   :  { %v148_v60 = vpop.xlane.xlu0 %147 }
 0x126   :  { %v194_v61 = vmul.f32 0.03125, %v148_v60 }
 0x128   :  { %v210_v62 = vadd.f32 1e-05, %v194_v61 }
 0x129   :  { %v151_v63 = vpop.xlane.xlu1 %150  ;;  %v154_v2 = vpop.xlane.xlu0 %153 }
 0x12a   :  { %9210 = vrsqrt.f32 %v210_v62  ;;  %v195_v3 = vmul.f32 0.03125, %v151_v63  ;;  %v196_v4 = vmul.f32 0.03125, %v154_v2 }
 0x12c   :  { %v211_v5 = vadd.f32 1e-05, %v195_v3  ;;  %v212_v6 = vadd.f32 1e-05, %v196_v4 }
 0x12d   :  { %v157_v7 = vpop.xlane.xlu1 %156  ;;  %v160_v8 = vpop.xlane.xlu0 %159 }
 0x12e   :  { %9212 = vrsqrt.f32 %v211_v5  ;;  %v197_v9 = vmul.f32 0.03125, %v157_v7  ;;  %v198_v12 = vmul.f32 0.03125, %v160_v8 }
 0x12f   :  { %9214 = vrsqrt.f32 %v212_v6 }
 0x130   :  { %v213_v13 = vadd.f32 1e-05, %v197_v9  ;;  %v214_v14 = vadd.f32 1e-05, %v198_v12 }
 0x131   :  { %v163_v15 = vpop.xlane.xlu1 %162  ;;  %v166_v18 = vpop.xlane.xlu0 %165 }
 0x132   :  { %9216 = vrsqrt.f32 %v213_v13  ;;  %v199_v19 = vmul.f32 0.03125, %v163_v15  ;;  %v200_v22 = vmul.f32 0.03125, %v166_v18 }
 0x133   :  { %9218 = vrsqrt.f32 %v214_v14 }
 0x134   :  { %v9211_v16 = vpop.eup %9210  ;;  %v215_v26 = vadd.f32 1e-05, %v199_v19  ;;  %v216_v27 = vadd.f32 1e-05, %v200_v22 }
 0x135   :  { %v169_v31 = vpop.xlane.xlu1 %168  ;;  %v172_v32 = vpop.xlane.xlu0 %171  ;;  %v242_v33 = vmul.f32 %v9211_v16, %v9682_v36 }
 0x136   :  { %9220 = vrsqrt.f32 %v215_v26  ;;  %v201_v34 = vmul.f32 0.03125, %v169_v31  ;;  %v202_v20 = vmul.f32 0.03125, %v172_v32 }
 0x137   :  { %9222 = vrsqrt.f32 %v216_v27  ;;  %v265_v39 = vmul.f32 %v9787_v30, %v242_v33 }
 0x138   :  { %v9213_v40 = vpop.eup %9212  ;;  %v217_v41 = vadd.f32 1e-05, %v201_v34  ;;  %v218_v42 = vadd.f32 1e-05, %v202_v20 }
 0x139   :  { %v9215_v43 = vpop.eup %9214  ;;  %v175_v46 = vpop.xlane.xlu1 %174  ;;  %v288_v48 = vadd.f32 %v9793_v38, %v265_v39  ;;  %v243_v36 = vmul.f32 %v9213_v40, %v9690_v44 }
 0x13a   :  { %v178_v24 = vpop.xlane.xlu0 %177  ;;  %9224 = vrsqrt.f32 %v217_v41  ;;  %v203_v49 = vmul.f32 0.03125, %v175_v46  ;;  %v244_v51 = vmul.f32 %v9215_v43, %v9684_v37 }
 0x13b   :  { %v204_v50 = vmul.f32 0.03125, %v178_v24  ;;  %9226 = vrsqrt.f32 %v218_v42  ;;  %8030 = vmatprep.mubr.msk.f32.mxu0 %vm48_vm0, %v288_v48  ;;  %v266_v52 = vmul.f32 %v9787_v30, %v243_v36 }
 0x13c   :  { %v9217_v28 = vpop.eup %9216  ;;  %v219_v29 = vadd.f32 1e-05, %v203_v49  ;;  %v267_v56 = vmul.f32 %v9787_v30, %v244_v51 }
 0x13d   :  { %v220_v53 = vadd.f32 1e-05, %v204_v50  ;;  %v9219_v57 = vpop.eup %9218  ;;  %v181_v58 = vpop.xlane.xlu1 %180  ;;  %v289_v44 = vadd.f32 %v9793_v38, %v266_v52  ;;  %v245_v60 = vmul.f32 %v9217_v28, %v9692_v45 }
 0x13e   :  { %v184_v59 = vpop.xlane.xlu0 %183  ;;  %9228 = vrsqrt.f32 %v219_v29  ;;  %v205_v61 = vmul.f32 0.03125, %v181_v58  ;;  %v290_v62 = vadd.f32 %v9793_v38, %v267_v56  ;;  %v246_v2 = vmul.f32 %v9219_v57, %v9700_v54 }
 0x13f   :  { %v206_v37 = vmul.f32 0.03125, %v184_v59  ;;  %9230 = vrsqrt.f32 %v220_v53  ;;  %8031 = vmatmul.mubr.msk.f32.vlgmr.msra.gmra.mrb[0].mxu0 %vm48_vm0, %v289_v44  ;;  %v268_v63 = vmul.f32 %v9787_v30, %v245_v60 }
 0x140   :  { %v9221_v3 = vpop.eup %9220  ;;  %v221_v4 = vadd.f32 1e-05, %v205_v61  ;;  %8033 = vmatprep.mubr.msk.f32.mxu0 %vm48_vm0, %v290_v62  ;;  %v269_v9 = vmul.f32 %v9787_v30, %v246_v2  ;;  %v7500_v62 = vld [vmem:[%s11772_s5] ss:$0 sm:$0xff]  ;;  %s9523_s5 = smov 64  }
 0x141   :  { %v222_v5 = vadd.f32 1e-05, %v206_v37  ;;  %v9223_v6 = vpop.eup %9222  ;;  %v187_v7 = vpop.xlane.xlu1 %186  ;;  %v291_v8 = vadd.f32 %v9793_v38, %v268_v63  ;;  %v247_v12 = vmul.f32 %v9221_v3, %v9702_v55 }
 0x142   :  { %v190_v45 = vpop.xlane.xlu0 %189  ;;  %9232 = vrsqrt.f32 %v221_v4  ;;  %v207_v13 = vmul.f32 0.03125, %v187_v7  ;;  %v248_v15 = vmul.f32 %v9223_v6, %v9711_v0  ;;  %v292_v54 = vadd.f32 %v9793_v38, %v269_v9 }
 0x143   :  { %v208_v14 = vmul.f32 0.03125, %v190_v45  ;;  %9234 = vrsqrt.f32 %v222_v5  ;;  %8034 = vmatmul.mubr.msk.f32.gmra.mrb[2].mxu0 %vm48_vm0, %v291_v8  ;;  %v270_v18 = vmul.f32 %v9787_v30, %v247_v12 }
 0x144   :  { %v9225_v19 = vpop.eup %9224  ;;  %v223_v22 = vadd.f32 1e-05, %v207_v13  ;;  %v271_v26 = vmul.f32 %v9787_v30, %v248_v15  ;;  %8036 = vmatprep.mubr.msk.f32.mxu0 %vm48_vm0, %v292_v54 }
 0x145   :  { %v224_v16 = vadd.f32 1e-05, %v208_v14  ;;  %v9227_v27 = vpop.eup %9226  ;;  %v193_v55 = vpop.xlane.xlu1 %192  ;;  %v293_v31 = vadd.f32 %v9793_v38, %v270_v18  ;;  %v249_v0 = vmul.f32 %v9225_v19, %v9714_v1 }
 0x146   :  { %9236 = vrsqrt.f32 %v223_v22  ;;  %v209_v32 = vmul.f32 0.03125, %v193_v55  ;;  %v294_v33 = vadd.f32 %v9793_v38, %v271_v26  ;;  %v250_v34 = vmul.f32 %v9227_v27, %v9723_v10 }
 0x147   :  { %9238 = vrsqrt.f32 %v224_v16  ;;  %8037 = vmatmul.mubr.msk.f32.gmra.mrb[4].mxu0 %vm48_vm0, %v293_v31  ;;  %v272_v20 = vmul.f32 %v9787_v30, %v249_v0 }
 0x148   :  { %v9229_v39 = vpop.eup %9228  ;;  %v225_v40 = vadd.f32 1e-05, %v209_v32  ;;  %8039 = vmatprep.mubr.msk.f32.mxu0 %vm48_vm0, %v294_v33  ;;  %v273_v41 = vmul.f32 %v9787_v30, %v250_v34 }
 0x149   :  { %v9231_v42 = vpop.eup %9230  ;;  %v295_v1 = vadd.f32 %v9793_v38, %v272_v20  ;;  %v251_v43 = vmul.f32 %v9229_v39, %v9726_v11 }
 0x14a   :  { %9240 = vrsqrt.f32 %v225_v40  ;;  %v296_v46 = vadd.f32 %v9793_v38, %v273_v41  ;;  %v252_v10 = vmul.f32 %v9231_v42, %v9735_v23 }
 0x14b   :  { %8040 = vmatmul.mubr.msk.f32.gmra.mrb[6].mxu0 %vm48_vm0, %v295_v1  ;;  %v274_v24 = vmul.f32 %v9787_v30, %v251_v43 }
 0x14c   :  { %v9233_v48 = vpop.eup %9232  ;;  %8042 = vmatprep.mubr.msk.f32.mxu1 %vm48_vm0, %v296_v46  ;;  %v275_v36 = vmul.f32 %v9787_v30, %v252_v10 }
 0x14d   :  { %v9235_v49 = vpop.eup %9234  ;;  %v297_v50 = vadd.f32 %v9793_v38, %v274_v24  ;;  %v253_v51 = vmul.f32 %v9233_v48, %v9738_v17 }
 0x14e   :  { %v298_v11 = vadd.f32 %v9793_v38, %v275_v36  ;;  %v254_v52 = vmul.f32 %v9235_v49, %v9747_v35 }
 0x14f   :  { %8043 = vmatmul.mubr.msk.f32.vlgmr.msra.gmra.mrb[0].mxu1 %vm48_vm0, %v297_v50  ;;  %v276_v23 = vmul.f32 %v9787_v30, %v253_v51 }
 0x150   :  { %v9237_v28 = vpop.eup %9236  ;;  %8045 = vmatprep.mubr.msk.f32.mxu1 %vm48_vm0, %v298_v11  ;;  %v277_v29 = vmul.f32 %v9787_v30, %v254_v52 }
 0x151   :  { %v9239_v53 = vpop.eup %9238  ;;  %v299_v56 = vadd.f32 %v9793_v38, %v276_v23  ;;  %v255_v57 = vmul.f32 %v9237_v28, %v9750_v21 }
 0x152   :  { %v300_v17 = vadd.f32 %v9793_v38, %v277_v29  ;;  %v256_v58 = vmul.f32 %v9239_v53, %v9759_v47 }
 0x153   :  { %8046 = vmatmul.mubr.msk.f32.gmra.mrb[2].mxu1 %vm48_vm0, %v299_v56  ;;  %v278_v35 = vmul.f32 %v9787_v30, %v255_v57 }
 0x154   :  { %v9241_v59 = vpop.eup %9240  ;;  %8048 = vmatprep.mubr.msk.f32.mxu1 %vm48_vm0, %v300_v17  ;;  %v279_v44 = vmul.f32 %v9787_v30, %v256_v58 }
 0x155   :  { %v301_v60 = vadd.f32 %v9793_v38, %v278_v35  ;;  %v257_v61 = vmul.f32 %v9241_v59, %v9762_v25 }
 0x156   :  { %v302_v37 = vadd.f32 %v9793_v38, %v279_v44 }
 0x157   :  { %8049 = vmatmul.mubr.msk.f32.gmra.mrb[4].mxu1 %vm48_vm0, %v301_v60  ;;  %v280_v21 = vmul.f32 %v9787_v30, %v257_v61 }
 0x158   :  { %8051 = vmatprep.mubr.msk.f32.mxu1 %vm48_vm0, %v302_v37 }
 0x159   :  { %v303_v47 = vadd.f32 %v9793_v38, %v280_v21 }
 0x15b   :  { %8052 = vmatmul.mubr.msk.f32.gmra.mrb[6].mxu1 %vm48_vm0, %v303_v47 }
 0x212   :  { %v8032_v63 = vpop.f32.mrb[0].mxu0 }
 0x213   :  { %v9861_v2 = vadd.f32 %v8032_v63, %v7500_v62  ;;  %v429_v25 = vpop.f32.mrb[1].mxu0 }
 0x214   :  { %v430_v3 = vadd.f32 %v7500_v62, %v429_v25 }
 0x215   :  { %v9970_v58 = vmul.f32 0.35355338, %v9861_v2 }
 0x216   :  { %v8035_v4 = vpop.f32.mrb[2].mxu0  ;;  %v9864_v5 = vpack.i.bf16 %v9861_v2, %v430_v3  ;;  %v9866_v30 = vmul.f32 0.35355338, %v430_v3 }
 0x217   :  { %v9868_v6 = vadd.f32 %v8035_v4, %v7500_v62  ;;  %v439_v38 = vpop.f32.mrb[3].mxu0 }
 0x218   :  { %11788 = vst [vmem:[#allocation6_spill] sm:$0xff] %v9864_v5  ;;  %v9870_v7 = vadd.f32 %v7500_v62, %v439_v38  ;;  %8891 = vrot.lane.b32.xlu0 %v9864_v5, %s9522_s30  ;;  %8058 = vmatprep.mubr.msk.f32.mxu1 %vm538_vm1, %v9866_v30 }
 0x219   :  { %v9984_v63 = vmul.f32 0.35355338, %v9868_v6 }
 0x21a   :  { %v8038_v45 = vpop.f32.mrb[4].mxu0  ;;  %v9878_v8 = vpack.i.bf16 %v9868_v6, %v9870_v7  ;;  %v9973_v35 = vmul.f32 0.35355338, %v9870_v7 }
 0x21b   :  { %v9880_v9 = vadd.f32 %v8038_v45, %v7500_v62  ;;  %v449_v12 = vpop.f32.mrb[5].mxu0 }
 0x21c   :  { %v9882_v13 = vadd.f32 %v7500_v62, %v449_v12  ;;  %8896 = vrot.lane.b32.xlu1 %v9878_v8, %s9522_s30  ;;  %11792 = vst [vmem:[#allocation8_spill] sm:$0xff] %v9973_v35 }
 0x21e   :  { %v8041_v14 = vpop.f32.mrb[6].mxu0  ;;  %v9888_v15 = vpack.i.bf16 %v9880_v9, %v9882_v13  ;;  %v9987_v2 = vmul.f32 0.35355338, %v9882_v13  ;;  %v10002_v13 = vmul.f32 0.35355338, %v9880_v9 }
 0x21f   :  { %v9890_v54 = vadd.f32 %v8041_v14, %v7500_v62  ;;  %v459_v18 = vpop.f32.mrb[7].mxu0 }
 0x220   :  { %11789 = vst [vmem:[#allocation7_spill] sm:$0xff] %v9888_v15  ;;  %v9892_v19 = vadd.f32 %v7500_v62, %v459_v18  ;;  %8901 = vrot.lane.b32.xlu1 %v9888_v15, %s9522_s30 }
 0x222   :  { %v8044_v22 = vpop.f32.mrb[0].mxu1  ;;  %v9898_v16 = vpack.i.bf16 %v9890_v54, %v9892_v19 }
 0x223   :  { %v9900_v26 = vadd.f32 %v8044_v22, %v7500_v62  ;;  %v469_v27 = vpop.f32.mrb[1].mxu1  ;;  %v10012_v22 = vmul.f32 0.35355338, %v9892_v19 }
 0x224   :  { %v470_v55 = vadd.f32 %v7500_v62, %v469_v27  ;;  %8906 = vrot.lane.b32.xlu1 %v9898_v16, %s9522_s30 }
 0x225   :  { %v10005_v18 = vmul.f32 0.35355338, %v9900_v26 }
 0x226   :  { %v8047_v31 = vpop.f32.mrb[2].mxu1  ;;  %v9905_v0 = vpack.i.bf16 %v9900_v26, %v470_v55  ;;  %v9907_v32 = vmul.f32 0.35355338, %v470_v55 }
 0x227   :  { %v9909_v33 = vadd.f32 %v8047_v31, %v7500_v62  ;;  %v479_v34 = vpop.f32.mrb[3].mxu1 }
 0x228   :  { %v9911_v20 = vadd.f32 %v7500_v62, %v479_v34  ;;  %8911 = vrot.lane.b32.xlu0 %v9905_v0, %s9522_s30  ;;  %8086 = vmatprep.mubr.msk.f32.mxu0 %vm538_vm1, %v9907_v32 }
 0x22a   :  { %v8050_v39 = vpop.f32.mrb[4].mxu1  ;;  %v9919_v40 = vpack.i.bf16 %v9909_v33, %v9911_v20 }
 0x22b   :  { %v9921_v41 = vadd.f32 %v8050_v39, %v7500_v62  ;;  %v489_v42 = vpop.f32.mrb[5].mxu1  ;;  %v10030_v39 = vmul.f32 0.35355338, %v9890_v54 }
 0x22c   :  { %v9923_v1 = vadd.f32 %v7500_v62, %v489_v42  ;;  %8916 = vrot.lane.b32.xlu1 %v9919_v40, %s9522_s30 }
 0x22e   :  { %v8053_v43 = vpop.f32.mrb[6].mxu1  ;;  %v9929_v46 = vpack.i.bf16 %v9921_v41, %v9923_v1  ;;  %v10019_v9 = vmul.f32 0.35355338, %v9923_v1 }
 0x22f   :  { %v9931_v10 = vadd.f32 %v8053_v43, %v7500_v62  ;;  %v499_v24 = vpop.f32.mrb[7].mxu1  ;;  %v10033_v43 = vmul.f32 0.35355338, %v9921_v41 }
 0x230   :  { %v9933_v48 = vadd.f32 %v7500_v62, %v499_v24  ;;  %8921 = vrot.lane.b32.xlu0 %v9929_v46, %s9522_s30 }
 0x232   :  { %v9939_v36 = vpack.i.bf16 %v9931_v10, %v9933_v48 }
 0x234   :  { %8936 = vrot.lane.b32.xlu0 %v9878_v8, %s9523_s5  ;;  %8926 = vrot.lane.b32.xlu1 %v9939_v36, %s9522_s30 }
 0x238   :  { %8956 = vrot.lane.b32.xlu0 %v9929_v46, %s9523_s5  ;;  %8931 = vrot.lane.b32.xlu1 %v9864_v5, %s9523_s5 }
 0x23c   :  { %8961 = vrot.lane.b32.xlu0 %v9864_v5, %s9524_s10  ;;  %8941 = vrot.lane.b32.xlu1 %v9888_v15, %s9523_s5 }
 0x240   :  { %8971 = vrot.lane.b32.xlu0 %v9888_v15, %s9524_s10  ;;  %8946 = vrot.lane.b32.xlu1 %v9905_v0, %s9523_s5 }
 0x244   :  { %8951 = vrot.lane.b32.xlu1 %v9919_v40, %s9523_s5 }
 0x248   :  { %8966 = vrot.lane.b32.xlu1 %v9878_v8, %s9524_s10 }
 0x24c   :  { %8976 = vrot.lane.b32.xlu1 %v9898_v16, %s9523_s5 }
 0x250   :  { %8981 = vrot.lane.b32.xlu1 %v9939_v36, %s9523_s5  ;;  %s9534_s5 = smov 16  }
 0x28a   :  { %v8892_v49 = vpop.permute.xlu0 %8891 }
 0x28b   :  { %v8894_v50 = vunpack.i.h.bf16 %v8892_v49  ;;  %v8893_v51 = vunpack.i.l.bf16 %v8892_v49 }
 0x28d   :  { %v8542_v52 = vpack.c.bf16 %v8894_v50, %v8893_v51  ;;  %v10038_v50 = vmul.f32 0.35355338, %v9911_v20 }
 0x28e   :  { %v8897_v23 = vpop.permute.xlu1 %8896 }
 0x28f   :  { %v8899_v28 = vunpack.i.h.bf16 %v8897_v23  ;;  %v8898_v29 = vunpack.i.l.bf16 %v8897_v23  ;;  %8544 = vmatprep.subr.msk.bf16.mxu1 %vm9959_vm2, %v8542_v52 }
 0x290   :  { %8547 = vmatpush3.bf16.xpose.msk.msra.mxu1 %vm9959_vm2, %v8542_v52 }
 0x291   :  { %v8548_v53 = vpack.c.bf16 %v8899_v28, %v8898_v29  ;;  %v10054_v28 = vmul.f32 0.35355338, %v9909_v33  ;;  %v10070_v33 = vmul.f32 0.35355338, %v9931_v10  ;;  %v508_v10 = vld [vmem:[%s11768_s1] sm:$0xff] }
 0x292   :  { %v8902_v56 = vpop.permute.xlu1 %8901 }
 0x293   :  { %v8904_v57 = vunpack.i.h.bf16 %v8902_v56  ;;  %v8903_v17 = vunpack.i.l.bf16 %v8902_v56  ;;  %8550 = vmatprep.subr.msk.bf16.mxu1 %vm9959_vm2, %v8548_v53 }
 0x295   :  { %v8554_v59 = vpack.c.bf16 %v8904_v57, %v8903_v17 }
 0x296   :  { %v8907_v44 = vpop.permute.xlu1 %8906 }
 0x297   :  { %8059 = vmatmul.mubr.msk.f32.vlgmr.msra.gmra.mrb[8].mxu1 %vm538_vm1, %v9970_v58  ;;  %v8909_v61 = vunpack.i.h.bf16 %v8907_v44  ;;  %v8908_v37 = vunpack.i.l.bf16 %v8907_v44 }
 0x298   :  { %8553 = vmatpush3.bf16.xpose.msk.msra.mxu1 %vm9959_vm2, %v8548_v53  ;;  %8065 = vmatprep.mubr.msk.f32.mxu1 %vm538_vm1, %v9973_v35  ;;  %v10059_v53 = vmul.f32 0.35355338, %v9933_v48 }
 0x299   :  { %8556 = vmatprep.subr.msk.bf16.mxu1 %vm9959_vm2, %v8554_v59  ;;  %v8560_v25 = vpack.c.bf16 %v8909_v61, %v8908_v37 }
 0x29a   :  { %v8912_v60 = vpop.permute.xlu0 %8911 }
 0x29b   :  { %v8914_v21 = vunpack.i.h.bf16 %v8912_v60  ;;  %v8913_v47 = vunpack.i.l.bf16 %v8912_v60  ;;  %v509_v60 = vld [vmem:[%s11768_s1 + $0x8] sm:$0xff] }
 0x29d   :  { %v8566_v62 = vpack.c.bf16 %v8914_v21, %v8913_v47 }
 0x29e   :  { %v8917_v3 = vpop.permute.xlu1 %8916 }
 0x29f   :  { %8066 = vmatmul.mubr.msk.f32.vlgmr.msra.gmra.mrb[10].mxu1 %vm538_vm1, %v9984_v63  ;;  %8568 = vmatprep.subr.msk.bf16.mxu0 %vm9959_vm2, %v8566_v62  ;;  %v8919_v7 = vunpack.i.h.bf16 %v8917_v3  ;;  %v8918_v45 = vunpack.i.l.bf16 %v8917_v3 }
 0x2a0   :  { %8559 = vmatpush3.bf16.xpose.msk.msra.mxu1 %vm9959_vm2, %v8554_v59  ;;  %8072 = vmatprep.mubr.msk.f32.mxu1 %vm538_vm1, %v9987_v2 }
 0x2a1   :  { %8571 = vmatpush3.bf16.xpose.msk.msra.mxu0 %vm9959_vm2, %v8566_v62  ;;  %8562 = vmatprep.subr.msk.bf16.mxu1 %vm9959_vm2, %v8560_v25  ;;  %v8572_v27 = vpack.c.bf16 %v8919_v7, %v8918_v45 }
 0x2a2   :  { %v8922_v4 = vpop.permute.xlu0 %8921 }
 0x2a3   :  { %v8924_v6 = vunpack.i.h.bf16 %v8922_v4  ;;  %v8923_v38 = vunpack.i.l.bf16 %v8922_v4 }
 0x2a5   :  { %v8578_v12 = vpack.c.bf16 %v8924_v6, %v8923_v38 }
 0x2a6   :  { %v8927_v14 = vpop.permute.xlu1 %8926  ;;  %v8937_v52 = vpop.permute.xlu0 %8936 }
 0x2a7   :  { %8073 = vmatmul.mubr.msk.f32.vlgmr.msra.gmra.mrb[12].mxu1 %vm538_vm1, %v10002_v13  ;;  %8580 = vmatprep.subr.msk.bf16.mxu0 %vm9959_vm2, %v8578_v12  ;;  %v8929_v31 = vunpack.i.h.bf16 %v8927_v14  ;;  %v8928_v34 = vunpack.i.l.bf16 %v8927_v14  ;;  %v8939_v20 = vunpack.i.h.bf16 %v8937_v52  ;;  %v8938_v23 = vunpack.i.l.bf16 %v8937_v52 }
 0x2a8   :  { %8087 = vmatmul.mubr.msk.f32.vlgmr.msra.gmra.mrb[8].mxu0 %vm538_vm1, %v10005_v18  ;;  %8565 = vmatpush3.bf16.xpose.msk.msra.mxu1 %vm9959_vm2, %v8560_v25 }
 0x2a9   :  { %8079 = vmatprep.mubr.msk.f32.mxu1 %vm538_vm1, %v10012_v22  ;;  %8583 = vmatpush3.bf16.xpose.msk.msra.mxu0 %vm9959_vm2, %v8578_v12  ;;  %v8584_v51 = vpack.c.bf16 %v8929_v31, %v8928_v34  ;;  %v8594_v56 = vpack.c.bf16 %v8939_v20, %v8938_v23 }
 0x2aa   :  { %8100 = vmatprep.mubr.msk.f32.mxu0 %vm538_vm1, %v10019_v9  ;;  %8574 = vmatprep.subr.msk.bf16.mxu1 %vm9959_vm2, %v8572_v27  ;;  %v8932_v19 = vpop.permute.xlu1 %8931 }
 0x2ab   :  { %v8934_v26 = vunpack.i.h.bf16 %v8932_v19  ;;  %v8933_v55 = vunpack.i.l.bf16 %v8932_v19 }
 0x2ad   :  { %v8590_v42 = vpack.c.bf16 %v8934_v26, %v8933_v55 }
 0x2ae   :  { %v8942_v1 = vpop.permute.xlu1 %8941 }
 0x2af   :  { %v8944_v24 = vunpack.i.h.bf16 %v8942_v1  ;;  %v8943_v49 = vunpack.i.l.bf16 %v8942_v1  ;;  %8080 = vmatmul.mubr.msk.f32.vlgmr.msra.gmra.mrb[14].mxu1 %vm538_vm1, %v10030_v39  ;;  %8591 = vmatprep.subr.bf16.mxu0 %v8590_v42 }
 0x2b0   :  { %8101 = vmatmul.mubr.msk.f32.vlgmr.msra.gmra.mrb[10].mxu0 %vm538_vm1, %v10033_v43  ;;  %8577 = vmatpush3.bf16.xpose.msk.msra.mxu1 %vm9959_vm2, %v8572_v27 }
 0x2b1   :  { %8093 = vmatprep.mubr.msk.f32.mxu1 %vm538_vm1, %v10038_v50  ;;  %8593 = vmatpush3.bf16.msra.mxu0 %v8590_v42  ;;  %v10046_v54 = vpack.c.bf16 %v8944_v24, %v8943_v49 }
 0x2b2   :  { %8586 = vmatprep.subr.msk.bf16.mxu1 %vm9959_vm2, %v8584_v51  ;;  %v10050_v41 = vpop.permute.xlu1 %8946 }
 0x2b3   :  { %8599 = vmatprep.subr.bf16.mxu0 %v10046_v54 }
 0x2b6   :  { %v10056_v29 = vpop.permute.xlu1 %8951 }
 0x2b7   :  { %8094 = vmatmul.mubr.msk.f32.vlgmr.msra.gmra.mrb[16].mxu1 %vm538_vm1, %v10054_v28 }
 0x2b8   :  { %8589 = vmatpush3.bf16.xpose.msk.msra.mxu1 %vm9959_vm2, %v8584_v51  ;;  %8107 = vmatprep.mubr.msk.f32.mxu1 %vm538_vm1, %v10059_v53 }
 0x2b9   :  { %8595 = vmatprep.subr.bf16.mxu1 %v8594_v56 }
 0x2ba   :  { %v10067_v57 = vpop.permute.xlu1 %8966 }
 0x2be   :  { %v8977_v17 = vpop.permute.xlu1 %8976 }
 0x2bf   :  { %v8979_v59 = vunpack.i.h.bf16 %v8977_v17  ;;  %v8978_v48 = vunpack.i.l.bf16 %v8977_v17  ;;  %8108 = vmatmul.mubr.msk.f32.vlgmr.msra.gmra.mrb[18].mxu1 %vm538_vm1, %v10070_v33 }
 0x2c0   :  { %8597 = vmatpush3.bf16.msra.mxu1 %v8594_v56 }
 0x2c1   :  { %v10074_v44 = vpack.c.bf16 %v8979_v59, %v8978_v48 }
 0x2c3   :  { %8603 = vmatprep.subr.bf16.mxu1 %v10074_v44 }
 0x36a   :  { %v8060_v61 = vpop.f32.mrb[8].mxu1 }
 0x36b   :  { %v10083_v37 = vadd.f32 %v8060_v61, %v509_v60  ;;  %v615_v21 = vpop.f32.mrb[9].mxu1 }
 0x36c   :  { %v10085_v47 = vadd.f32 %v615_v21, %v508_v10 }
 0x36d   :  { %v1265_v62 = vsel %vm1261_vm3, %v10083_v37, -inf }
 0x36e   :  { %1266 = vmax.xlane.f32.xlu1 %v1265_v62  ;;  %v1262_v25 = vsel %vm1261_vm3, %v10085_v47, -inf }
 0x36f   :  { %1263 = vmax.xlane.f32.xlu0 %v1262_v25 }
 0x372   :  { %v8067_v3 = vpop.f32.mrb[10].mxu1 }
 0x373   :  { %v10091_v4 = vadd.f32 %v8067_v3, %v509_v60  ;;  %v706_v6 = vpop.f32.mrb[11].mxu1 }
 0x374   :  { %v10093_v38 = vadd.f32 %v706_v6, %v508_v10 }
 0x375   :  { %v1271_v7 = vsel %vm1261_vm3, %v10091_v4, -inf }
 0x376   :  { %1272 = vmax.xlane.f32.xlu0 %v1271_v7  ;;  %v1268_v45 = vsel %vm1261_vm3, %v10093_v38, -inf }
 0x37a   :  { %v8074_v12 = vpop.f32.mrb[12].mxu1  ;;  %1269 = vmax.xlane.f32.xlu0 %v1268_v45 }
 0x37b   :  { %v8088_v14 = vpop.f32.mrb[8].mxu0  ;;  %v797_v27 = vpop.f32.mrb[13].mxu1  ;;  %v10111_v20 = vadd.f32 %v8074_v12, %v509_v60 }
 0x37c   :  { %v10099_v19 = vadd.f32 %v8088_v14, %v509_v60  ;;  %v979_v26 = vpop.f32.mrb[9].mxu0  ;;  %v10115_v56 = vadd.f32 %v797_v27, %v508_v10 }
 0x37d   :  { %v10101_v55 = vadd.f32 %v979_v26, %v508_v10  ;;  %v1277_v59 = vsel %vm1261_vm3, %v10111_v20, -inf }
 0x37e   :  { %v1289_v31 = vsel %vm1261_vm3, %v10099_v19, -inf  ;;  %v1274_v25 = vsel %vm1261_vm3, %v10115_v56, -inf }
 0x37f   :  { %1290 = vmax.xlane.f32.xlu1 %v1289_v31  ;;  %v1286_v34 = vsel %vm1261_vm3, %v10101_v55, -inf }
 0x382   :  { %v8081_v42 = vpop.f32.mrb[14].mxu1 }
 0x383   :  { %v8102_v1 = vpop.f32.mrb[10].mxu0  ;;  %1287 = vmax.xlane.f32.xlu1 %v1286_v34  ;;  %v888_v24 = vpop.f32.mrb[15].mxu1  ;;  %v10121_v61 = vadd.f32 %v8081_v42, %v509_v60 }
 0x384   :  { %v10107_v49 = vadd.f32 %v8102_v1, %v509_v60  ;;  %v1161_v51 = vpop.f32.mrb[11].mxu0  ;;  %v10129_v6 = vadd.f32 %v888_v24, %v508_v10 }
 0x385   :  { %v10109_v52 = vadd.f32 %v1161_v51, %v508_v10  ;;  %v1283_v7 = vsel %vm1261_vm3, %v10121_v61, -inf }
 0x386   :  { %v1301_v23 = vsel %vm1261_vm3, %v10107_v49, -inf  ;;  %v1280_v26 = vsel %vm1261_vm3, %v10129_v6, -inf }
 0x387   :  { %1302 = vmax.xlane.f32.xlu1 %v1301_v23  ;;  %v1298_v17 = vsel %vm1261_vm3, %v10109_v52, -inf }
 0x388   :  { %1299 = vmax.xlane.f32.xlu0 %v1298_v17 }
 0x38a   :  { %v8095_v48 = vpop.f32.mrb[16].mxu1 }
 0x38b   :  { %1278 = vmax.xlane.f32.xlu1 %v1277_v59  ;;  %v10123_v21 = vadd.f32 %v8095_v48, %v509_v60  ;;  %v1070_v62 = vpop.f32.mrb[17].mxu1 }
 0x38c   :  { %1275 = vmax.xlane.f32.xlu0 %v1274_v25  ;;  %v10133_v12 = vadd.f32 %v1070_v62, %v508_v10 }
 0x38d   :  { %v1295_v3 = vsel %vm1261_vm3, %v10123_v21, -inf }
 0x38e   :  { %v1292_v42 = vsel %vm1261_vm3, %v10133_v12, -inf }
 0x38f   :  { %1296 = vmax.xlane.f32.xlu1 %v1295_v3 }
 0x390   :  { %1284 = vmax.xlane.f32.xlu0 %v1283_v7 }
 0x392   :  { %v8109_v45 = vpop.f32.mrb[18].mxu1 }
 0x393   :  { %v10135_v14 = vadd.f32 %v8109_v45, %v509_v60  ;;  %v1252_v27 = vpop.f32.mrb[19].mxu1  ;;  %v10151_v60 = vpop.permute.xlu0 %8956 }
 0x394   :  { %1281 = vmax.xlane.f32.xlu0 %v1280_v26  ;;  %v10141_v34 = vadd.f32 %v1252_v27, %v508_v10  ;;  %v10155_v10 = vpop.permute.xlu1 %8981 }
 0x395   :  { %v1307_v31 = vsel %vm1261_vm3, %v10135_v14, -inf }
 0x396   :  { %1308 = vmax.xlane.f32.xlu1 %v1307_v31  ;;  %v1304_v1 = vsel %vm1261_vm3, %v10141_v34, -inf }
 0x397   :  { %v10153_v24 = vpop.permute.xlu0 %8961 }
 0x398   :  { %1293 = vmax.xlane.f32.xlu0 %v1292_v42 }
 0x39b   :  { %v10157_v51 = vpop.permute.xlu0 %8971 }
 0x39c   :  { %1305 = vmax.xlane.f32.xlu0 %v1304_v1 }
 0x3a7   :  { %2158 = vrot.lane.b32.xlu1 %v9866_v30, %s9525_s15 }
 0x3b2   :  { %2160 = vrot.lane.b32.xlu0 %v9970_v58, %s9525_s15 }
 0x3fb   :  { %v1267_v23 = vpop.xlane.xlu1 %1266 }
 0x3fc   :  { %v1311_v17 = vsub.f32 %v10083_v37, %v1267_v23  ;;  %v1264_v59 = vpop.xlane.xlu0 %1263 }
 0x3fd   :  { %v1310_v48 = vsub.f32 %v10085_v47, %v1264_v59 }
 0x3fe   :  { %v1328_v62 = vmul.f32 1.442695, %v1311_v17 }
 0x3ff   :  { %v1326_v25 = vmul.f32 1.442695, %v1310_v48 }
 0x400   :  { %9242 = vpow2.f32 %v1328_v62 }
 0x401   :  { %9244 = vpow2.f32 %v1326_v25 }
 0x403   :  { %v1273_v3 = vpop.xlane.xlu0 %1272 }
 0x404   :  { %v1313_v7 = vsub.f32 %v10091_v4, %v1273_v3 }
 0x406   :  { %v1332_v45 = vmul.f32 1.442695, %v1313_v7 }
 0x407   :  { %v1270_v27 = vpop.xlane.xlu0 %1269 }
 0x408   :  { %9246 = vpow2.f32 %v1332_v45  ;;  %v1312_v26 = vsub.f32 %v10093_v38, %v1270_v27 }
 0x40a   :  { %v10163_v31 = vpop.eup %9242  ;;  %v1330_v42 = vmul.f32 1.442695, %v1312_v26 }
 0x40b   :  { %v10165_v1 = vpop.eup %9244  ;;  %v1361_v37 = vsel %vm1261_vm3, %v10163_v31, 0.0 }
 0x40c   :  { %9248 = vpow2.f32 %v1330_v42  ;;  %v1291_v47 = vpop.xlane.xlu1 %1290  ;;  %1362 = vadd.xlane.f32.xlu1 %v1361_v37  ;;  %v1358_v23 = vsel %vm1261_vm3, %v10165_v1, 0.0 }
 0x40d   :  { %v1319_v4 = vsub.f32 %v10099_v19, %v1291_v47  ;;  %1359 = vadd.xlane.f32.xlu0 %v1358_v23 }
 0x40f   :  { %v1344_v17 = vmul.f32 1.442695, %v1319_v4 }
 0x410   :  { %v1288_v59 = vpop.xlane.xlu1 %1287 }
 0x411   :  { %9250 = vpow2.f32 %v1344_v17  ;;  %v1318_v38 = vsub.f32 %v10101_v55, %v1288_v59 }
 0x412   :  { %v10173_v48 = vpop.eup %9246 }
 0x413   :  { %v1342_v62 = vmul.f32 1.442695, %v1318_v38  ;;  %v1367_v25 = vsel %vm1261_vm3, %v10173_v48, 0.0 }
 0x414   :  { %v1303_v3 = vpop.xlane.xlu1 %1302  ;;  %1368 = vadd.xlane.f32.xlu0 %v1367_v25 }
 0x415   :  { %9252 = vpow2.f32 %v1342_v62  ;;  %v1323_v7 = vsub.f32 %v10107_v49, %v1303_v3  ;;  %v1300_v45 = vpop.xlane.xlu0 %1299 }
 0x416   :  { %v10178_v27 = vpop.eup %9248  ;;  %v1322_v19 = vsub.f32 %v10109_v52, %v1300_v45 }
 0x417   :  { %v1352_v26 = vmul.f32 1.442695, %v1323_v7  ;;  %v1364_v55 = vsel %vm1261_vm3, %v10178_v27, 0.0 }
 0x418   :  { %v1350_v42 = vmul.f32 1.442695, %v1322_v19  ;;  %v1279_v37 = vpop.xlane.xlu1 %1278  ;;  %1365 = vadd.xlane.f32.xlu0 %v1364_v55 }
 0x419   :  { %9254 = vpow2.f32 %v1352_v26  ;;  %v1315_v47 = vsub.f32 %v10111_v20, %v1279_v37  ;;  %v1276_v23 = vpop.xlane.xlu0 %1275 }
 0x41a   :  { %9256 = vpow2.f32 %v1350_v42  ;;  %v1314_v4 = vsub.f32 %v10115_v56, %v1276_v23 }
 0x41b   :  { %v10185_v49 = vpop.eup %9250  ;;  %v1336_v17 = vmul.f32 1.442695, %v1315_v47 }
 0x41c   :  { %v1334_v59 = vmul.f32 1.442695, %v1314_v4  ;;  %v1385_v52 = vsel %vm1261_vm3, %v10185_v49, 0.0  ;;  %v1297_v47 = vpop.xlane.xlu1 %1296 }
 0x41d   :  { %9258 = vpow2.f32 %v1336_v17  ;;  %1386 = vadd.xlane.f32.xlu1 %v1385_v52  ;;  %v1285_v55 = vpop.xlane.xlu0 %1284 }
 0x41e   :  { %9260 = vpow2.f32 %v1334_v59  ;;  %v1317_v37 = vsub.f32 %v10121_v61, %v1285_v55  ;;  %v1321_v59 = vsub.f32 %v10123_v21, %v1297_v47 }
 0x41f   :  { %v10189_v38 = vpop.eup %9252 }
 0x420   :  { %v1382_v62 = vsel %vm1261_vm3, %v10189_v38, 0.0  ;;  %v1340_v23 = vmul.f32 1.442695, %v1317_v37 }
 0x421   :  { %1383 = vadd.xlane.f32.xlu1 %v1382_v62  ;;  %v1282_v42 = vpop.xlane.xlu0 %1281 }
 0x422   :  { %v1316_v4 = vsub.f32 %v10129_v6, %v1282_v42  ;;  %9262 = vpow2.f32 %v1340_v23 }
 0x423   :  { %v10193_v20 = vpop.eup %9254 }
 0x424   :  { %v10195_v25 = vpop.eup %9256  ;;  %v1397_v56 = vsel %vm1261_vm3, %v10193_v20, 0.0  ;;  %v1338_v52 = vmul.f32 1.442695, %v1316_v4 }
 0x425   :  { %1398 = vadd.xlane.f32.xlu1 %v1397_v56  ;;  %v1394_v3 = vsel %vm1261_vm3, %v10195_v25, 0.0  ;;  %v1294_v17 = vpop.xlane.xlu0 %1293  ;;  %v1309_v56 = vpop.xlane.xlu1 %1308 }
 0x426   :  { %1395 = vadd.xlane.f32.xlu0 %v1394_v3  ;;  %v1320_v62 = vsub.f32 %v10133_v12, %v1294_v17  ;;  %v1348_v3 = vmul.f32 1.442695, %v1321_v59  ;;  %9264 = vpow2.f32 %v1338_v52 }
 0x427   :  { %v10201_v7 = vpop.eup %9258 }
 0x428   :  { %v1373_v45 = vsel %vm1261_vm3, %v10201_v7, 0.0  ;;  %v10205_v19 = vpop.eup %9260  ;;  %9266 = vpow2.f32 %v1348_v3 }
 0x429   :  { %1374 = vadd.xlane.f32.xlu1 %v1373_v45  ;;  %v1370_v26 = vsel %vm1261_vm3, %v10205_v19, 0.0  ;;  %v1325_v45 = vsub.f32 %v10135_v14, %v1309_v56  ;;  %v10271_v52 = vpop.permute.xlu1 %2158 }
 0x42b   :  { %v1356_v61 = vmul.f32 1.442695, %v1325_v45 }
 0x42c   :  { %v10219_v6 = vpop.eup %9262 }
 0x42d   :  { %1371 = vadd.xlane.f32.xlu1 %v1370_v26  ;;  %v1346_v26 = vmul.f32 1.442695, %v1320_v62  ;;  %v1379_v42 = vsel %vm1261_vm3, %v10219_v6, 0.0 }
 0x42f   :  { %9268 = vpow2.f32 %v1346_v26 }
 0x430   :  { %9270 = vpow2.f32 %v1356_v61  ;;  %v10223_v12 = vpop.eup %9264 }
 0x431   :  { %v1376_v14 = vsel %vm1261_vm3, %v10223_v12, 0.0 }
 0x432   :  { %v10225_v37 = vpop.eup %9266 }
 0x439   :  { %v10229_v47 = vpop.eup %9268 }
 0x43a   :  { %v10235_v23 = vpop.eup %9270 }
 0x43b   :  { %v1403_v4 = vsel %vm1261_vm3, %v10235_v23, 0.0 }
 0x43c   :  { %2249 = vrot.lane.b32.xlu0 %v9973_v35, %s9525_s15  ;;  %v1306_v35 = vpop.xlane.xlu0 %1305 }
 0x43d   :  { %v1324_v55 = vsub.f32 %v10141_v34, %v1306_v35  ;;  %v1391_v35 = vsel %vm1261_vm3, %v10225_v37, 0.0  ;;  %v1388_v34 = vsel %vm1261_vm3, %v10229_v47, 0.0 }
 0x43e   :  { %8986 = vrot.lane.b32.xlu1 %v9898_v16, %s9524_s10 }
 0x43f   :  { %v1354_v21 = vmul.f32 1.442695, %v1324_v55  ;;  %v8949_v55 = vunpack.i.h.bf16 %v10050_v41 }
 0x440   :  { %v10275_v62 = vpop.permute.xlu0 %2160 }
 0x441   :  { %9272 = vpow2.f32 %v1354_v21  ;;  %v8948_v21 = vunpack.i.l.bf16 %v10050_v41 }
 0x443   :  { %v8606_v41 = vpack.c.bf16 %v8949_v55, %v8948_v21 }
 0x44b   :  { %v10239_v17 = vpop.eup %9272 }
 0x44c   :  { %v1400_v59 = vsel %vm1261_vm3, %v10239_v17, 0.0 }
 0x45b   :  { %1380 = vadd.xlane.f32.xlu0 %v1379_v42 }
 0x45f   :  { %1377 = vadd.xlane.f32.xlu0 %v1376_v14 }
 0x462   :  { %1392 = vadd.xlane.f32.xlu1 %v1391_v35 }
 0x463   :  { %1389 = vadd.xlane.f32.xlu0 %v1388_v34 }
 0x467   :  { %1404 = vadd.xlane.f32.xlu0 %v1403_v4 }
 0x46b   :  { %1401 = vadd.xlane.f32.xlu0 %v1400_v59  ;;  %v8954_v59 = vunpack.i.h.bf16 %v10056_v29 }
 0x473   :  { %2251 = vrot.lane.b32.xlu1 %v9984_v63, %s9525_s15 }
 0x477   :  { %2340 = vrot.lane.b32.xlu1 %v9987_v2, %s9525_s15 }
 0x47b   :  { %8996 = vrot.lane.b32.xlu1 %v9919_v40, %s9524_s10 }
 0x47f   :  { %2433 = vrot.lane.b32.xlu1 %v10030_v39, %s9525_s15 }
 0x481   :  { %8991 = vrot.lane.b32.xlu0 %v9905_v0, %s9524_s10 }
 0x483   :  { %9001 = vrot.lane.b32.xlu1 %v9929_v46, %s9524_s10 }
 0x485   :  { %2342 = vrot.lane.b32.xlu0 %v10002_v13, %s9525_s15 }
 0x487   :  { %2613 = vrot.lane.b32.xlu1 %v10038_v50, %s9525_s15 }
 0x489   :  { %2431 = vrot.lane.b32.xlu0 %v10012_v22, %s9525_s15 }
 0x48b   :  { %2615 = vrot.lane.b32.xlu1 %v10054_v28, %s9525_s15 }
 0x48d   :  { %2522 = vrot.lane.b32.xlu0 %v9907_v32, %s9525_s15 }
 0x48f   :  { %2706 = vrot.lane.b32.xlu1 %v10033_v43, %s9525_s15 }
 0x491   :  { %2524 = vrot.lane.b32.xlu0 %v10005_v18, %s9525_s15 }
 0x493   :  { %2797 = vrot.lane.b32.xlu1 %v10070_v33, %s9525_s15 }
 0x495   :  { %9006 = vrot.lane.b32.xlu0 %v9939_v36, %s9524_s10 }
 0x497   :  { %9011 = vrot.lane.b32.xlu1 %v9864_v5, %s9526_s16 }
 0x499   :  { %2704 = vrot.lane.b32.xlu0 %v10019_v9, %s9525_s15  ;;  %v1363_v56 = vpop.xlane.xlu1 %1362 }
 0x49a   :  { %9274 = vrcp.f32 %v1363_v56  ;;  %v1360_v3 = vpop.xlane.xlu0 %1359  ;;  %v8953_v56 = vunpack.i.l.bf16 %v10056_v29 }
 0x49b   :  { %9021 = vrot.lane.b32.xlu1 %v9888_v15, %s9526_s16  ;;  %9276 = vrcp.f32 %v1360_v3 }
 0x49d   :  { %2795 = vrot.lane.b32.xlu0 %v10059_v53, %s9525_s15 }
 0x49f   :  { %9026 = vrot.lane.b32.xlu1 %v9898_v16, %s9526_s16 }
 0x4a1   :  { %9016 = vrot.lane.b32.xlu0 %v9878_v8, %s9526_s16  ;;  %v1369_v45 = vpop.xlane.xlu0 %1368 }
 0x4a2   :  { %9278 = vrcp.f32 %v1369_v45 }
 0x4a3   :  { %9031 = vrot.lane.b32.xlu1 %v9905_v0, %s9526_s16 }
 0x4a4   :  { %v9275_v26 = vpop.eup %9274 }
 0x4a5   :  { %v9277_v61 = vpop.eup %9276  ;;  %9041 = vrot.lane.b32.xlu0 %v9929_v46, %s9526_s16  ;;  %v1366_v42 = vpop.xlane.xlu0 %1365  ;;  %v1409_v35 = vmul.f32 %v9275_v26, %v10163_v31 }
 0x4a6   :  { %9280 = vrcp.f32 %v1366_v42  ;;  %v10296_v14 = vmul.f32 %v9277_v61, %v10165_v1  ;;  %v8959_v42 = vunpack.i.h.bf16 %v10151_v60 }
 0x4a7   :  { %9036 = vrot.lane.b32.xlu1 %v9919_v40, %s9526_s16 }
 0x4a8   :  { %8114 = vmatprep.mubr.msk.f32.mxu0 %vm1261_vm3, %v10296_v14 }
 0x4a9   :  { %9051 = vrot.lane.b32.xlu0 %v9864_v5, %s9527_s17  ;;  %8115 = vmatmul.mubr.msk.f32.vlgmr.msra.gmra.mrb[12].mxu0 %vm1261_vm3, %v1409_v35  ;;  %v8958_v35 = vunpack.i.l.bf16 %v10151_v60 }
 0x4aa   :  { %v1387_v34 = vpop.xlane.xlu1 %1386  ;;  %8601 = vmatpush3.bf16.msra.mxu0 %v10046_v54  ;;  %v10318_v54 = vpack.c.bf16 %v8954_v59, %v8953_v56  ;;  %v8964_v59 = vunpack.i.h.bf16 %v10153_v24  ;;  %v8963_v56 = vunpack.i.l.bf16 %v10153_v24 }
 0x4ab   :  { %9046 = vrot.lane.b32.xlu1 %v9939_v36, %s9526_s16  ;;  %8607 = vmatprep.subr.bf16.mxu0 %v8606_v41  ;;  %v8614_v60 = vpack.c.bf16 %v8959_v42, %v8958_v35  ;;  %v8983_v42 = vunpack.i.l.bf16 %v10155_v10 }
 0x4ac   :  { %v9279_v4 = vpop.eup %9278 }
 0x4ad   :  { %v1413_v26 = vmul.f32 %v9279_v4, %v10173_v48 }
 0x4ae   :  { %v1384_v1 = vpop.xlane.xlu1 %1383 }
 0x4af   :  { %9282 = vrcp.f32 %v1384_v1 }
 0x4b0   :  { %v9281_v31 = vpop.eup %9280 }
 0x4b1   :  { %v10312_v3 = vmul.f32 %v9281_v31, %v10178_v27 }
 0x4b2   :  { %v1399_v45 = vpop.xlane.xlu1 %1398 }
 0x4b3   :  { %11793 = vst [vmem:[#allocation9_spill] sm:$0xff] %v10312_v3  ;;  %8121 = vmatprep.mubr.msk.f32.mxu1 %vm1261_vm3, %v10312_v3  ;;  %v1396_v27 = vpop.xlane.xlu0 %1395 }
 0x4b4   :  { %8122 = vmatmul.mubr.msk.f32.vlgmr.msra.gmra.mrb[20].mxu1 %vm1261_vm3, %v1413_v26 }
 0x4b5   :  { %8605 = vmatpush3.bf16.msra.mxu1 %v10074_v44 }
 0x4b6   :  { %v1375_v61 = vpop.xlane.xlu1 %1374  ;;  %8611 = vmatprep.subr.bf16.mxu1 %v10318_v54 }
 0x4b7   :  { %9284 = vrcp.f32 %v1375_v61 }
 0x4b9   :  { %v9283_v48 = vpop.eup %9282 }
 0x4ba   :  { %v1372_v29 = vpop.xlane.xlu1 %1371 }
 0x4bb   :  { %9286 = vrcp.f32 %v1372_v29 }
 0x4bc   :  { %9288 = vrcp.f32 %v1387_v34  ;;  %v10331_v34 = vmul.f32 %v9283_v48, %v10189_v38  ;;  %v8622_v38 = vpack.c.bf16 %v8964_v59, %v8963_v56 }
 0x4bd   :  { %9290 = vrcp.f32 %v1396_v27 }
 0x4be   :  { %9292 = vrcp.f32 %v1399_v45  ;;  %11795 = vst [vmem:[#allocation11_spill] sm:$0xff] %v10331_v34 }
 0x4c1   :  { %v9285_v55 = vpop.eup %9284 }
 0x4c2   :  { %v1417_v4 = vmul.f32 %v9285_v55, %v10201_v7 }
 0x4c5   :  { %v9287_v21 = vpop.eup %9286 }
 0x4c6   :  { %v10325_v44 = vmul.f32 %v9287_v21, %v10205_v19  ;;  %v9289_v1 = vpop.eup %9288 }
 0x4c7   :  { %v9291_v31 = vpop.eup %9290  ;;  %v1425_v7 = vmul.f32 %v9289_v1, %v10185_v49  ;;  %v8974_v49 = vunpack.i.h.bf16 %v10157_v51 }
 0x4c8   :  { %11794 = vst [vmem:[#allocation10_spill] sm:$0xff] %v10325_v44  ;;  %8128 = vmatprep.mubr.msk.f32.mxu0 %vm1261_vm3, %v10325_v44  ;;  %v9293_v19 = vpop.eup %9292  ;;  %v10340_v45 = vmul.f32 %v9291_v31, %v10195_v25 }
 0x4c9   :  { %8129 = vmatmul.mubr.msk.f32.vlgmr.msra.gmra.mrb[14].mxu0 %vm1261_vm3, %v1417_v4  ;;  %v1433_v24 = vmul.f32 %v9293_v19, %v10193_v20  ;;  %v10361_v20 = vpop.permute.xlu0 %2249 }
 0x4ca   :  { %8609 = vmatpush3.bf16.msra.mxu0 %v8606_v41  ;;  %8142 = vmatprep.mubr.msk.f32.mxu0 %vm1261_vm3, %v10331_v34  ;;  %11796 = vst [vmem:[#allocation12_spill] sm:$0xff] %v10340_v45  ;;  %v8973_v41 = vunpack.i.l.bf16 %v10157_v51  ;;  %v8987_v51 = vpop.permute.xlu1 %8986 }
 0x4cb   :  { %8615 = vmatprep.subr.bf16.mxu0 %v8614_v60 }
 0x4cc   :  { %v8634_v25 = vpack.c.bf16 %v8974_v49, %v8973_v41 }
 0x4cd   :  { %8143 = vmatmul.mubr.msk.f32.vlgmr.msra.gmra.mrb[16].mxu0 %vm1261_vm3, %v1425_v7 }
 0x4ce   :  { %8617 = vmatpush3.bf16.msra.mxu0 %v8614_v60  ;;  %8156 = vmatprep.mubr.msk.f32.mxu0 %vm1261_vm3, %v10340_v45  ;;  %v8969_v60 = vunpack.i.h.bf16 %v10067_v57 }
 0x4cf   :  { %8624 = vmatprep.subr.msk.bf16.mxu0 %vm9959_vm2, %v8622_v38 }
 0x4d1   :  { %8157 = vmatmul.mubr.msk.f32.vlgmr.msra.gmra.mrb[18].mxu0 %vm1261_vm3, %v1433_v24 }
 0x4d2   :  { %8170 = vmatprep.mubr.msk.f32.mxu0 %vm538_vm1, %v10271_v52 }
 0x4d7   :  { %8627 = vmatpush3.bf16.xpose.msk.msra.mxu0 %vm9959_vm2, %v8622_v38 }
 0x4d8   :  { %8636 = vmatprep.subr.msk.bf16.mxu0 %vm9959_vm2, %v8634_v25 }
 0x4de   :  { %8171 = vmatmul.mubr.msk.f32.vlgmr.msra.gmra.mrb[20].mxu0 %vm538_vm1, %v10275_v62  ;;  %v8984_v62 = vunpack.i.h.bf16 %v10155_v10  ;;  %v8968_v10 = vunpack.i.l.bf16 %v10067_v57 }
 0x4df   :  { %8639 = vmatpush3.bf16.xpose.msk.msra.mxu0 %vm9959_vm2, %v8634_v25 }
 0x4e0   :  { %v8618_v19 = vpack.c.bf16 %v8984_v62, %v8983_v42  ;;  %v8628_v41 = vpack.c.bf16 %v8969_v60, %v8968_v10 }
 0x4e8   :  { %v1381_v26 = vpop.xlane.xlu0 %1380 }
 0x4e9   :  { %9294 = vrcp.f32 %v1381_v26 }
 0x4ec   :  { %v1378_v61 = vpop.xlane.xlu0 %1377 }
 0x4ed   :  { %9296 = vrcp.f32 %v1378_v61 }
 0x4ef   :  { %v1393_v52 = vpop.xlane.xlu1 %1392 }
 0x4f0   :  { %9298 = vrcp.f32 %v1393_v52  ;;  %v1390_v29 = vpop.xlane.xlu0 %1389  ;;  %v8988_v52 = vunpack.i.l.bf16 %v8987_v51 }
 0x4f1   :  { %9300 = vrcp.f32 %v1390_v29 }
 0x4f3   :  { %v10363_v27 = vpop.permute.xlu1 %2251  ;;  %v9295_v55 = vpop.eup %9294 }
 0x4f4   :  { %v1405_v48 = vpop.xlane.xlu0 %1404  ;;  %v1421_v31 = vmul.f32 %v9295_v55, %v10219_v6 }
 0x4f5   :  { %9302 = vrcp.f32 %v1405_v48 }
 0x4f7   :  { %v9297_v21 = vpop.eup %9296  ;;  %v2341_v35 = vpop.permute.xlu1 %2340 }
 0x4f8   :  { %8184 = vmatprep.mubr.msk.f32.mxu0 %vm538_vm1, %v2341_v35  ;;  %v1402_v4 = vpop.xlane.xlu0 %1401  ;;  %v10369_v1 = vmul.f32 %v9297_v21, %v10223_v12 }
 0x4f9   :  { %9304 = vrcp.f32 %v1402_v4 }
 0x4fa   :  { %11797 = vst [vmem:[#allocation13_spill] sm:$0xff] %v10369_v1  ;;  %v9299_v59 = vpop.eup %9298  ;;  %8135 = vmatprep.mubr.msk.f32.mxu1 %vm1261_vm3, %v10369_v1 }
 0x4fb   :  { %v9301_v56 = vpop.eup %9300  ;;  %v8997_v7 = vpop.permute.xlu1 %8996  ;;  %8136 = vmatmul.mubr.msk.f32.vlgmr.msra.gmra.mrb[22].mxu1 %vm1261_vm3, %v1421_v31  ;;  %v1429_v49 = vmul.f32 %v9299_v59, %v10225_v37 }
 0x4fc   :  { %8613 = vmatpush3.bf16.msra.mxu1 %v10318_v54  ;;  %v8992_v12 = vpop.permute.xlu0 %8991  ;;  %v10379_v38 = vmul.f32 %v9301_v56, %v10229_v47  ;;  %v8989_v54 = vunpack.i.h.bf16 %v8987_v51  ;;  %v8998_v31 = vunpack.i.l.bf16 %v8997_v7 }
 0x4fd   :  { %8619 = vmatprep.subr.bf16.mxu1 %v8618_v19  ;;  %v8994_v6 = vunpack.i.h.bf16 %v8992_v12  ;;  %v8993_v24 = vunpack.i.l.bf16 %v8992_v12 }
 0x4fe   :  { %11798 = vst [vmem:[#allocation14_spill] sm:$0xff] %v10379_v38  ;;  %8149 = vmatprep.mubr.msk.f32.mxu1 %vm1261_vm3, %v10379_v38  ;;  %v8640_v4 = vpack.c.bf16 %v8989_v54, %v8988_v52 }
 0x4ff   :  { %v8646_v57 = vpack.c.bf16 %v8994_v6, %v8993_v24  ;;  %v2434_v25 = vpop.permute.xlu1 %2433  ;;  %8150 = vmatmul.mubr.msk.f32.vlgmr.msra.gmra.mrb[24].mxu1 %vm1261_vm3, %v1429_v49  ;;  %v9303_v47 = vpop.eup %9302 }
 0x500   :  { %8621 = vmatpush3.bf16.msra.mxu1 %v8618_v19  ;;  %v2343_v26 = vpop.permute.xlu0 %2342  ;;  %v1437_v62 = vmul.f32 %v9303_v47, %v10235_v23 }
 0x501   :  { %8630 = vmatprep.subr.msk.bf16.mxu1 %vm9959_vm2, %v8628_v41  ;;  %8185 = vmatmul.mubr.msk.f32.vlgmr.msra.gmra.mrb[22].mxu0 %vm538_vm1, %v2343_v26 }
 0x502   :  { %8648 = vmatprep.subr.msk.bf16.mxu0 %vm9959_vm2, %v8646_v57 }
 0x503   :  { %v9305_v37 = vpop.eup %9304  ;;  %8651 = vmatpush3.bf16.xpose.msk.msra.mxu0 %vm9959_vm2, %v8646_v57  ;;  %v9002_v61 = vpop.permute.xlu1 %9001 }
 0x504   :  { %v9004_v29 = vunpack.i.h.bf16 %v9002_v61  ;;  %v9003_v48 = vunpack.i.l.bf16 %v9002_v61  ;;  %v2432_v55 = vpop.permute.xlu0 %2431  ;;  %v10393_v21 = vmul.f32 %v9305_v37, %v10239_v17  ;;  %v8999_v17 = vunpack.i.h.bf16 %v8997_v7 }
 0x506   :  { %11799 = vst [vmem:[#allocation15_spill] sm:$0xff] %v10393_v21  ;;  %v8658_v42 = vpack.c.bf16 %v9004_v29, %v9003_v48  ;;  %8163 = vmatprep.mubr.msk.f32.mxu1 %vm1261_vm3, %v10393_v21  ;;  %v8652_v56 = vpack.c.bf16 %v8999_v17, %v8998_v31 }
 0x507   :  { %v2614_v35 = vpop.permute.xlu1 %2613  ;;  %8164 = vmatmul.mubr.msk.f32.vlgmr.msra.gmra.mrb[26].mxu1 %vm1261_vm3, %v1437_v62 }
 0x508   :  { %8177 = vmatprep.mubr.msk.f32.mxu1 %vm538_vm1, %v10361_v20  ;;  %v2523_v51 = vpop.permute.xlu0 %2522  ;;  %8660 = vmatprep.subr.msk.bf16.mxu0 %vm9959_vm2, %v8658_v42 }
 0x509   :  { %8633 = vmatpush3.bf16.xpose.msk.msra.mxu1 %vm9959_vm2, %v8628_v41  ;;  %8198 = vmatprep.mubr.msk.f32.mxu0 %vm538_vm1, %v2523_v51 }
 0x50a   :  { %8642 = vmatprep.subr.msk.bf16.mxu1 %vm9959_vm2, %v8640_v4 }
 0x50b   :  { %v2616_v23 = vpop.permute.xlu1 %2615 }
 0x50c   :  { %v2525_v59 = vpop.permute.xlu0 %2524 }
 0x50d   :  { %8199 = vmatmul.mubr.msk.f32.vlgmr.msra.gmra.mrb[24].mxu0 %vm538_vm1, %v2525_v59 }
 0x50e   :  { %8663 = vmatpush3.bf16.xpose.msk.msra.mxu0 %vm9959_vm2, %v8658_v42 }
 0x50f   :  { %v2707_v20 = vpop.permute.xlu1 %2706 }
 0x510   :  { %8178 = vmatmul.mubr.msk.f32.vlgmr.msra.gmra.mrb[28].mxu1 %vm538_vm1, %v10363_v27  ;;  %v9007_v60 = vpop.permute.xlu0 %9006 }
 0x511   :  { %8645 = vmatpush3.bf16.xpose.msk.msra.mxu1 %vm9959_vm2, %v8640_v4  ;;  %8191 = vmatprep.mubr.msk.f32.mxu1 %vm538_vm1, %v2432_v55  ;;  %v9009_v7 = vunpack.i.h.bf16 %v9007_v60  ;;  %v9008_v19 = vunpack.i.l.bf16 %v9007_v60 }
 0x512   :  { %8654 = vmatprep.subr.msk.bf16.mxu1 %vm9959_vm2, %v8652_v56 }
 0x513   :  { %v2798_v10 = vpop.permute.xlu1 %2797  ;;  %v8664_v24 = vpack.c.bf16 %v9009_v7, %v9008_v19  ;;  %v10455_v7 = vld [vmem:[%s11768_s1 + $0x10] sm:$0xff] }
 0x514   :  { %v2705_v12 = vpop.permute.xlu0 %2704 }
 0x515   :  { %8212 = vmatprep.mubr.msk.f32.mxu0 %vm538_vm1, %v2705_v12 }
 0x516   :  { %8213 = vmatmul.mubr.msk.f32.vlgmr.msra.gmra.mrb[26].mxu0 %vm538_vm1, %v2707_v20 }
 0x517   :  { %v9012_v6 = vpop.permute.xlu1 %9011 }
 0x518   :  { %v9014_v27 = vunpack.i.h.bf16 %v9012_v6  ;;  %v9013_v49 = vunpack.i.l.bf16 %v9012_v6  ;;  %8192 = vmatmul.mubr.msk.f32.vlgmr.msra.gmra.mrb[30].mxu1 %vm538_vm1, %v2434_v25  ;;  %v2796_v41 = vpop.permute.xlu0 %2795 }
 0x519   :  { %8657 = vmatpush3.bf16.xpose.msk.msra.mxu1 %vm9959_vm2, %v8652_v56  ;;  %8205 = vmatprep.mubr.msk.f32.mxu1 %vm538_vm1, %v2614_v35 }
 0x51a   :  { %8666 = vmatprep.subr.msk.bf16.mxu1 %vm9959_vm2, %v8664_v24  ;;  %v8670_v57 = vpack.c.bf16 %v9014_v27, %v9013_v49 }
 0x51b   :  { %v9022_v26 = vpop.permute.xlu1 %9021 }
 0x51c   :  { %v9024_v47 = vunpack.i.h.bf16 %v9022_v26  ;;  %v9023_v37 = vunpack.i.l.bf16 %v9022_v26  ;;  %v9017_v54 = vpop.permute.xlu0 %9016  ;;  %8671 = vmatprep.subr.bf16.mxu0 %v8670_v57 }
 0x51d   :  { %v9019_v61 = vunpack.i.h.bf16 %v9017_v54  ;;  %v9018_v52 = vunpack.i.l.bf16 %v9017_v54  ;;  %8673 = vmatpush3.bf16.msra.mxu0 %v8670_v57 }
 0x51e   :  { %v10426_v29 = vpack.c.bf16 %v9024_v47, %v9023_v37 }
 0x51f   :  { %v8674_v25 = vpack.c.bf16 %v9019_v61, %v9018_v52  ;;  %v9027_v48 = vpop.permute.xlu1 %9026 }
 0x520   :  { %8206 = vmatmul.mubr.msk.f32.vlgmr.msra.gmra.mrb[32].mxu1 %vm538_vm1, %v2616_v23  ;;  %8679 = vmatprep.subr.bf16.mxu0 %v10426_v29  ;;  %v9029_v55 = vunpack.i.h.bf16 %v9027_v48  ;;  %v9028_v62 = vunpack.i.l.bf16 %v9027_v48 }
 0x521   :  { %8219 = vmatprep.mubr.msk.f32.mxu1 %vm538_vm1, %v2796_v41  ;;  %8669 = vmatpush3.bf16.xpose.msk.msra.mxu1 %vm9959_vm2, %v8664_v24 }
 0x522   :  { %8675 = vmatprep.subr.bf16.mxu1 %v8674_v25  ;;  %v10434_v42 = vpack.c.bf16 %v9029_v55, %v9028_v62 }
 0x528   :  { %8220 = vmatmul.mubr.msk.f32.vlgmr.msra.gmra.mrb[34].mxu1 %vm538_vm1, %v2798_v10  ;;  %v10450_v10 = vld [vmem:[%s11768_s1 + $0x18] sm:$0xff] }
 0x529   :  { %8677 = vmatpush3.bf16.msra.mxu1 %v8674_v25 }
 0x52a   :  { %8683 = vmatprep.subr.bf16.mxu1 %v10434_v42 }
 0x57c   :  { %v8116_v35 = vpop.f32.mrb[12].mxu0 }
 0x57d   :  { %2143 = vst.msk [vmem:[#allocation2 + $0x8] sm:$0xff] %vm538_vm1, %v8116_v35  ;;  %v1524_v4 = vpop.f32.mrb[13].mxu0 }
 0x57e   :  { %2142 = vst.msk [vmem:[#allocation2] sm:$0xff] %vm538_vm1, %v1524_v4 }
 0x587   :  { %v8123_v51 = vpop.f32.mrb[20].mxu1 }
 0x588   :  { %2145 = vst.msk [vmem:[#allocation2 + $0x18] sm:$0xff] %vm538_vm1, %v8123_v51  ;;  %v1611_v23 = vpop.f32.mrb[21].mxu1 }
 0x589   :  { %2144 = vst.msk [vmem:[#allocation2 + $0x10] sm:$0xff] %vm538_vm1, %v1611_v23 }
 0x59c   :  { %v8130_v17 = vpop.f32.mrb[14].mxu0 }
 0x59d   :  { %2147 = vst.msk [vmem:[#allocation2 + $0x28] sm:$0xff] %vm538_vm1, %v8130_v17  ;;  %v1698_v31 = vpop.f32.mrb[15].mxu0 }
 0x59e   :  { %2146 = vst.msk [vmem:[#allocation2 + $0x20] sm:$0xff] %vm538_vm1, %v1698_v31 }
 0x5a0   :  { %v8144_v59 = vpop.f32.mrb[16].mxu0 }
 0x5a1   :  { %2151 = vst.msk [vmem:[#allocation2 + $0x48] sm:$0xff] %vm538_vm1, %v8144_v59  ;;  %v1872_v20 = vpop.f32.mrb[17].mxu0 }
 0x5a2   :  { %2150 = vst.msk [vmem:[#allocation2 + $0x40] sm:$0xff] %vm538_vm1, %v1872_v20 }
 0x5a4   :  { %v8158_v56 = vpop.f32.mrb[18].mxu0 }
 0x5a5   :  { %2155 = vst.msk [vmem:[#allocation2 + $0x68] sm:$0xff] %vm538_vm1, %v8158_v56  ;;  %v2046_v60 = vpop.f32.mrb[19].mxu0 }
 0x5a6   :  { %2154 = vst.msk [vmem:[#allocation2 + $0x60] sm:$0xff] %vm538_vm1, %v2046_v60 }
 0x5b1   :  { %v8172_v19 = vpop.f32.mrb[20].mxu0 }
 0x5b2   :  { %v10458_v12 = vadd.f32 %v8172_v19, %v10450_v10  ;;  %v2240_v6 = vpop.f32.mrb[21].mxu0 }
 0x5b3   :  { %v10461_v24 = vadd.f32 %v2240_v6, %v10455_v7 }
 0x5b4   :  { %v2889_v27 = vsel %vm1261_vm3, %v10458_v12, -inf }
 0x5b5   :  { %2890 = vmax.xlane.f32.xlu1 %v2889_v27  ;;  %v2886_v49 = vsel %vm1261_vm3, %v10461_v24, -inf }
 0x5b6   :  { %2887 = vmax.xlane.f32.xlu0 %v2886_v49 }
 0x5ce   :  { %v8137_v41 = vpop.f32.mrb[22].mxu1 }
 0x5cf   :  { %2149 = vst.msk [vmem:[#allocation2 + $0x38] sm:$0xff] %vm538_vm1, %v8137_v41  ;;  %v1785_v57 = vpop.f32.mrb[23].mxu1 }
 0x5d0   :  { %2148 = vst.msk [vmem:[#allocation2 + $0x30] sm:$0xff] %vm538_vm1, %v1785_v57 }
 0x5d2   :  { %v8151_v26 = vpop.f32.mrb[24].mxu1 }
 0x5d3   :  { %2153 = vst.msk [vmem:[#allocation2 + $0x58] sm:$0xff] %vm538_vm1, %v8151_v26  ;;  %v1959_v47 = vpop.f32.mrb[25].mxu1 }
 0x5d4   :  { %2152 = vst.msk [vmem:[#allocation2 + $0x50] sm:$0xff] %vm538_vm1, %v1959_v47  ;;  %v8186_v37 = vpop.f32.mrb[22].mxu0 }
 0x5d5   :  { %v10472_v54 = vadd.f32 %v8186_v37, %v10450_v10  ;;  %v2422_v61 = vpop.f32.mrb[23].mxu0 }
 0x5d6   :  { %v10475_v52 = vadd.f32 %v2422_v61, %v10455_v7 }
 0x5d7   :  { %v2901_v25 = vsel %vm1261_vm3, %v10472_v54, -inf }
 0x5d8   :  { %2902 = vmax.xlane.f32.xlu1 %v2901_v25  ;;  %v2898_v48 = vsel %vm1261_vm3, %v10475_v52, -inf }
 0x5d9   :  { %2899 = vmax.xlane.f32.xlu0 %v2898_v48 }
 0x5da   :  { %v8165_v55 = vpop.f32.mrb[26].mxu1 }
 0x5db   :  { %2157 = vst.msk [vmem:[#allocation2 + $0x78] sm:$0xff] %vm538_vm1, %v8165_v55  ;;  %v2133_v62 = vpop.f32.mrb[27].mxu1 }
 0x5dc   :  { %2156 = vst.msk [vmem:[#allocation2 + $0x70] sm:$0xff] %vm538_vm1, %v2133_v62 }
 0x5e0   :  { %v8200_v35 = vpop.f32.mrb[24].mxu0 }
 0x5e1   :  { %v10484_v4 = vadd.f32 %v8200_v35, %v10450_v10  ;;  %v2604_v51 = vpop.f32.mrb[25].mxu0 }
 0x5e2   :  { %v10487_v23 = vadd.f32 %v2604_v51, %v10455_v7 }
 0x5e3   :  { %v8179_v17 = vpop.f32.mrb[28].mxu1  ;;  %v2913_v31 = vsel %vm1261_vm3, %v10484_v4, -inf }
 0x5e4   :  { %v10492_v59 = vadd.f32 %v8179_v17, %v10450_v10  ;;  %v2331_v20 = vpop.f32.mrb[29].mxu1  ;;  %2914 = vmax.xlane.f32.xlu1 %v2913_v31  ;;  %v2910_v19 = vsel %vm1261_vm3, %v10487_v23, -inf }
 0x5e5   :  { %v10495_v56 = vadd.f32 %v2331_v20, %v10455_v7 }
 0x5e6   :  { %v2895_v60 = vsel %vm1261_vm3, %v10492_v59, -inf }
 0x5e7   :  { %2896 = vmax.xlane.f32.xlu0 %v2895_v60  ;;  %v2892_v49 = vsel %vm1261_vm3, %v10495_v56, -inf }
 0x5e8   :  { %2911 = vmax.xlane.f32.xlu1 %v2910_v19 }
 0x5e9   :  { %v8214_v6 = vpop.f32.mrb[26].mxu0 }
 0x5ea   :  { %v10502_v27 = vadd.f32 %v8214_v6, %v10450_v10  ;;  %v2786_v41 = vpop.f32.mrb[27].mxu0 }
 0x5eb   :  { %2893 = vmax.xlane.f32.xlu0 %v2892_v49  ;;  %v8193_v57 = vpop.f32.mrb[30].mxu1  ;;  %v10517_v48 = vadd.f32 %v2786_v41, %v10455_v7 }
 0x5ec   :  { %v10507_v26 = vadd.f32 %v8193_v57, %v10450_v10  ;;  %v2513_v47 = vpop.f32.mrb[31].mxu1  ;;  %v2925_v37 = vsel %vm1261_vm3, %v10502_v27, -inf }
 0x5ed   :  { %2926 = vmax.xlane.f32.xlu1 %v2925_v37  ;;  %v10512_v61 = vadd.f32 %v2513_v47, %v10455_v7  ;;  %v2922_v31 = vsel %vm1261_vm3, %v10517_v48, -inf  ;;  %v10547_v37 = vpop.permute.xlu1 %9031 }
 0x5ee   :  { %v2907_v25 = vsel %vm1261_vm3, %v10507_v26, -inf }
 0x5ef   :  { %2908 = vmax.xlane.f32.xlu0 %v2907_v25  ;;  %v2904_v55 = vsel %vm1261_vm3, %v10512_v61, -inf }
 0x5f3   :  { %v8207_v62 = vpop.f32.mrb[32].mxu1  ;;  %2905 = vmax.xlane.f32.xlu0 %v2904_v55  ;;  %v11800_v55 = vld [vmem:[#allocation8_spill] sm:$0xff] }
 0x5f4   :  { %v10522_v35 = vadd.f32 %v8207_v62, %v10450_v10  ;;  %v2695_v51 = vpop.f32.mrb[33].mxu1 }
 0x5f5   :  { %v10525_v17 = vadd.f32 %v2695_v51, %v10455_v7 }
 0x5f6   :  { %v2919_v20 = vsel %vm1261_vm3, %v10522_v35, -inf }
 0x5f7   :  { %2923 = vmax.xlane.f32.xlu0 %v2922_v31  ;;  %2920 = vmax.xlane.f32.xlu1 %v2919_v20  ;;  %v2916_v60 = vsel %vm1261_vm3, %v10525_v17, -inf }
 0x5fb   :  { %v8221_v19 = vpop.f32.mrb[34].mxu1  ;;  %2917 = vmax.xlane.f32.xlu0 %v2916_v60 }
 0x5fc   :  { %v2877_v6 = vpop.f32.mrb[35].mxu1  ;;  %v10538_v49 = vadd.f32 %v8221_v19, %v10450_v10  ;;  %v10553_v10 = vpop.permute.xlu1 %9036 }
 0x5fd   :  { %v10541_v41 = vadd.f32 %v2877_v6, %v10455_v7  ;;  %v10555_v7 = vpop.permute.xlu0 %9041 }
 0x5fe   :  { %v2931_v57 = vsel %vm1261_vm3, %v10538_v49, -inf }
 0x5ff   :  { %v2928_v47 = vsel %vm1261_vm3, %v10541_v41, -inf }
 0x600   :  { %v10559_v25 = vpop.permute.xlu1 %9046 }
 0x601   :  { %v10563_v62 = vpop.permute.xlu0 %9051 }
 0x608   :  { %9056 = vrot.lane.b32.xlu1 %v9878_v8, %s9527_s17 }
 0x611   :  { %9061 = vrot.lane.b32.xlu0 %v9888_v15, %s9527_s17 }
 0x62c   :  { %2932 = vmax.xlane.f32.xlu1 %v2931_v57 }
 0x630   :  { %2929 = vmax.xlane.f32.xlu0 %v2928_v47 }
 0x63d   :  { %3847 = vrot.lane.b32.xlu1 %v9866_v30, %s9528_s21 }
 0x641   :  { %9066 = vrot.lane.b32.xlu1 %v9898_v16, %s9527_s17 }
 0x642   :  { %v2891_v51 = vpop.xlane.xlu1 %2890 }
 0x643   :  { %v2935_v31 = vsub.f32 %v10458_v12, %v2891_v51  ;;  %v2888_v20 = vpop.xlane.xlu0 %2887 }
 0x644   :  { %v2934_v19 = vsub.f32 %v10461_v24, %v2888_v20 }
 0x645   :  { %v2952_v60 = vmul.f32 1.442695, %v2935_v31 }
 0x646   :  { %3849 = vrot.lane.b32.xlu0 %v9970_v58, %s9528_s21  ;;  %v2950_v6 = vmul.f32 1.442695, %v2934_v19 }
 0x647   :  { %9306 = vpow2.f32 %v2952_v60 }
 0x648   :  { %9308 = vpow2.f32 %v2950_v6 }
 0x64a   :  { %3938 = vrot.lane.b32.xlu0 %v11800_v55, %s9528_s21 }
 0x651   :  { %v10567_v57 = vpop.eup %9306 }
 0x652   :  { %v2985_v47 = vsel %vm1261_vm3, %v10567_v57, 0.0  ;;  %v10571_v21 = vpop.eup %9308 }
 0x653   :  { %v2982_v24 = vsel %vm1261_vm3, %v10571_v21, 0.0 }
 0x665   :  { %2986 = vadd.xlane.f32.xlu1 %v2985_v47  ;;  %v2903_v38 = vpop.xlane.xlu1 %2902 }
 0x666   :  { %v2939_v45 = vsub.f32 %v10472_v54, %v2903_v38  ;;  %v2900_v1 = vpop.xlane.xlu0 %2899 }
 0x667   :  { %v2938_v12 = vsub.f32 %v10475_v52, %v2900_v1 }
 0x668   :  { %v2960_v51 = vmul.f32 1.442695, %v2939_v45 }
 0x669   :  { %v2958_v31 = vmul.f32 1.442695, %v2938_v12  ;;  %2983 = vadd.xlane.f32.xlu0 %v2982_v24 }
 0x66a   :  { %9310 = vpow2.f32 %v2960_v51 }
 0x66b   :  { %9312 = vpow2.f32 %v2958_v31 }
 0x671   :  { %v2915_v20 = vpop.xlane.xlu1 %2914 }
 0x672   :  { %v2943_v60 = vsub.f32 %v10484_v4, %v2915_v20 }
 0x674   :  { %v10578_v19 = vpop.eup %9310  ;;  %v2968_v6 = vmul.f32 1.442695, %v2943_v60  ;;  %v2897_v47 = vpop.xlane.xlu0 %2896 }
 0x675   :  { %v2937_v38 = vsub.f32 %v10492_v59, %v2897_v47  ;;  %v2912_v54 = vpop.xlane.xlu1 %2911  ;;  %v2997_v45 = vsel %vm1261_vm3, %v10578_v19, 0.0  ;;  %v10583_v1 = vpop.eup %9312 }
 0x676   :  { %9314 = vpow2.f32 %v2968_v6  ;;  %v2942_v52 = vsub.f32 %v10487_v23, %v2912_v54  ;;  %2998 = vadd.xlane.f32.xlu1 %v2997_v45  ;;  %v2994_v31 = vsel %vm1261_vm3, %v10583_v1, 0.0 }
 0x677   :  { %v2956_v12 = vmul.f32 1.442695, %v2937_v38 }
 0x678   :  { %v2966_v51 = vmul.f32 1.442695, %v2942_v52  ;;  %v2894_v24 = vpop.xlane.xlu0 %2893 }
 0x679   :  { %9316 = vpow2.f32 %v2956_v12  ;;  %v2936_v4 = vsub.f32 %v10495_v56, %v2894_v24 }
 0x67a   :  { %9318 = vpow2.f32 %v2966_v51  ;;  %2995 = vadd.xlane.f32.xlu1 %v2994_v31  ;;  %v2927_v59 = vpop.xlane.xlu1 %2926 }
 0x67b   :  { %v2954_v20 = vmul.f32 1.442695, %v2936_v4  ;;  %v2947_v60 = vsub.f32 %v10502_v27, %v2927_v59 }
 0x67c   :  { %v2909_v47 = vpop.xlane.xlu0 %2908 }
 0x67d   :  { %9320 = vpow2.f32 %v2954_v20  ;;  %v2976_v6 = vmul.f32 1.442695, %v2947_v60  ;;  %v2941_v23 = vsub.f32 %v10507_v26, %v2909_v47 }
 0x67f   :  { %9322 = vpow2.f32 %v2976_v6  ;;  %v2964_v38 = vmul.f32 1.442695, %v2941_v23 }
 0x680   :  { %v10591_v54 = vpop.eup %9314  ;;  %v2906_v45 = vpop.xlane.xlu0 %2905 }
 0x681   :  { %9324 = vpow2.f32 %v2964_v38  ;;  %v2940_v56 = vsub.f32 %v10512_v61, %v2906_v45  ;;  %v3009_v52 = vsel %vm1261_vm3, %v10591_v54, 0.0 }
 0x682   :  { %3010 = vadd.xlane.f32.xlu1 %v3009_v52 }
 0x683   :  { %v10596_v12 = vpop.eup %9316  ;;  %v2962_v27 = vmul.f32 1.442695, %v2940_v56 }
 0x684   :  { %v10598_v51 = vpop.eup %9318  ;;  %v2924_v24 = vpop.xlane.xlu0 %2923  ;;  %v2991_v26 = vsel %vm1261_vm3, %v10596_v12, 0.0 }
 0x685   :  { %v2921_v4 = vpop.xlane.xlu1 %2920  ;;  %9326 = vpow2.f32 %v2962_v27  ;;  %v2946_v31 = vsub.f32 %v10517_v48, %v2924_v24  ;;  %2992 = vadd.xlane.f32.xlu0 %v2991_v26  ;;  %v3006_v61 = vsel %vm1261_vm3, %v10598_v51, 0.0 }
 0x686   :  { %v2945_v59 = vsub.f32 %v10522_v35, %v2921_v4  ;;  %3007 = vadd.xlane.f32.xlu1 %v3006_v61 }
 0x687   :  { %v10606_v20 = vpop.eup %9320  ;;  %v2974_v60 = vmul.f32 1.442695, %v2946_v31 }
 0x688   :  { %v2972_v47 = vmul.f32 1.442695, %v2945_v59  ;;  %v2918_v6 = vpop.xlane.xlu0 %2917  ;;  %v2988_v23 = vsel %vm1261_vm3, %v10606_v20, 0.0 }
 0x689   :  { %v10610_v38 = vpop.eup %9322  ;;  %9328 = vpow2.f32 %v2974_v60  ;;  %v2944_v48 = vsub.f32 %v10525_v17, %v2918_v6  ;;  %2989 = vadd.xlane.f32.xlu0 %v2988_v23  ;;  %v10643_v60 = vpop.permute.xlu1 %9056 }
 0x68a   :  { %9330 = vpow2.f32 %v2972_v47  ;;  %v3021_v35 = vsel %vm1261_vm3, %v10610_v38, 0.0 }
 0x68b   :  { %v10615_v45 = vpop.eup %9324  ;;  %v2970_v56 = vmul.f32 1.442695, %v2944_v48  ;;  %3022 = vadd.xlane.f32.xlu1 %v3021_v35 }
 0x68c   :  { %v3003_v52 = vsel %vm1261_vm3, %v10615_v45, 0.0  ;;  %v10647_v47 = vpop.permute.xlu0 %9061 }
 0x68d   :  { %9332 = vpow2.f32 %v2970_v56  ;;  %3004 = vadd.xlane.f32.xlu0 %v3003_v52 }
 0x68f   :  { %v10619_v27 = vpop.eup %9326 }
 0x690   :  { %v3000_v24 = vsel %vm1261_vm3, %v10619_v27, 0.0 }
 0x691   :  { %3001 = vadd.xlane.f32.xlu0 %v3000_v24 }
 0x693   :  { %v10623_v17 = vpop.eup %9328 }
 0x694   :  { %v10625_v4 = vpop.eup %9330  ;;  %v3018_v26 = vsel %vm1261_vm3, %v10623_v17, 0.0 }
 0x695   :  { %3019 = vadd.xlane.f32.xlu0 %v3018_v26  ;;  %v3015_v31 = vsel %vm1261_vm3, %v10625_v4, 0.0 }
 0x696   :  { %3016 = vadd.xlane.f32.xlu1 %v3015_v31 }
 0x697   :  { %v10631_v59 = vpop.eup %9332 }
 0x698   :  { %v3012_v61 = vsel %vm1261_vm3, %v10631_v59, 0.0 }
 0x699   :  { %3013 = vadd.xlane.f32.xlu0 %v3012_v61 }
 0x6a7   :  { %3940 = vrot.lane.b32.xlu1 %v9984_v63, %s9528_s21 }
 0x6ab   :  { %4029 = vrot.lane.b32.xlu1 %v9987_v2, %s9528_s21 }
 0x6af   :  { %9076 = vrot.lane.b32.xlu1 %v9919_v40, %s9527_s17 }
 0x6b3   :  { %4122 = vrot.lane.b32.xlu1 %v10030_v39, %s9528_s21 }
 0x6b7   :  { %9081 = vrot.lane.b32.xlu1 %v9929_v46, %s9527_s17 }
 0x6b9   :  { %v2933_v6 = vpop.xlane.xlu1 %2932 }
 0x6ba   :  { %v2949_v23 = vsub.f32 %v10538_v49, %v2933_v6 }
 0x6bb   :  { %4302 = vrot.lane.b32.xlu1 %v10038_v50, %s9528_s21 }
 0x6bc   :  { %v2980_v48 = vmul.f32 1.442695, %v2949_v23 }
 0x6bd   :  { %v2930_v35 = vpop.xlane.xlu0 %2929  ;;  %v10683_v31 = vpop.permute.xlu1 %3847 }
 0x6be   :  { %9334 = vpow2.f32 %v2980_v48  ;;  %v2948_v56 = vsub.f32 %v10541_v41, %v2930_v35 }
 0x6bf   :  { %4304 = vrot.lane.b32.xlu1 %v10054_v28, %s9528_s21 }
 0x6c0   :  { %v2978_v52 = vmul.f32 1.442695, %v2948_v56 }
 0x6c1   :  { %v10685_v61 = vpop.permute.xlu0 %3849  ;;  %v10689_v6 = vpop.permute.xlu1 %9066 }
 0x6c2   :  { %9336 = vpow2.f32 %v2978_v52 }
 0x6c3   :  { %4395 = vrot.lane.b32.xlu1 %v10033_v43, %s9528_s21 }
 0x6c5   :  { %v10693_v23 = vpop.permute.xlu0 %3938 }
 0x6c7   :  { %4486 = vrot.lane.b32.xlu1 %v10070_v33, %s9528_s21 }
 0x6c8   :  { %v10659_v49 = vpop.eup %9334 }
 0x6c9   :  { %v3027_v24 = vsel %vm1261_vm3, %v10659_v49, 0.0 }
 0x6ca   :  { %3028 = vadd.xlane.f32.xlu0 %v3027_v24  ;;  %v9034_v24 = vunpack.i.h.bf16 %v10547_v37 }
 0x6cb   :  { %9091 = vrot.lane.b32.xlu1 %v9864_v5, %s9529_s22 }
 0x6cc   :  { %v10665_v41 = vpop.eup %9336 }
 0x6cd   :  { %v3024_v26 = vsel %vm1261_vm3, %v10665_v41, 0.0 }
 0x6ce   :  { %3025 = vadd.xlane.f32.xlu0 %v3024_v26  ;;  %v9033_v26 = vunpack.i.l.bf16 %v10547_v37 }
 0x6cf   :  { %9101 = vrot.lane.b32.xlu1 %v9888_v15, %s9529_s22 }
 0x6d0   :  { %v8686_v34 = vpack.c.bf16 %v9034_v24, %v9033_v26  ;;  %v9043_v24 = vunpack.i.l.bf16 %v10555_v7 }
 0x6d3   :  { %9106 = vrot.lane.b32.xlu1 %v9898_v16, %s9529_s22 }
 0x6d7   :  { %9111 = vrot.lane.b32.xlu1 %v9905_v0, %s9529_s22 }
 0x6db   :  { %9116 = vrot.lane.b32.xlu1 %v9919_v40, %s9529_s22 }
 0x6df   :  { %9126 = vrot.lane.b32.xlu1 %v9939_v36, %s9529_s22 }
 0x6e4   :  { %9071 = vrot.lane.b32.xlu0 %v9905_v0, %s9527_s17 }
 0x6e8   :  { %4031 = vrot.lane.b32.xlu0 %v10002_v13, %s9528_s21 }
 0x6ec   :  { %4120 = vrot.lane.b32.xlu0 %v10012_v22, %s9528_s21 }
 0x6f0   :  { %4211 = vrot.lane.b32.xlu0 %v9907_v32, %s9528_s21 }
 0x6f2   :  { %v2987_v48 = vpop.xlane.xlu1 %2986 }
 0x6f3   :  { %9338 = vrcp.f32 %v2987_v48 }
 0x6f4   :  { %4213 = vrot.lane.b32.xlu0 %v10005_v18, %s9528_s21 }
 0x6f6   :  { %v2984_v35 = vpop.xlane.xlu0 %2983 }
 0x6f7   :  { %9340 = vrcp.f32 %v2984_v35 }
 0x6f8   :  { %9086 = vrot.lane.b32.xlu0 %v9939_v36, %s9527_s17 }
 0x6fc   :  { %4393 = vrot.lane.b32.xlu0 %v10019_v9, %s9528_s21 }
 0x6fd   :  { %v9339_v56 = vpop.eup %9338 }
 0x6fe   :  { %v3033_v35 = vmul.f32 %v9339_v56, %v10567_v57 }
 0x700   :  { %4484 = vrot.lane.b32.xlu0 %v10059_v53, %s9528_s21 }
 0x701   :  { %v9341_v52 = vpop.eup %9340 }
 0x702   :  { %v10706_v3 = vmul.f32 %v9341_v52, %v10571_v21  ;;  %v9044_v52 = vunpack.i.h.bf16 %v10555_v7 }
 0x703   :  { %v2999_v48 = vpop.xlane.xlu1 %2998 }
 0x704   :  { %8226 = vmatprep.mubr.msk.f32.mxu0 %vm1261_vm3, %v10706_v3  ;;  %9096 = vrot.lane.b32.xlu0 %v9878_v8, %s9529_s22  ;;  %9342 = vrcp.f32 %v2999_v48  ;;  %v8694_v44 = vpack.c.bf16 %v9044_v52, %v9043_v24 }
 0x705   :  { %8227 = vmatmul.mubr.msk.f32.vlgmr.msra.gmra.mrb[28].mxu0 %vm1261_vm3, %v3033_v35 }
 0x706   :  { %8681 = vmatpush3.bf16.msra.mxu0 %v10426_v29 }
 0x707   :  { %8687 = vmatprep.subr.bf16.mxu0 %v8686_v34  ;;  %v2996_v37 = vpop.xlane.xlu1 %2995 }
 0x708   :  { %9121 = vrot.lane.b32.xlu0 %v9929_v46, %s9529_s22  ;;  %9344 = vrcp.f32 %v2996_v37 }
 0x70c   :  { %9131 = vrot.lane.b32.xlu0 %v9864_v5, %s9530_s23 }
 0x70e   :  { %v9343_v57 = vpop.eup %9342 }
 0x70f   :  { %v3011_v21 = vpop.xlane.xlu1 %3010  ;;  %v3041_v35 = vmul.f32 %v9343_v57, %v10578_v19 }
 0x710   :  { %9346 = vrcp.f32 %v3011_v21 }
 0x712   :  { %v9345_v56 = vpop.eup %9344  ;;  %v2993_v26 = vpop.xlane.xlu0 %2992 }
 0x713   :  { %v3008_v29 = vpop.xlane.xlu1 %3007  ;;  %v10722_v48 = vmul.f32 %v9345_v56, %v10583_v1  ;;  %v9054_v1 = vunpack.i.h.bf16 %v10563_v62  ;;  %v9053_v56 = vunpack.i.l.bf16 %v10563_v62 }
 0x714   :  { %9348 = vrcp.f32 %v3008_v29 }
 0x715   :  { %8240 = vmatprep.mubr.msk.f32.mxu0 %vm1261_vm3, %v10722_v48  ;;  %9350 = vrcp.f32 %v2993_v26 }
 0x716   :  { %v2990_v37 = vpop.xlane.xlu0 %2989  ;;  %8241 = vmatmul.mubr.msk.f32.vlgmr.msra.gmra.mrb[30].mxu0 %vm1261_vm3, %v3041_v35  ;;  %v9038_v35 = vunpack.i.l.bf16 %v10553_v10 }
 0x717   :  { %9352 = vrcp.f32 %v2990_v37  ;;  %8689 = vmatpush3.bf16.msra.mxu0 %v8686_v34  ;;  %v9039_v34 = vunpack.i.h.bf16 %v10553_v10  ;;  %v8702_v37 = vpack.c.bf16 %v9054_v1, %v9053_v56 }
 0x718   :  { %8695 = vmatprep.subr.bf16.mxu0 %v8694_v44  ;;  %v3023_v57 = vpop.xlane.xlu1 %3022 }
 0x719   :  { %v8690_v10 = vpack.c.bf16 %v9039_v34, %v9038_v35  ;;  %v9059_v34 = vunpack.i.h.bf16 %v10643_v60  ;;  %v9058_v35 = vunpack.i.l.bf16 %v10643_v60 }
 0x71a   :  { %v3005_v7 = vpop.xlane.xlu0 %3004  ;;  %v9347_v21 = vpop.eup %9346 }
 0x71b   :  { %9354 = vrcp.f32 %v3005_v7  ;;  %v3049_v52 = vmul.f32 %v9347_v21, %v10591_v54  ;;  %v8708_v60 = vpack.c.bf16 %v9059_v34, %v9058_v35 }
 0x71e   :  { %v9349_v5 = vpop.eup %9348  ;;  %v3002_v19 = vpop.xlane.xlu0 %3001 }
 0x71f   :  { %9356 = vrcp.f32 %v3002_v19  ;;  %v10731_v26 = vmul.f32 %v9349_v5, %v10598_v51  ;;  %v9351_v29 = vpop.eup %9350 }
 0x720   :  { %9358 = vrcp.f32 %v3023_v57  ;;  %v3037_v54 = vmul.f32 %v9351_v29, %v10596_v12  ;;  %v9048_v12 = vunpack.i.l.bf16 %v10559_v25  ;;  %v9063_v29 = vunpack.i.l.bf16 %v10647_v47 }
 0x721   :  { %v9353_v24 = vpop.eup %9352  ;;  %8254 = vmatprep.mubr.msk.f32.mxu0 %vm1261_vm3, %v10731_v26 }
 0x722   :  { %v3020_v62 = vpop.xlane.xlu0 %3019  ;;  %8255 = vmatmul.mubr.msk.f32.vlgmr.msra.gmra.mrb[32].mxu0 %vm1261_vm3, %v3049_v52  ;;  %v10740_v7 = vmul.f32 %v9353_v24, %v10606_v20 }
 0x723   :  { %9360 = vrcp.f32 %v3020_v62  ;;  %v3017_v5 = vpop.xlane.xlu1 %3016  ;;  %8697 = vmatpush3.bf16.msra.mxu0 %v8694_v44  ;;  %v9049_v44 = vunpack.i.h.bf16 %v10559_v25 }
 0x724   :  { %8233 = vmatprep.mubr.msk.f32.mxu1 %vm1261_vm3, %v10740_v7  ;;  %8704 = vmatprep.subr.msk.bf16.mxu0 %vm9959_vm2, %v8702_v37  ;;  %9362 = vrcp.f32 %v3017_v5 }
 0x725   :  { %8234 = vmatmul.mubr.msk.f32.vlgmr.msra.gmra.mrb[36].mxu1 %vm1261_vm3, %v3037_v54  ;;  %v9355_v20 = vpop.eup %9354  ;;  %v8698_v52 = vpack.c.bf16 %v9049_v44, %v9048_v12 }
 0x726   :  { %8685 = vmatpush3.bf16.msra.mxu1 %v10434_v42  ;;  %v3014_v51 = vpop.xlane.xlu0 %3013  ;;  %v3045_v56 = vmul.f32 %v9355_v20, %v10615_v45  ;;  %v9064_v42 = vunpack.i.h.bf16 %v10647_v47 }
 0x727   :  { %8691 = vmatprep.subr.bf16.mxu1 %v8690_v10  ;;  %9364 = vrcp.f32 %v3014_v51 }
 0x728   :  { %v8714_v47 = vpack.c.bf16 %v9064_v42, %v9063_v29 }
 0x729   :  { %v9357_v21 = vpop.eup %9356 }
 0x72a   :  { %v10752_v1 = vmul.f32 %v9357_v21, %v10619_v27  ;;  %v9359_v19 = vpop.eup %9358 }
 0x72b   :  { %v3057_v27 = vmul.f32 %v9359_v19, %v10610_v38 }
 0x72c   :  { %8247 = vmatprep.mubr.msk.f32.mxu1 %vm1261_vm3, %v10752_v1 }
 0x72d   :  { %v9361_v57 = vpop.eup %9360  ;;  %8248 = vmatmul.mubr.msk.f32.vlgmr.msra.gmra.mrb[38].mxu1 %vm1261_vm3, %v3045_v56 }
 0x72e   :  { %8693 = vmatpush3.bf16.msra.mxu1 %v8690_v10  ;;  %v10761_v25 = vmul.f32 %v9361_v57, %v10623_v17  ;;  %v9363_v45 = vpop.eup %9362  ;;  %v3941_v17 = vpop.permute.xlu1 %3940 }
 0x72f   :  { %8699 = vmatprep.subr.bf16.mxu1 %v8698_v52  ;;  %v3053_v62 = vmul.f32 %v9363_v45, %v10625_v4  ;;  %v9069_v45 = vunpack.i.h.bf16 %v10689_v6 }
 0x730   :  { %8268 = vmatprep.mubr.msk.f32.mxu0 %vm1261_vm3, %v10761_v25 }
 0x731   :  { %v9365_v24 = vpop.eup %9364  ;;  %8269 = vmatmul.mubr.msk.f32.vlgmr.msra.gmra.mrb[34].mxu0 %vm1261_vm3, %v3057_v27 }
 0x732   :  { %8707 = vmatpush3.bf16.xpose.msk.msra.mxu0 %vm9959_vm2, %v8702_v37  ;;  %8282 = vmatprep.mubr.msk.f32.mxu0 %vm538_vm1, %v10683_v31  ;;  %v10774_v38 = vmul.f32 %v9365_v24, %v10631_v59  ;;  %v4030_v31 = vpop.permute.xlu1 %4029  ;;  %v9068_v24 = vunpack.i.l.bf16 %v10689_v6 }
 0x733   :  { %8716 = vmatprep.subr.msk.bf16.mxu0 %vm9959_vm2, %v8714_v47 }
 0x734   :  { %8261 = vmatprep.mubr.msk.f32.mxu1 %vm1261_vm3, %v10774_v38 }
 0x735   :  { %8262 = vmatmul.mubr.msk.f32.vlgmr.msra.gmra.mrb[40].mxu1 %vm1261_vm3, %v3053_v62 }
 0x736   :  { %8701 = vmatpush3.bf16.msra.mxu1 %v8698_v52  ;;  %v9077_v4 = vpop.permute.xlu1 %9076 }
 0x737   :  { %8710 = vmatprep.subr.msk.bf16.mxu1 %vm9959_vm2, %v8708_v60 }
 0x739   :  { %8283 = vmatmul.mubr.msk.f32.vlgmr.msra.gmra.mrb[36].mxu0 %vm538_vm1, %v10685_v61 }
 0x73a   :  { %8719 = vmatpush3.bf16.xpose.msk.msra.mxu0 %vm9959_vm2, %v8714_v47  ;;  %8296 = vmatprep.mubr.msk.f32.mxu0 %vm538_vm1, %v4030_v31  ;;  %v4123_v59 = vpop.permute.xlu1 %4122  ;;  %v8720_v31 = vpack.c.bf16 %v9069_v45, %v9068_v24 }
 0x73e   :  { %v9082_v37 = vpop.permute.xlu1 %9081 }
 0x73f   :  { %v9084_v44 = vunpack.i.h.bf16 %v9082_v37  ;;  %v9083_v61 = vunpack.i.l.bf16 %v9082_v37 }
 0x741   :  { %v8738_v29 = vpack.c.bf16 %v9084_v44, %v9083_v61 }
 0x742   :  { %v10789_v5 = vpop.permute.xlu1 %4302 }
 0x746   :  { %v10791_v54 = vpop.permute.xlu1 %4304 }
 0x74a   :  { %v4396_v20 = vpop.permute.xlu1 %4395 }
 0x74e   :  { %v10793_v57 = vpop.permute.xlu1 %4486 }
 0x752   :  { %v9092_v62 = vpop.permute.xlu1 %9091 }
 0x753   :  { %v9094_v37 = vunpack.i.h.bf16 %v9092_v62 }
 0x757   :  { %v3029_v10 = vpop.xlane.xlu0 %3028 }
 0x758   :  { %9366 = vrcp.f32 %v3029_v10  ;;  %v9093_v10 = vunpack.i.l.bf16 %v9092_v62 }
 0x75b   :  { %v3026_v51 = vpop.xlane.xlu0 %3025 }
 0x75c   :  { %9368 = vrcp.f32 %v3026_v51 }
 0x75f   :  { %v9072_v21 = vpop.permute.xlu0 %9071 }
 0x760   :  { %v9074_v12 = vunpack.i.h.bf16 %v9072_v21  ;;  %v9073_v56 = vunpack.i.l.bf16 %v9072_v21  ;;  %v8750_v21 = vpack.c.bf16 %v9094_v37, %v9093_v10 }
 0x762   :  { %v8726_v19 = vpack.c.bf16 %v9074_v12, %v9073_v56  ;;  %v9367_v52 = vpop.eup %9366 }
 0x763   :  { %v4032_v42 = vpop.permute.xlu0 %4031  ;;  %v3061_v47 = vmul.f32 %v9367_v52, %v10659_v49  ;;  %v9079_v49 = vunpack.i.h.bf16 %v9077_v4 }
 0x764   :  { %8297 = vmatmul.mubr.msk.f32.vlgmr.msra.gmra.mrb[38].mxu0 %vm538_vm1, %v4032_v42  ;;  %8728 = vmatprep.subr.msk.bf16.mxu0 %vm9959_vm2, %v8726_v19 }
 0x765   :  { %8731 = vmatpush3.bf16.xpose.msk.msra.mxu0 %vm9959_vm2, %v8726_v19 }
 0x766   :  { %v9369_v27 = vpop.eup %9368  ;;  %8740 = vmatprep.subr.msk.bf16.mxu0 %vm9959_vm2, %v8738_v29 }
 0x767   :  { %v4121_v34 = vpop.permute.xlu0 %4120  ;;  %v10805_v35 = vmul.f32 %v9369_v27, %v10665_v41  ;;  %v9078_v41 = vunpack.i.l.bf16 %v9077_v4 }
 0x769   :  { %8275 = vmatprep.mubr.msk.f32.mxu1 %vm1261_vm3, %v10805_v35 }
 0x76a   :  { %8276 = vmatmul.mubr.msk.f32.vlgmr.msra.gmra.mrb[42].mxu1 %vm1261_vm3, %v3061_v47 }
 0x76b   :  { %8713 = vmatpush3.bf16.xpose.msk.msra.mxu1 %vm9959_vm2, %v8708_v60  ;;  %v4212_v6 = vpop.permute.xlu0 %4211  ;;  %8289 = vmatprep.mubr.msk.f32.mxu1 %vm538_vm1, %v10693_v23  ;;  %v8732_v60 = vpack.c.bf16 %v9079_v49, %v9078_v41  ;;  %v9102_v23 = vpop.permute.xlu1 %9101 }
 0x76c   :  { %8722 = vmatprep.subr.msk.bf16.mxu1 %vm9959_vm2, %v8720_v31  ;;  %8310 = vmatprep.mubr.msk.f32.mxu0 %vm538_vm1, %v4212_v6  ;;  %v9104_v4 = vunpack.i.h.bf16 %v9102_v23  ;;  %v9103_v61 = vunpack.i.l.bf16 %v9102_v23 }
 0x76e   :  { %v10830_v42 = vpack.c.bf16 %v9104_v4, %v9103_v61  ;;  %v10885_v4 = vld [vmem:[%s11768_s1 + $0x20] sm:$0xff] }
 0x76f   :  { %v4214_v51 = vpop.permute.xlu0 %4213  ;;  %v9107_v45 = vpop.permute.xlu1 %9106 }
 0x770   :  { %8311 = vmatmul.mubr.msk.f32.vlgmr.msra.gmra.mrb[40].mxu0 %vm538_vm1, %v4214_v51  ;;  %v9108_v24 = vunpack.i.l.bf16 %v9107_v45 }
 0x771   :  { %8743 = vmatpush3.bf16.xpose.msk.msra.mxu0 %vm9959_vm2, %v8738_v29 }
 0x772   :  { %8290 = vmatmul.mubr.msk.f32.vlgmr.msra.gmra.mrb[44].mxu1 %vm538_vm1, %v3941_v17  ;;  %8751 = vmatprep.subr.bf16.mxu0 %v8750_v21 }
 0x773   :  { %8725 = vmatpush3.bf16.xpose.msk.msra.mxu1 %vm9959_vm2, %v8720_v31  ;;  %8303 = vmatprep.mubr.msk.f32.mxu1 %vm538_vm1, %v4121_v34  ;;  %v9087_v44 = vpop.permute.xlu0 %9086 }
 0x774   :  { %8734 = vmatprep.subr.msk.bf16.mxu1 %vm9959_vm2, %v8732_v60  ;;  %v9089_v12 = vunpack.i.h.bf16 %v9087_v44  ;;  %v9088_v56 = vunpack.i.l.bf16 %v9087_v44  ;;  %v10880_v44 = vld [vmem:[%s11768_s1 + $0x28] sm:$0xff] }
 0x776   :  { %v8744_v17 = vpack.c.bf16 %v9089_v12, %v9088_v56 }
 0x777   :  { %v4394_v19 = vpop.permute.xlu0 %4393 }
 0x778   :  { %8324 = vmatprep.mubr.msk.f32.mxu0 %vm538_vm1, %v4394_v19 }
 0x779   :  { %8325 = vmatmul.mubr.msk.f32.vlgmr.msra.gmra.mrb[42].mxu0 %vm538_vm1, %v4396_v20 }
 0x77a   :  { %8304 = vmatmul.mubr.msk.f32.vlgmr.msra.gmra.mrb[46].mxu1 %vm538_vm1, %v4123_v59  ;;  %8753 = vmatpush3.bf16.msra.mxu0 %v8750_v21 }
 0x77b   :  { %8737 = vmatpush3.bf16.xpose.msk.msra.mxu1 %vm9959_vm2, %v8732_v60  ;;  %8317 = vmatprep.mubr.msk.f32.mxu1 %vm538_vm1, %v10789_v5  ;;  %v4485_v29 = vpop.permute.xlu0 %4484  ;;  %v9109_v5 = vunpack.i.h.bf16 %v9107_v45 }
 0x77c   :  { %8759 = vmatprep.subr.bf16.mxu0 %v10830_v42  ;;  %8746 = vmatprep.subr.msk.bf16.mxu1 %vm9959_vm2, %v8744_v17 }
 0x77d   :  { %v10846_v34 = vpack.c.bf16 %v9109_v5, %v9108_v24 }
 0x77f   :  { %v9097_v52 = vpop.permute.xlu0 %9096 }
 0x780   :  { %v9099_v20 = vunpack.i.h.bf16 %v9097_v52  ;;  %v9098_v27 = vunpack.i.l.bf16 %v9097_v52 }
 0x782   :  { %8318 = vmatmul.mubr.msk.f32.vlgmr.msra.gmra.mrb[48].mxu1 %vm538_vm1, %v10791_v54  ;;  %v8754_v59 = vpack.c.bf16 %v9099_v20, %v9098_v27 }
 0x783   :  { %8749 = vmatpush3.bf16.xpose.msk.msra.mxu1 %vm9959_vm2, %v8744_v17  ;;  %8331 = vmatprep.mubr.msk.f32.mxu1 %vm538_vm1, %v4485_v29 }
 0x784   :  { %8755 = vmatprep.subr.bf16.mxu1 %v8754_v59 }
 0x78a   :  { %8332 = vmatmul.mubr.msk.f32.vlgmr.msra.gmra.mrb[50].mxu1 %vm538_vm1, %v10793_v57 }
 0x78b   :  { %8757 = vmatpush3.bf16.msra.mxu1 %v8754_v59 }
 0x78c   :  { %8763 = vmatprep.subr.bf16.mxu1 %v10846_v34 }
 0x7d8   :  { %v10849_v47 = vpop.f32.mrb[28].mxu0 }
 0x7d9   :  { %11801 = vst [vmem:[#allocation8_spill] sm:$0xff] %v10849_v47  ;;  %v10851_v54 = vpop.f32.mrb[29].mxu0 }
 0x7da   :  { %11802 = vst [vmem:[#allocation16_spill] sm:$0xff] %v10851_v54 }
 0x7e9   :  { %v10853_v62 = vpop.f32.mrb[30].mxu0 }
 0x7ea   :  { %11803 = vst [vmem:[#allocation17_spill] sm:$0xff] %v10853_v62  ;;  %v10855_v31 = vpop.f32.mrb[31].mxu0 }
 0x7eb   :  { %11804 = vst [vmem:[#allocation18_spill] sm:$0xff] %v10855_v31 }
 0x7f5   :  { %v10857_v6 = vpop.f32.mrb[32].mxu0 }
 0x7f6   :  { %11805 = vst [vmem:[#allocation19_spill] sm:$0xff] %v10857_v6  ;;  %v10859_v37 = vpop.f32.mrb[33].mxu0 }
 0x7f7   :  { %11806 = vst [vmem:[#allocation20_spill] sm:$0xff] %v10859_v37 }
 0x7f8   :  { %v10861_v10 = vpop.f32.mrb[36].mxu1 }
 0x7f9   :  { %11807 = vst [vmem:[#allocation21_spill] sm:$0xff] %v10861_v10  ;;  %v10863_v57 = vpop.f32.mrb[37].mxu1 }
 0x7fa   :  { %11808 = vst [vmem:[#allocation22_spill] sm:$0xff] %v10863_v57 }
 0x800   :  { %v10865_v49 = vpop.f32.mrb[38].mxu1 }
 0x801   :  { %11809 = vst [vmem:[#allocation23_spill] sm:$0xff] %v10865_v49  ;;  %v10867_v41 = vpop.f32.mrb[39].mxu1 }
 0x802   :  { %11810 = vst [vmem:[#allocation24_spill] sm:$0xff] %v10867_v41 }
 0x804   :  { %v10869_v51 = vpop.f32.mrb[34].mxu0 }
 0x805   :  { %11811 = vst [vmem:[#allocation25_spill] sm:$0xff] %v10869_v51  ;;  %v10871_v21 = vpop.f32.mrb[35].mxu0 }
 0x806   :  { %11812 = vst [vmem:[#allocation26_spill] sm:$0xff] %v10871_v21 }
 0x808   :  { %v10873_v60 = vpop.f32.mrb[40].mxu1 }
 0x809   :  { %11813 = vst [vmem:[#allocation27_spill] sm:$0xff] %v10873_v60  ;;  %v10875_v23 = vpop.f32.mrb[41].mxu1 }
 0x80a   :  { %11814 = vst [vmem:[#allocation28_spill] sm:$0xff] %v10875_v23 }
 0x80c   :  { %v8284_v61 = vpop.f32.mrb[36].mxu0 }
 0x80d   :  { %v10888_v12 = vadd.f32 %v8284_v61, %v10880_v44  ;;  %v3929_v56 = vpop.f32.mrb[37].mxu0 }
 0x80e   :  { %v10891_v19 = vadd.f32 %v3929_v56, %v10885_v4 }
 0x80f   :  { %v4578_v17 = vsel %vm1261_vm3, %v10888_v12, -inf }
 0x810   :  { %4579 = vmax.xlane.f32.xlu1 %v4578_v17  ;;  %v4575_v29 = vsel %vm1261_vm3, %v10891_v19, -inf }
 0x811   :  { %4576 = vmax.xlane.f32.xlu0 %v4575_v29 }
 0x837   :  { %v8298_v52 = vpop.f32.mrb[38].mxu0 }
 0x838   :  { %v10898_v20 = vadd.f32 %v8298_v52, %v10880_v44  ;;  %v4111_v27 = vpop.f32.mrb[39].mxu0 }
 0x839   :  { %v10901_v59 = vadd.f32 %v4111_v27, %v10885_v4 }
 0x83a   :  { %v4590_v45 = vsel %vm1261_vm3, %v10898_v20, -inf }
 0x83b   :  { %4591 = vmax.xlane.f32.xlu1 %v4590_v45  ;;  %v4587_v5 = vsel %vm1261_vm3, %v10901_v59, -inf }
 0x83c   :  { %4588 = vmax.xlane.f32.xlu0 %v4587_v5 }
 0x83d   :  { %v10907_v24 = vpop.f32.mrb[42].mxu1 }
 0x83e   :  { %11815 = vst [vmem:[#allocation29_spill] sm:$0xff] %v10907_v24  ;;  %v10909_v61 = vpop.f32.mrb[43].mxu1 }
 0x83f   :  { %11816 = vst [vmem:[#allocation30_spill] sm:$0xff] %v10909_v61 }
 0x843   :  { %v8312_v56 = vpop.f32.mrb[40].mxu0 }
 0x844   :  { %v10912_v17 = vadd.f32 %v8312_v56, %v10880_v44  ;;  %v4293_v29 = vpop.f32.mrb[41].mxu0 }
 0x845   :  { %v8291_v52 = vpop.f32.mrb[44].mxu1  ;;  %v10918_v21 = vadd.f32 %v4293_v29, %v10885_v4 }
 0x846   :  { %v10915_v27 = vadd.f32 %v8291_v52, %v10880_v44  ;;  %v4020_v45 = vpop.f32.mrb[45].mxu1  ;;  %v4602_v5 = vsel %vm1261_vm3, %v10912_v17, -inf }
 0x847   :  { %4603 = vmax.xlane.f32.xlu1 %v4602_v5  ;;  %v10923_v24 = vadd.f32 %v4020_v45, %v10885_v4  ;;  %v4599_v61 = vsel %vm1261_vm3, %v10918_v21, -inf }
 0x848   :  { %v4584_v56 = vsel %vm1261_vm3, %v10915_v27, -inf }
 0x849   :  { %4585 = vmax.xlane.f32.xlu0 %v4584_v56  ;;  %v4581_v29 = vsel %vm1261_vm3, %v10923_v24, -inf }
 0x84b   :  { %4600 = vmax.xlane.f32.xlu1 %v4599_v61 }
 0x84c   :  { %v8326_v52 = vpop.f32.mrb[42].mxu0 }
 0x84d   :  { %v8305_v23 = vpop.f32.mrb[46].mxu1  ;;  %v10932_v51 = vadd.f32 %v8326_v52, %v10880_v44  ;;  %4582 = vmax.xlane.f32.xlu0 %v4581_v29  ;;  %v4475_v5 = vpop.f32.mrb[43].mxu0 }
 0x84e   :  { %v10935_v45 = vadd.f32 %v8305_v23, %v10880_v44  ;;  %v4202_v37 = vpop.f32.mrb[47].mxu1  ;;  %v10945_v52 = vadd.f32 %v4475_v5, %v10885_v4 }
 0x84f   :  { %v4614_v56 = vsel %vm1261_vm3, %v10932_v51, -inf  ;;  %v10940_v60 = vadd.f32 %v4202_v37, %v10885_v4 }
 0x850   :  { %4615 = vmax.xlane.f32.xlu1 %v4614_v56  ;;  %v4596_v61 = vsel %vm1261_vm3, %v10935_v45, -inf }
 0x851   :  { %4597 = vmax.xlane.f32.xlu0 %v4596_v61  ;;  %v4593_v29 = vsel %vm1261_vm3, %v10940_v60, -inf  ;;  %v4611_v61 = vsel %vm1261_vm3, %v10945_v52, -inf }
 0x855   :  { %v8319_v23 = vpop.f32.mrb[48].mxu1  ;;  %4594 = vmax.xlane.f32.xlu0 %v4593_v29 }
 0x856   :  { %v10950_v41 = vadd.f32 %v8319_v23, %v10880_v44  ;;  %v4384_v6 = vpop.f32.mrb[49].mxu1 }
 0x857   :  { %v10953_v37 = vadd.f32 %v4384_v6, %v10885_v4 }
 0x858   :  { %v4608_v56 = vsel %vm1261_vm3, %v10950_v41, -inf }
 0x859   :  { %4609 = vmax.xlane.f32.xlu1 %v4608_v56  ;;  %4612 = vmax.xlane.f32.xlu0 %v4611_v61  ;;  %v4605_v5 = vsel %vm1261_vm3, %v10953_v37, -inf }
 0x85d   :  { %v8333_v31 = vpop.f32.mrb[50].mxu1  ;;  %4606 = vmax.xlane.f32.xlu0 %v4605_v5  ;;  %v10975_v5 = vpop.permute.xlu1 %9111 }
 0x85e   :  { %v4566_v29 = vpop.f32.mrb[51].mxu1  ;;  %v10966_v6 = vadd.f32 %v8333_v31, %v10880_v44  ;;  %v10983_v44 = vpop.permute.xlu0 %9121 }
 0x85f   :  { %v10969_v23 = vadd.f32 %v4566_v29, %v10885_v4 }
 0x860   :  { %v4620_v56 = vsel %vm1261_vm3, %v10966_v6, -inf }
 0x861   :  { %v4617_v61 = vsel %vm1261_vm3, %v10969_v23, -inf  ;;  %v10981_v31 = vpop.permute.xlu1 %9116 }
 0x862   :  { %v10991_v29 = vpop.permute.xlu0 %9131 }
 0x865   :  { %v10987_v4 = vpop.permute.xlu1 %9126 }
 0x86a   :  { %9136 = vrot.lane.b32.xlu1 %v9878_v8, %s9530_s23 }
 0x873   :  { %9141 = vrot.lane.b32.xlu0 %v9888_v15, %s9530_s23 }
 0x88e   :  { %4621 = vmax.xlane.f32.xlu1 %v4620_v56 }
 0x892   :  { %4618 = vmax.xlane.f32.xlu0 %v4617_v61 }
 0x89d   :  { %v4580_v56 = vpop.xlane.xlu1 %4579 }
 0x89e   :  { %v4577_v61 = vpop.xlane.xlu0 %4576 }
 0x89f   :  { %5536 = vrot.lane.b32.xlu1 %v9866_v30, %s9531_s27  ;;  %v4624_v30 = vsub.f32 %v10888_v12, %v4580_v56  ;;  %v4623_v57 = vsub.f32 %v10891_v19, %v4577_v61 }
 0x8a1   :  { %v4641_v49 = vmul.f32 1.442695, %v4624_v30  ;;  %v4639_v62 = vmul.f32 1.442695, %v4623_v57 }
 0x8a3   :  { %9146 = vrot.lane.b32.xlu1 %v9898_v16, %s9530_s23  ;;  %9370 = vpow2.f32 %v4641_v49 }
 0x8a4   :  { %9372 = vpow2.f32 %v4639_v62 }
 0x8a8   :  { %5538 = vrot.lane.b32.xlu0 %v9970_v58, %s9531_s27 }
 0x8ac   :  { %5627 = vrot.lane.b32.xlu0 %v11800_v55, %s9531_s27 }
 0x8ad   :  { %v10995_v54 = vpop.eup %9370 }
 0x8ae   :  { %v4674_v58 = vsel %vm1261_vm3, %v10995_v54, 0.0  ;;  %v10999_v10 = vpop.eup %9372 }
 0x8af   :  { %v4671_v19 = vsel %vm1261_vm3, %v10999_v10, 0.0 }
 0x8c7   :  { %4675 = vadd.xlane.f32.xlu1 %v4674_v58 }
 0x8c8   :  { %v4592_v55 = vpop.xlane.xlu1 %4591 }
 0x8c9   :  { %v4628_v47 = vsub.f32 %v10898_v20, %v4592_v55  ;;  %v4589_v15 = vpop.xlane.xlu0 %4588 }
 0x8ca   :  { %v4627_v12 = vsub.f32 %v10901_v59, %v4589_v15 }
 0x8cb   :  { %v4649_v49 = vmul.f32 1.442695, %v4628_v47  ;;  %4672 = vadd.xlane.f32.xlu0 %v4671_v19 }
 0x8cc   :  { %v4647_v62 = vmul.f32 1.442695, %v4627_v12 }
 0x8cd   :  { %9374 = vpow2.f32 %v4649_v49 }
 0x8ce   :  { %9376 = vpow2.f32 %v4647_v62 }
 0x8d4   :  { %v4604_v57 = vpop.xlane.xlu1 %4603 }
 0x8d5   :  { %v4632_v56 = vsub.f32 %v10912_v17, %v4604_v57 }
 0x8d6   :  { %v4586_v30 = vpop.xlane.xlu0 %4585 }
 0x8d7   :  { %v11006_v61 = vpop.eup %9374  ;;  %v4657_v58 = vmul.f32 1.442695, %v4632_v56  ;;  %v4626_v20 = vsub.f32 %v10915_v27, %v4586_v30 }
 0x8d8   :  { %v4601_v55 = vpop.xlane.xlu1 %4600  ;;  %v4686_v15 = vsel %vm1261_vm3, %v11006_v61, 0.0  ;;  %v11011_v59 = vpop.eup %9376 }
 0x8d9   :  { %9378 = vpow2.f32 %v4657_v58  ;;  %v4645_v47 = vmul.f32 1.442695, %v4626_v20  ;;  %v4631_v12 = vsub.f32 %v10918_v21, %v4601_v55  ;;  %4687 = vadd.xlane.f32.xlu1 %v4686_v15  ;;  %v4683_v62 = vsel %vm1261_vm3, %v11011_v59, 0.0 }
 0x8da   :  { %v4583_v19 = vpop.xlane.xlu0 %4582 }
 0x8db   :  { %9380 = vpow2.f32 %v4645_v47  ;;  %v4655_v17 = vmul.f32 1.442695, %v4631_v12  ;;  %v4625_v49 = vsub.f32 %v10923_v24, %v4583_v19 }
 0x8dd   :  { %9382 = vpow2.f32 %v4655_v17  ;;  %v4643_v27 = vmul.f32 1.442695, %v4625_v49  ;;  %v4616_v57 = vpop.xlane.xlu1 %4615  ;;  %4684 = vadd.xlane.f32.xlu1 %v4683_v62 }
 0x8de   :  { %v4636_v56 = vsub.f32 %v10932_v51, %v4616_v57  ;;  %v4598_v30 = vpop.xlane.xlu0 %4597 }
 0x8df   :  { %9384 = vpow2.f32 %v4643_v27  ;;  %v4630_v58 = vsub.f32 %v10935_v45, %v4598_v30 }
 0x8e0   :  { %v4665_v21 = vmul.f32 1.442695, %v4636_v56 }
 0x8e1   :  { %v4653_v20 = vmul.f32 1.442695, %v4630_v58 }
 0x8e2   :  { %9386 = vpow2.f32 %v4665_v21  ;;  %v4595_v55 = vpop.xlane.xlu0 %4594 }
 0x8e3   :  { %v11019_v15 = vpop.eup %9378  ;;  %9388 = vpow2.f32 %v4653_v20  ;;  %v4629_v24 = vsub.f32 %v10940_v60, %v4595_v55 }
 0x8e4   :  { %v4698_v47 = vsel %vm1261_vm3, %v11019_v15, 0.0 }
 0x8e5   :  { %v11024_v12 = vpop.eup %9380  ;;  %v4651_v19 = vmul.f32 1.442695, %v4629_v24  ;;  %4699 = vadd.xlane.f32.xlu1 %v4698_v47 }
 0x8e6   :  { %v4610_v51 = vpop.xlane.xlu1 %4609  ;;  %v4613_v17 = vpop.xlane.xlu0 %4612  ;;  %v4680_v45 = vsel %vm1261_vm3, %v11024_v12, 0.0 }
 0x8e7   :  { %v11028_v49 = vpop.eup %9382  ;;  %9390 = vpow2.f32 %v4651_v19  ;;  %v4634_v62 = vsub.f32 %v10950_v41, %v4610_v51  ;;  %v4635_v27 = vsub.f32 %v10945_v52, %v4613_v17  ;;  %4681 = vadd.xlane.f32.xlu0 %v4680_v45 }
 0x8e8   :  { %v4695_v60 = vsel %vm1261_vm3, %v11028_v49, 0.0 }
 0x8e9   :  { %v11034_v57 = vpop.eup %9384  ;;  %v4661_v56 = vmul.f32 1.442695, %v4634_v62  ;;  %v4663_v30 = vmul.f32 1.442695, %v4635_v27  ;;  %4696 = vadd.xlane.f32.xlu1 %v4695_v60 }
 0x8ea   :  { %v4607_v58 = vpop.xlane.xlu0 %4606  ;;  %v4677_v21 = vsel %vm1261_vm3, %v11034_v57, 0.0 }
 0x8eb   :  { %9392 = vpow2.f32 %v4661_v56  ;;  %v4633_v20 = vsub.f32 %v10953_v37, %v4607_v58  ;;  %4678 = vadd.xlane.f32.xlu0 %v4677_v21  ;;  %v11071_v56 = vpop.permute.xlu1 %9136 }
 0x8ec   :  { %v11039_v41 = vpop.eup %9386  ;;  %9394 = vpow2.f32 %v4663_v30 }
 0x8ed   :  { %v11041_v52 = vpop.eup %9388  ;;  %v4659_v55 = vmul.f32 1.442695, %v4633_v20  ;;  %v4710_v24 = vsel %vm1261_vm3, %v11039_v41, 0.0 }
 0x8ee   :  { %4711 = vadd.xlane.f32.xlu1 %v4710_v24  ;;  %v4692_v47 = vsel %vm1261_vm3, %v11041_v52, 0.0  ;;  %v11075_v30 = vpop.permute.xlu0 %9141 }
 0x8ef   :  { %9396 = vpow2.f32 %v4659_v55  ;;  %4693 = vadd.xlane.f32.xlu0 %v4692_v47 }
 0x8f1   :  { %v11047_v19 = vpop.eup %9390 }
 0x8f2   :  { %v4689_v37 = vsel %vm1261_vm3, %v11047_v19, 0.0 }
 0x8f3   :  { %4690 = vadd.xlane.f32.xlu0 %v4689_v37  ;;  %v9114_v37 = vunpack.i.h.bf16 %v10975_v5 }
 0x8f5   :  { %v11051_v51 = vpop.eup %9392 }
 0x8f6   :  { %v11053_v17 = vpop.eup %9394  ;;  %v4704_v45 = vsel %vm1261_vm3, %v11051_v51, 0.0 }
 0x8f7   :  { %4705 = vadd.xlane.f32.xlu1 %v4704_v45  ;;  %v4707_v62 = vsel %vm1261_vm3, %v11053_v17, 0.0  ;;  %v9113_v45 = vunpack.i.l.bf16 %v10975_v5 }
 0x8f8   :  { %4708 = vadd.xlane.f32.xlu0 %v4707_v62 }
 0x8f9   :  { %v11059_v27 = vpop.eup %9396 }
 0x8fa   :  { %v4701_v60 = vsel %vm1261_vm3, %v11059_v27, 0.0 }
 0x8fc   :  { %4702 = vadd.xlane.f32.xlu0 %v4701_v60 }
 0x908   :  { %5629 = vrot.lane.b32.xlu1 %v9984_v63, %s9531_s27 }
 0x90c   :  { %5718 = vrot.lane.b32.xlu1 %v9987_v2, %s9531_s27 }
 0x910   :  { %9156 = vrot.lane.b32.xlu1 %v9919_v40, %s9530_s23 }
 0x914   :  { %5811 = vrot.lane.b32.xlu1 %v10030_v39, %s9531_s27 }
 0x918   :  { %5900 = vrot.lane.b32.xlu1 %v9907_v32, %s9531_s27 }
 0x91b   :  { %v4622_v58 = vpop.xlane.xlu1 %4621 }
 0x91c   :  { %v4638_v21 = vsub.f32 %v10966_v6, %v4622_v58  ;;  %9166 = vrot.lane.b32.xlu1 %v9939_v36, %s9530_s23  ;;  %v8766_v58 = vpack.c.bf16 %v9114_v37, %v9113_v45  ;;  %v11819_v45 = vld [vmem:[#allocation11_spill] sm:$0xff] }
 0x91e   :  { %v4669_v63 = vmul.f32 1.442695, %v4638_v21  ;;  %v9124_v21 = vunpack.i.h.bf16 %v10983_v44 }
 0x91f   :  { %v4619_v2 = vpop.xlane.xlu0 %4618 }
 0x920   :  { %9398 = vpow2.f32 %v4669_v63  ;;  %v4637_v20 = vsub.f32 %v10969_v23, %v4619_v2  ;;  %5993 = vrot.lane.b32.xlu1 %v10054_v28, %s9531_s27  ;;  %v9123_v63 = vunpack.i.l.bf16 %v10983_v44  ;;  %v11818_v2 = vld [vmem:[#allocation10_spill] sm:$0xff] }
 0x922   :  { %v4667_v39 = vmul.f32 1.442695, %v4637_v20  ;;  %v3064_v20 = vadd.f32 %v10722_v48, %v11818_v2  ;;  %v8774_v44 = vpack.c.bf16 %v9124_v21, %v9123_v63  ;;  %v9129_v63 = vunpack.i.h.bf16 %v10987_v4 }
 0x923   :  { %v9128_v2 = vunpack.i.l.bf16 %v10987_v4  ;;  %v9143_v4 = vunpack.i.l.bf16 %v11075_v30 }
 0x924   :  { %9400 = vpow2.f32 %v4667_v39  ;;  %6084 = vrot.lane.b32.xlu1 %v10033_v43, %s9531_s27  ;;  %v11101_v43 = vpop.permute.xlu1 %5536 }
 0x928   :  { %6175 = vrot.lane.b32.xlu1 %v10070_v33, %s9531_s27  ;;  %v11103_v33 = vpop.permute.xlu0 %5538 }
 0x92a   :  { %v11087_v32 = vpop.eup %9398 }
 0x92b   :  { %v4716_v6 = vsel %vm1261_vm3, %v11087_v32, 0.0 }
 0x92c   :  { %9176 = vrot.lane.b32.xlu1 %v9878_v8, %s9532_s28  ;;  %4717 = vadd.xlane.f32.xlu0 %v4716_v6  ;;  %v11107_v8 = vpop.permute.xlu1 %9146  ;;  %v11111_v55 = vpop.permute.xlu0 %5627 }
 0x92e   :  { %v11093_v23 = vpop.eup %9400 }
 0x92f   :  { %v4713_v28 = vsel %vm1261_vm3, %v11093_v23, 0.0 }
 0x930   :  { %4714 = vadd.xlane.f32.xlu0 %v4713_v28 }
 0x946   :  { %9151 = vrot.lane.b32.xlu0 %v9905_v0, %s9530_s23 }
 0x94a   :  { %5720 = vrot.lane.b32.xlu0 %v10002_v13, %s9531_s27 }
 0x94e   :  { %5809 = vrot.lane.b32.xlu0 %v10012_v22, %s9531_s27 }
 0x952   :  { %9161 = vrot.lane.b32.xlu0 %v9929_v46, %s9530_s23 }
 0x954   :  { %v4676_v24 = vpop.xlane.xlu1 %4675 }
 0x955   :  { %9402 = vrcp.f32 %v4676_v24 }
 0x956   :  { %5902 = vrot.lane.b32.xlu0 %v10005_v18, %s9531_s27  ;;  %v3062_v18 = vadd.f32 %v10706_v3, %v10296_v14 }
 0x958   :  { %v4673_v13 = vpop.xlane.xlu0 %4672 }
 0x959   :  { %9404 = vrcp.f32 %v4673_v13 }
 0x95a   :  { %5991 = vrot.lane.b32.xlu0 %v10038_v50, %s9531_s27  ;;  %v11817_v50 = vld [vmem:[#allocation6_spill] sm:$0xff] }
 0x95e   :  { %6082 = vrot.lane.b32.xlu0 %v10019_v9, %s9531_s27 }
 0x95f   :  { %v9403_v22 = vpop.eup %9402 }
 0x960   :  { %v4722_v60 = vmul.f32 %v9403_v22, %v10995_v54 }
 0x962   :  { %6173 = vrot.lane.b32.xlu0 %v10059_v53, %s9531_s27 }
 0x963   :  { %v9405_v47 = vpop.eup %9404 }
 0x964   :  { %v4720_v62 = vmul.f32 %v9405_v47, %v10999_v10  ;;  %v9134_v47 = vunpack.i.h.bf16 %v10991_v29 }
 0x966   :  { %9171 = vrot.lane.b32.xlu0 %v11817_v50, %s9532_s28  ;;  %v11129_v9 = vadd.f32 %v4720_v62, %v3062_v18  ;;  %8338 = vmatprep.mubr.msk.f32.mxu0 %vm1261_vm3, %v4720_v62  ;;  %v4688_v53 = vpop.xlane.xlu1 %4687  ;;  %v3066_v18 = vadd.f32 %v10731_v26, %v11819_v45  ;;  %v9138_v45 = vunpack.i.l.bf16 %v11071_v56 }
 0x967   :  { %8339 = vmatmul.mubr.msk.f32.vlgmr.msra.gmra.mrb[44].mxu0 %vm1261_vm3, %v4722_v60  ;;  %9406 = vrcp.f32 %v4688_v53  ;;  %v9119_v53 = vunpack.i.h.bf16 %v10981_v31 }
 0x968   :  { %8761 = vmatpush3.bf16.msra.mxu0 %v10830_v42 }
 0x969   :  { %8767 = vmatprep.subr.bf16.mxu0 %v8766_v58 }
 0x96a   :  { %v4685_v14 = vpop.xlane.xlu1 %4684 }
 0x96b   :  { %9408 = vrcp.f32 %v4685_v14 }
 0x971   :  { %v9407_v10 = vpop.eup %9406 }
 0x972   :  { %v4700_v3 = vpop.xlane.xlu1 %4699  ;;  %v4730_v42 = vmul.f32 %v9407_v10, %v11006_v61  ;;  %v9133_v61 = vunpack.i.l.bf16 %v10991_v29 }
 0x973   :  { %9410 = vrcp.f32 %v4700_v3  ;;  %v11820_v3 = vld [vmem:[#allocation9_spill] sm:$0xff] }
 0x974   :  { %v4682_v54 = vpop.xlane.xlu0 %4681  ;;  %v3063_v10 = vadd.f32 %v10740_v7, %v11820_v3  ;;  %v8782_v26 = vpack.c.bf16 %v9134_v47, %v9133_v61 }
 0x975   :  { %v9409_v5 = vpop.eup %9408 }
 0x976   :  { %v4697_v39 = vpop.xlane.xlu1 %4696  ;;  %v4728_v6 = vmul.f32 %v9409_v5, %v11011_v59 }
 0x977   :  { %9412 = vrcp.f32 %v4697_v39 }
 0x978   :  { %9414 = vrcp.f32 %v4682_v54  ;;  %v4679_v28 = vpop.xlane.xlu0 %4678  ;;  %v11140_v24 = vadd.f32 %v4728_v6, %v3064_v20  ;;  %8352 = vmatprep.mubr.msk.f32.mxu0 %vm1261_vm3, %v4728_v6  ;;  %v11821_v20 = vld [vmem:[#allocation13_spill] sm:$0xff] }
 0x979   :  { %9416 = vrcp.f32 %v4679_v28  ;;  %8353 = vmatmul.mubr.msk.f32.vlgmr.msra.gmra.mrb[46].mxu0 %vm1261_vm3, %v4730_v42  ;;  %v3065_v39 = vadd.f32 %v10752_v1, %v11821_v20 }
 0x97a   :  { %8769 = vmatpush3.bf16.msra.mxu0 %v8766_v58  ;;  %v9118_v58 = vunpack.i.l.bf16 %v10981_v31 }
 0x97b   :  { %8775 = vmatprep.subr.bf16.mxu0 %v8774_v44  ;;  %v4712_v62 = vpop.xlane.xlu1 %4711 }
 0x97c   :  { %v4694_v48 = vpop.xlane.xlu0 %4693  ;;  %v8770_v7 = vpack.c.bf16 %v9119_v53, %v9118_v58 }
 0x97d   :  { %v9411_v13 = vpop.eup %9410  ;;  %9418 = vrcp.f32 %v4694_v48 }
 0x97e   :  { %v4738_v14 = vmul.f32 %v9411_v13, %v11019_v15  ;;  %v9144_v13 = vunpack.i.h.bf16 %v11075_v30 }
 0x980   :  { %v4691_v22 = vpop.xlane.xlu0 %4690  ;;  %v8794_v30 = vpack.c.bf16 %v9144_v13, %v9143_v4 }
 0x981   :  { %v9413_v59 = vpop.eup %9412  ;;  %9420 = vrcp.f32 %v4691_v22  ;;  %v11822_v22 = vld [vmem:[#allocation12_spill] sm:$0xff] }
 0x982   :  { %v9415_v37 = vpop.eup %9414  ;;  %v4736_v60 = vmul.f32 %v9413_v59, %v11028_v49  ;;  %9422 = vrcp.f32 %v4712_v62  ;;  %v3068_v1 = vadd.f32 %v10761_v25, %v11822_v22 }
 0x983   :  { %v9417_v50 = vpop.eup %9416  ;;  %v4726_v49 = vmul.f32 %v9415_v37, %v11024_v12  ;;  %v9139_v37 = vunpack.i.h.bf16 %v11071_v56 }
 0x984   :  { %v11154_v54 = vadd.f32 %v4736_v60, %v3066_v18  ;;  %8366 = vmatprep.mubr.msk.f32.mxu0 %vm1261_vm3, %v4736_v60  ;;  %v4724_v29 = vmul.f32 %v9417_v50, %v11034_v57  ;;  %v4706_v21 = vpop.xlane.xlu1 %4705  ;;  %v11823_v18 = vld [vmem:[#allocation14_spill] sm:$0xff] }
 0x985   :  { %v4709_v5 = vpop.xlane.xlu0 %4708  ;;  %8367 = vmatmul.mubr.msk.f32.vlgmr.msra.gmra.mrb[48].mxu0 %vm1261_vm3, %v4738_v14  ;;  %v3067_v25 = vadd.f32 %v10774_v38, %v11823_v18  ;;  %v8788_v60 = vpack.c.bf16 %v9139_v37, %v9138_v45 }
 0x986   :  { %9424 = vrcp.f32 %v4709_v5  ;;  %v11160_v31 = vadd.f32 %v4724_v29, %v3063_v10  ;;  %8345 = vmatprep.mubr.msk.f32.mxu1 %vm1261_vm3, %v4724_v29  ;;  %8777 = vmatpush3.bf16.msra.mxu0 %v8774_v44  ;;  %v8778_v44 = vpack.c.bf16 %v9129_v63, %v9128_v2 }
 0x987   :  { %8346 = vmatmul.mubr.msk.f32.vlgmr.msra.gmra.mrb[52].mxu1 %vm1261_vm3, %v4726_v49  ;;  %8784 = vmatprep.subr.msk.bf16.mxu0 %vm9959_vm2, %v8782_v26  ;;  %9426 = vrcp.f32 %v4706_v21  ;;  %v9419_v57 = vpop.eup %9418  ;;  %v9149_v49 = vunpack.i.h.bf16 %v11107_v8  ;;  %v9148_v21 = vunpack.i.l.bf16 %v11107_v8 }
 0x988   :  { %8765 = vmatpush3.bf16.msra.mxu1 %v10846_v34  ;;  %v4734_v42 = vmul.f32 %v9419_v57, %v11041_v52 }
 0x989   :  { %8771 = vmatprep.subr.bf16.mxu1 %v8770_v7  ;;  %v4703_v15 = vpop.xlane.xlu0 %4702 }
 0x98a   :  { %9428 = vrcp.f32 %v4703_v15 }
 0x98b   :  { %v9421_v12 = vpop.eup %9420 }
 0x98c   :  { %v4732_v6 = vmul.f32 %v9421_v12, %v11047_v19  ;;  %v9423_v34 = vpop.eup %9422 }
 0x98d   :  { %v4746_v19 = vmul.f32 %v9423_v34, %v11039_v41 }
 0x98e   :  { %v11173_v28 = vadd.f32 %v4732_v6, %v3065_v39  ;;  %8359 = vmatprep.mubr.msk.f32.mxu1 %vm1261_vm3, %v4732_v6  ;;  %v8800_v39 = vpack.c.bf16 %v9149_v49, %v9148_v21 }
 0x98f   :  { %8360 = vmatmul.mubr.msk.f32.vlgmr.msra.gmra.mrb[54].mxu1 %vm1261_vm3, %v4734_v42 }
 0x990   :  { %v9425_v48 = vpop.eup %9424  ;;  %8773 = vmatpush3.bf16.msra.mxu1 %v8770_v7  ;;  %v11824_v7 = vld [vmem:[#allocation15_spill] sm:$0xff] }
 0x991   :  { %8779 = vmatprep.subr.bf16.mxu1 %v8778_v44  ;;  %v4744_v52 = vmul.f32 %v9425_v48, %v11053_v17  ;;  %v9427_v59 = vpop.eup %9426  ;;  %v5630_v17 = vpop.permute.xlu1 %5629  ;;  %v3069_v15 = vadd.f32 %v10805_v35, %v11824_v7 }
 0x992   :  { %v4742_v56 = vmul.f32 %v9427_v59, %v11051_v51 }
 0x993   :  { %v11183_v47 = vadd.f32 %v4744_v52, %v3068_v1  ;;  %8380 = vmatprep.mubr.msk.f32.mxu0 %vm1261_vm3, %v4744_v52 }
 0x994   :  { %v9429_v61 = vpop.eup %9428  ;;  %8381 = vmatmul.mubr.msk.f32.vlgmr.msra.gmra.mrb[50].mxu0 %vm1261_vm3, %v4746_v19 }
 0x995   :  { %8787 = vmatpush3.bf16.xpose.msk.msra.mxu0 %vm9959_vm2, %v8782_v26  ;;  %8394 = vmatprep.mubr.msk.f32.mxu0 %vm538_vm1, %v11101_v43  ;;  %v4740_v41 = vmul.f32 %v9429_v61, %v11059_v27  ;;  %v5719_v38 = vpop.permute.xlu1 %5718 }
 0x996   :  { %8796 = vmatprep.subr.msk.bf16.mxu0 %vm9959_vm2, %v8794_v30 }
 0x997   :  { %v11199_v62 = vadd.f32 %v4740_v41, %v3067_v25  ;;  %8373 = vmatprep.mubr.msk.f32.mxu1 %vm1261_vm3, %v4740_v41 }
 0x998   :  { %8374 = vmatmul.mubr.msk.f32.vlgmr.msra.gmra.mrb[56].mxu1 %vm1261_vm3, %v4742_v56 }
 0x999   :  { %8781 = vmatpush3.bf16.msra.mxu1 %v8778_v44  ;;  %v9157_v51 = vpop.permute.xlu1 %9156 }
 0x99a   :  { %8790 = vmatprep.subr.msk.bf16.mxu1 %vm9959_vm2, %v8788_v60  ;;  %v9159_v8 = vunpack.i.h.bf16 %v9157_v51  ;;  %v9158_v6 = vunpack.i.l.bf16 %v9157_v51 }
 0x99c   :  { %8395 = vmatmul.mubr.msk.f32.vlgmr.msra.gmra.mrb[52].mxu0 %vm538_vm1, %v11103_v33 }
 0x99d   :  { %8799 = vmatpush3.bf16.xpose.msk.msra.mxu0 %vm9959_vm2, %v8794_v30  ;;  %8408 = vmatprep.mubr.msk.f32.mxu0 %vm538_vm1, %v5719_v38  ;;  %v5812_v27 = vpop.permute.xlu1 %5811 }
 0x9a1   :  { %v5901_v53 = vpop.permute.xlu1 %5900 }
 0x9a5   :  { %v9167_v29 = vpop.permute.xlu1 %9166 }
 0x9a6   :  { %v9169_v4 = vunpack.i.h.bf16 %v9167_v29  ;;  %v9168_v22 = vunpack.i.l.bf16 %v9167_v29  ;;  %v11287_v29 = vld [vmem:[%s11768_s1 + $0x38] sm:$0xff] }
 0x9a8   :  { %v8824_v52 = vpack.c.bf16 %v9169_v4, %v9168_v22 }
 0x9a9   :  { %v5994_v2 = vpop.permute.xlu1 %5993 }
 0x9ad   :  { %v6085_v34 = vpop.permute.xlu1 %6084 }
 0x9b1   :  { %v6176_v13 = vpop.permute.xlu1 %6175 }
 0x9b5   :  { %v9177_v19 = vpop.permute.xlu1 %9176 }
 0x9b6   :  { %v9179_v61 = vunpack.i.h.bf16 %v9177_v19  ;;  %v9178_v37 = vunpack.i.l.bf16 %v9177_v19 }
 0x9b8   :  { %v8834_v25 = vpack.c.bf16 %v9179_v61, %v9178_v37 }
 0x9b9   :  { %v4718_v43 = vpop.xlane.xlu0 %4717 }
 0x9ba   :  { %9430 = vrcp.f32 %v4718_v43 }
 0x9bd   :  { %v4715_v50 = vpop.xlane.xlu0 %4714 }
 0x9be   :  { %9432 = vrcp.f32 %v4715_v50 }
 0x9c1   :  { %v9152_v58 = vpop.permute.xlu0 %9151 }
 0x9c2   :  { %v9154_v14 = vunpack.i.h.bf16 %v9152_v58  ;;  %v9153_v3 = vunpack.i.l.bf16 %v9152_v58 }
 0x9c4   :  { %v8806_v10 = vpack.c.bf16 %v9154_v14, %v9153_v3  ;;  %v9431_v33 = vpop.eup %9430 }
 0x9c5   :  { %v5721_v26 = vpop.permute.xlu0 %5720  ;;  %v4750_v63 = vmul.f32 %v9431_v33, %v11087_v32 }
 0x9c6   :  { %8409 = vmatmul.mubr.msk.f32.vlgmr.msra.gmra.mrb[54].mxu0 %vm538_vm1, %v5721_v26  ;;  %8808 = vmatprep.subr.msk.bf16.mxu0 %vm9959_vm2, %v8806_v10  ;;  %v11292_v26 = vld [vmem:[%s11768_s1 + $0x30] sm:$0xff]  ;;  %s9533_s1 = smov 8  }
 0x9c7   :  { %8811 = vmatpush3.bf16.xpose.msk.msra.mxu0 %vm9959_vm2, %v8806_v10  ;;  %8422 = vmatprep.mubr.msk.f32.mxu0 %vm538_vm1, %v5901_v53 }
 0x9c8   :  { %v9433_v5 = vpop.eup %9432 }
 0x9c9   :  { %v5810_v57 = vpop.permute.xlu0 %5809  ;;  %v4748_v12 = vmul.f32 %v9433_v5, %v11093_v23 }
 0x9cb   :  { %v11222_v20 = vadd.f32 %v4748_v12, %v3069_v15  ;;  %8387 = vmatprep.mubr.msk.f32.mxu1 %vm1261_vm3, %v4748_v12 }
 0x9cc   :  { %8388 = vmatmul.mubr.msk.f32.vlgmr.msra.gmra.mrb[58].mxu1 %vm1261_vm3, %v4750_v63 }
 0x9cd   :  { %8793 = vmatpush3.bf16.xpose.msk.msra.mxu1 %vm9959_vm2, %v8788_v60  ;;  %8401 = vmatprep.mubr.msk.f32.mxu1 %vm538_vm1, %v11111_v55  ;;  %v9162_v35 = vpop.permute.xlu0 %9161  ;;  %v8812_v55 = vpack.c.bf16 %v9159_v8, %v9158_v6 }
 0x9ce   :  { %8802 = vmatprep.subr.msk.bf16.mxu1 %vm9959_vm2, %v8800_v39  ;;  %v9164_v23 = vunpack.i.h.bf16 %v9162_v35  ;;  %v9163_v32 = vunpack.i.l.bf16 %v9162_v35 }
 0x9d0   :  { %v8818_v42 = vpack.c.bf16 %v9164_v23, %v9163_v32 }
 0x9d1   :  { %v5903_v44 = vpop.permute.xlu0 %5902 }
 0x9d2   :  { %8423 = vmatmul.mubr.msk.f32.vlgmr.msra.gmra.mrb[56].mxu0 %vm538_vm1, %v5903_v44  ;;  %8820 = vmatprep.subr.msk.bf16.mxu0 %vm9959_vm2, %v8818_v42 }
 0x9d3   :  { %8823 = vmatpush3.bf16.xpose.msk.msra.mxu0 %vm9959_vm2, %v8818_v42 }
 0x9d4   :  { %8402 = vmatmul.mubr.msk.f32.vlgmr.msra.gmra.mrb[60].mxu1 %vm538_vm1, %v5630_v17 }
 0x9d5   :  { %8805 = vmatpush3.bf16.xpose.msk.msra.mxu1 %vm9959_vm2, %v8800_v39  ;;  %8415 = vmatprep.mubr.msk.f32.mxu1 %vm538_vm1, %v5810_v57  ;;  %v5992_v48 = vpop.permute.xlu0 %5991 }
 0x9d6   :  { %8814 = vmatprep.subr.msk.bf16.mxu1 %vm9959_vm2, %v8812_v55 }
 0x9d9   :  { %v6083_v1 = vpop.permute.xlu0 %6082 }
 0x9da   :  { %8436 = vmatprep.mubr.msk.f32.mxu0 %vm538_vm1, %v6083_v1 }
 0x9db   :  { %8437 = vmatmul.mubr.msk.f32.vlgmr.msra.gmra.mrb[58].mxu0 %vm538_vm1, %v6085_v34 }
 0x9dc   :  { %8416 = vmatmul.mubr.msk.f32.vlgmr.msra.gmra.mrb[62].mxu1 %vm538_vm1, %v5812_v27 }
 0x9dd   :  { %8817 = vmatpush3.bf16.xpose.msk.msra.mxu1 %vm9959_vm2, %v8812_v55  ;;  %8429 = vmatprep.mubr.msk.f32.mxu1 %vm538_vm1, %v5992_v48  ;;  %v6174_v59 = vpop.permute.xlu0 %6173 }
 0x9de   :  { %8826 = vmatprep.subr.msk.bf16.mxu1 %vm9959_vm2, %v8824_v52 }
 0x9e1   :  { %v9172_v45 = vpop.permute.xlu0 %9171 }
 0x9e2   :  { %v9174_v30 = vunpack.i.h.bf16 %v9172_v45  ;;  %v9173_v18 = vunpack.i.l.bf16 %v9172_v45 }
 0x9e4   :  { %v8830_v41 = vpack.c.bf16 %v9174_v30, %v9173_v18  ;;  %8430 = vmatmul.mubr.msk.f32.vlgmr.msra.gmra.mrb[64].mxu1 %vm538_vm1, %v5994_v2 }
 0x9e5   :  { %8829 = vmatpush3.bf16.xpose.msk.msra.mxu1 %vm9959_vm2, %v8824_v52  ;;  %8443 = vmatprep.mubr.msk.f32.mxu1 %vm538_vm1, %v6174_v59 }
 0x9e6   :  { %8835 = vmatprep.subr.bf16.mxu1 %v8834_v25  ;;  %8831 = vmatprep.subr.bf16.mxu0 %v8830_v41 }
 0x9e7   :  { %8833 = vmatpush3.bf16.msra.mxu0 %v8830_v41 }
 0x9ec   :  { %8444 = vmatmul.mubr.msk.f32.vlgmr.msra.gmra.mrb[66].mxu1 %vm538_vm1, %v6176_v13 }
 0x9ed   :  { %8837 = vmatpush3.bf16.msra.mxu1 %v8834_v25 }
 0xa3a   :  { %v11256_v17 = vpop.f32.mrb[44].mxu0 }
 0xa3b   :  { %v11258_v56 = vpop.f32.mrb[45].mxu0 }
 0xa4c   :  { %v11260_v60 = vpop.f32.mrb[46].mxu0 }
 0xa4d   :  { %v11262_v38 = vpop.f32.mrb[47].mxu0 }
 0xa58   :  { %v11264_v51 = vpop.f32.mrb[48].mxu0 }
 0xa59   :  { %v11266_v11 = vpop.f32.mrb[49].mxu0 }
 0xa5a   :  { %v11268_v27 = vpop.f32.mrb[52].mxu1 }
 0xa5b   :  { %v11270_v43 = vpop.f32.mrb[53].mxu1 }
 0xa62   :  { %v11272_v50 = vpop.f32.mrb[54].mxu1 }
 0xa63   :  { %v11274_v53 = vpop.f32.mrb[55].mxu1 }
 0xa67   :  { %v11276_v58 = vpop.f32.mrb[50].mxu0 }
 0xa68   :  { %v11278_v14 = vpop.f32.mrb[51].mxu0 }
 0xa6b   :  { %v11280_v3 = vpop.f32.mrb[56].mxu1 }
 0xa6c   :  { %v11282_v10 = vpop.f32.mrb[57].mxu1 }
 0xa6f   :  { %v8396_v33 = vpop.f32.mrb[52].mxu0 }
 0xa70   :  { %v11295_v5 = vadd.f32 %v8396_v33, %v11287_v29  ;;  %v5618_v49 = vpop.f32.mrb[53].mxu0 }
 0xa71   :  { %v11298_v21 = vadd.f32 %v5618_v49, %v11292_v26 }
 0xa72   :  { %v6267_v7 = vsel %vm1261_vm3, %v11295_v5, -inf }
 0xa73   :  { %6268 = vmax.xlane.f32.xlu1 %v6267_v7  ;;  %v6264_v15 = vsel %vm1261_vm3, %v11298_v21, -inf }
 0xa74   :  { %6265 = vmax.xlane.f32.xlu0 %v6264_v15 }
 0xa99   :  { %v8410_v57 = vpop.f32.mrb[54].mxu0 }
 0xa9a   :  { %v11305_v12 = vadd.f32 %v8410_v57, %v11287_v29  ;;  %v5800_v63 = vpop.f32.mrb[55].mxu0 }
 0xa9b   :  { %v11308_v2 = vadd.f32 %v5800_v63, %v11292_v26 }
 0xa9c   :  { %v6279_v39 = vsel %vm1261_vm3, %v11305_v12, -inf }
 0xa9d   :  { %6280 = vmax.xlane.f32.xlu1 %v6279_v39  ;;  %v6276_v35 = vsel %vm1261_vm3, %v11308_v2, -inf }
 0xa9e   :  { %6277 = vmax.xlane.f32.xlu0 %v6276_v35 }
 0xa9f   :  { %v11314_v23 = vpop.f32.mrb[58].mxu1 }
 0xaa0   :  { %v11316_v32 = vpop.f32.mrb[59].mxu1 }
 0xaa5   :  { %v8424_v8 = vpop.f32.mrb[56].mxu0 }
 0xaa6   :  { %v11319_v6 = vadd.f32 %v8424_v8, %v11287_v29  ;;  %v5982_v42 = vpop.f32.mrb[57].mxu0 }
 0xaa7   :  { %v8403_v34 = vpop.f32.mrb[60].mxu1  ;;  %v11332_v22 = vadd.f32 %v5982_v42, %v11292_v26 }
 0xaa8   :  { %v11322_v44 = vadd.f32 %v8403_v34, %v11287_v29  ;;  %v5709_v55 = vpop.f32.mrb[61].mxu1  ;;  %v6291_v48 = vsel %vm1261_vm3, %v11319_v6, -inf }
 0xaa9   :  { %6292 = vmax.xlane.f32.xlu1 %v6291_v48  ;;  %v11327_v13 = vadd.f32 %v5709_v55, %v11292_v26  ;;  %v6288_v25 = vsel %vm1261_vm3, %v11332_v22, -inf  ;;  %v11825_v55 = vld [vmem:[#allocation7_spill] sm:$0xff] }
 0xaaa   :  { %v6273_v4 = vsel %vm1261_vm3, %v11322_v44, -inf }
 0xaab   :  { %6274 = vmax.xlane.f32.xlu0 %v6273_v4  ;;  %v6270_v52 = vsel %vm1261_vm3, %v11327_v13, -inf }
 0xaae   :  { %v8438_v1 = vpop.f32.mrb[58].mxu0 }
 0xaaf   :  { %v8417_v19 = vpop.f32.mrb[62].mxu1  ;;  %6271 = vmax.xlane.f32.xlu0 %v6270_v52  ;;  %v6164_v59 = vpop.f32.mrb[59].mxu0  ;;  %v11340_v45 = vadd.f32 %v8438_v1, %v11287_v29 }
 0xab0   :  { %v11337_v61 = vadd.f32 %v8417_v19, %v11287_v29  ;;  %v5891_v37 = vpop.f32.mrb[63].mxu1  ;;  %v11350_v41 = vadd.f32 %v6164_v59, %v11292_v26 }
 0xab1   :  { %v11343_v30 = vadd.f32 %v5891_v37, %v11292_v26  ;;  %v6303_v33 = vsel %vm1261_vm3, %v11340_v45, -inf }
 0xab2   :  { %v6285_v18 = vsel %vm1261_vm3, %v11337_v61, -inf  ;;  %v6300_v35 = vsel %vm1261_vm3, %v11350_v41, -inf }
 0xab3   :  { %6286 = vmax.xlane.f32.xlu1 %v6285_v18  ;;  %6289 = vmax.xlane.f32.xlu0 %v6288_v25  ;;  %v6282_v49 = vsel %vm1261_vm3, %v11343_v30, -inf }
 0xab7   :  { %v8431_v7 = vpop.f32.mrb[64].mxu1  ;;  %6304 = vmax.xlane.f32.xlu1 %v6303_v33  ;;  %6283 = vmax.xlane.f32.xlu0 %v6282_v49 }
 0xab8   :  { %v11357_v15 = vadd.f32 %v8431_v7, %v11287_v29  ;;  %v6073_v57 = vpop.f32.mrb[65].mxu1 }
 0xab9   :  { %v11360_v63 = vadd.f32 %v6073_v57, %v11292_v26 }
 0xaba   :  { %v6297_v39 = vsel %vm1261_vm3, %v11357_v15, -inf }
 0xabb   :  { %6298 = vmax.xlane.f32.xlu1 %v6297_v39  ;;  %6301 = vmax.xlane.f32.xlu0 %v6300_v35  ;;  %v6294_v8 = vsel %vm1261_vm3, %v11360_v63, -inf }
 0xabf   :  { %v8445_v42 = vpop.f32.mrb[66].mxu1  ;;  %6295 = vmax.xlane.f32.xlu0 %v6294_v8 }
 0xac0   :  { %v6255_v34 = vpop.f32.mrb[67].mxu1  ;;  %v11373_v48 = vadd.f32 %v8445_v42, %v11287_v29 }
 0xac1   :  { %v11376_v4 = vadd.f32 %v6255_v34, %v11292_v26 }
 0xac2   :  { %v6309_v1 = vsel %vm1261_vm3, %v11373_v48, -inf }
 0xac3   :  { %v6306_v52 = vsel %vm1261_vm3, %v11376_v4, -inf }
 0xacc   :  { %9186 = vrot.lane.b32.xlu1 %v9898_v16, %s9532_s28 }
 0xad5   :  { %9181 = vrot.lane.b32.xlu0 %v11825_v55, %s9532_s28 }
 0xaf0   :  { %6310 = vmax.xlane.f32.xlu1 %v6309_v1 }
 0xaf4   :  { %6307 = vmax.xlane.f32.xlu0 %v6306_v52 }
 0xb00   :  { %v6269_v16 = vpop.xlane.xlu1 %6268 }
 0xb01   :  { %9196 = vrot.lane.b32.xlu1 %v9919_v40, %s9532_s28  ;;  %v6313_v29 = vsub.f32 %v11295_v5, %v6269_v16  ;;  %v6266_v19 = vpop.xlane.xlu0 %6265 }
 0xb02   :  { %v6312_v59 = vsub.f32 %v11298_v21, %v6266_v19 }
 0xb03   :  { %v6330_v26 = vmul.f32 1.442695, %v6313_v29 }
 0xb04   :  { %v6328_v37 = vmul.f32 1.442695, %v6312_v59 }
 0xb05   :  { %9434 = vpow2.f32 %v6330_v26 }
 0xb06   :  { %9436 = vpow2.f32 %v6328_v37 }
 0xb0a   :  { %9191 = vrot.lane.b32.xlu0 %v9905_v0, %s9532_s28 }
 0xb0f   :  { %v11388_v18 = vpop.eup %9434 }
 0xb10   :  { %v6363_v25 = vsel %vm1261_vm3, %v11388_v18, 0.0  ;;  %v11392_v33 = vpop.eup %9436 }
 0xb11   :  { %v6360_v0 = vsel %vm1261_vm3, %v11392_v33, 0.0 }
 0xb25   :  { %6364 = vadd.xlane.f32.xlu1 %v6363_v25 }
 0xb29   :  { %6361 = vadd.xlane.f32.xlu0 %v6360_v0 }
 0xb2a   :  { %v6281_v40 = vpop.xlane.xlu1 %6280 }
 0xb2b   :  { %v6317_v5 = vsub.f32 %v11305_v12, %v6281_v40  ;;  %v6278_v49 = vpop.xlane.xlu0 %6277 }
 0xb2c   :  { %v6316_v21 = vsub.f32 %v11308_v2, %v6278_v49 }
 0xb2d   :  { %v6338_v7 = vmul.f32 1.442695, %v6317_v5 }
 0xb2e   :  { %v6336_v57 = vmul.f32 1.442695, %v6316_v21 }
 0xb2f   :  { %9438 = vpow2.f32 %v6338_v7 }
 0xb30   :  { %9440 = vpow2.f32 %v6336_v57 }
 0xb36   :  { %v6293_v39 = vpop.xlane.xlu1 %6292 }
 0xb37   :  { %v6321_v35 = vsub.f32 %v11319_v6, %v6293_v39 }
 0xb38   :  { %v6275_v8 = vpop.xlane.xlu0 %6274 }
 0xb39   :  { %v11399_v42 = vpop.eup %9438  ;;  %v6315_v34 = vsub.f32 %v11322_v44, %v6275_v8  ;;  %v6346_v1 = vmul.f32 1.442695, %v6321_v35 }
 0xb3a   :  { %v11402_v55 = vpop.eup %9440  ;;  %v6375_v12 = vsel %vm1261_vm3, %v11399_v42, 0.0 }
 0xb3b   :  { %v6334_v52 = vmul.f32 1.442695, %v6315_v34  ;;  %6376 = vadd.xlane.f32.xlu1 %v6375_v12  ;;  %v6372_v2 = vsel %vm1261_vm3, %v11402_v55, 0.0 }
 0xb3c   :  { %v6272_v16 = vpop.xlane.xlu0 %6271  ;;  %6373 = vadd.xlane.f32.xlu0 %v6372_v2 }
 0xb3d   :  { %9442 = vpow2.f32 %v6334_v52  ;;  %v6314_v6 = vsub.f32 %v11327_v13, %v6272_v16 }
 0xb3e   :  { %9444 = vpow2.f32 %v6346_v1 }
 0xb3f   :  { %v6332_v29 = vmul.f32 1.442695, %v6314_v6 }
 0xb40   :  { %v6287_v19 = vpop.xlane.xlu1 %6286  ;;  %v6290_v44 = vpop.xlane.xlu0 %6289 }
 0xb41   :  { %9446 = vpow2.f32 %v6332_v29  ;;  %v6319_v26 = vsub.f32 %v11337_v61, %v6287_v19  ;;  %v6320_v59 = vsub.f32 %v11332_v22, %v6290_v44 }
 0xb43   :  { %v6342_v37 = vmul.f32 1.442695, %v6319_v26  ;;  %v6344_v25 = vmul.f32 1.442695, %v6320_v59 }
 0xb44   :  { %v6305_v0 = vpop.xlane.xlu1 %6304  ;;  %v6284_v40 = vpop.xlane.xlu0 %6283 }
 0xb45   :  { %9448 = vpow2.f32 %v6342_v37  ;;  %v6325_v5 = vsub.f32 %v11340_v45, %v6305_v0  ;;  %v6318_v49 = vsub.f32 %v11343_v30, %v6284_v40 }
 0xb46   :  { %9450 = vpow2.f32 %v6344_v25 }
 0xb47   :  { %v11413_v13 = vpop.eup %9442  ;;  %v6354_v21 = vmul.f32 1.442695, %v6325_v5  ;;  %v6340_v7 = vmul.f32 1.442695, %v6318_v49 }
 0xb48   :  { %v6299_v57 = vpop.xlane.xlu1 %6298  ;;  %v6302_v39 = vpop.xlane.xlu0 %6301  ;;  %v6369_v61 = vsel %vm1261_vm3, %v11413_v13, 0.0 }
 0xb49   :  { %v11417_v22 = vpop.eup %9444  ;;  %9452 = vpow2.f32 %v6354_v21  ;;  %v6323_v35 = vsub.f32 %v11357_v15, %v6299_v57  ;;  %v6324_v8 = vsub.f32 %v11350_v41, %v6302_v39  ;;  %6370 = vadd.xlane.f32.xlu1 %v6369_v61 }
 0xb4a   :  { %9454 = vpow2.f32 %v6340_v7  ;;  %v6387_v52 = vsel %vm1261_vm3, %v11417_v22, 0.0 }
 0xb4b   :  { %v11421_v45 = vpop.eup %9446  ;;  %v6352_v30 = vmul.f32 1.442695, %v6324_v8  ;;  %v6350_v34 = vmul.f32 1.442695, %v6323_v35 }
 0xb4c   :  { %v9187_v12 = vpop.permute.xlu1 %9186  ;;  %v6296_v1 = vpop.xlane.xlu0 %6295  ;;  %v6366_v2 = vsel %vm1261_vm3, %v11421_v45, 0.0 }
 0xb4d   :  { %v9189_v16 = vunpack.i.h.bf16 %v9187_v12  ;;  %v9188_v6 = vunpack.i.l.bf16 %v9187_v12  ;;  %v6322_v15 = vsub.f32 %v11360_v63, %v6296_v1  ;;  %6388 = vadd.xlane.f32.xlu1 %v6387_v52  ;;  %6367 = vadd.xlane.f32.xlu0 %v6366_v2  ;;  %9456 = vpow2.f32 %v6352_v30 }
 0xb4e   :  { %9458 = vpow2.f32 %v6350_v34 }
 0xb4f   :  { %v11428_v41 = vpop.eup %9448  ;;  %v11430_v29 = vpack.c.bf16 %v9189_v16, %v9188_v6  ;;  %v6348_v19 = vmul.f32 1.442695, %v6322_v15 }
 0xb50   :  { %v11432_v44 = vpop.eup %9450  ;;  %v9182_v26 = vpop.permute.xlu0 %9181  ;;  %v6381_v59 = vsel %vm1261_vm3, %v11428_v41, 0.0 }
 0xb51   :  { %9460 = vpow2.f32 %v6348_v19  ;;  %v9184_v37 = vunpack.i.h.bf16 %v9182_v26  ;;  %v9183_v25 = vunpack.i.l.bf16 %v9182_v26  ;;  %8843 = vmatprep.subr.bf16.mxu1 %v11430_v29  ;;  %6382 = vadd.xlane.f32.xlu1 %v6381_v59  ;;  %v6384_v63 = vsel %vm1261_vm3, %v11432_v44, 0.0  ;;  %v11828_v26 = vld [vmem:[#allocation16_spill] sm:$0xff] }
 0xb52   :  { %6385 = vadd.xlane.f32.xlu0 %v6384_v63 }
 0xb53   :  { %v11439_v0 = vpop.eup %9452  ;;  %v11441_v40 = vpack.c.bf16 %v9184_v37, %v9183_v25 }
 0xb54   :  { %v11443_v5 = vpop.eup %9454  ;;  %v6399_v49 = vsel %vm1261_vm3, %v11439_v0, 0.0 }
 0xb55   :  { %6400 = vadd.xlane.f32.xlu1 %v6399_v49  ;;  %v6378_v21 = vsel %vm1261_vm3, %v11443_v5, 0.0  ;;  %8839 = vmatprep.subr.bf16.mxu0 %v11441_v40 }
 0xb56   :  { %6379 = vadd.xlane.f32.xlu0 %v6378_v21 }
 0xb57   :  { %v11450_v7 = vpop.eup %9456 }
 0xb58   :  { %v6396_v57 = vsel %vm1261_vm3, %v11450_v7, 0.0  ;;  %v11454_v39 = vpop.eup %9458 }
 0xb59   :  { %6397 = vadd.xlane.f32.xlu1 %v6396_v57  ;;  %v6393_v8 = vsel %vm1261_vm3, %v11454_v39, 0.0 }
 0xb5b   :  { %v11456_v61 = vpop.eup %9460 }
 0xb5c   :  { %v6390_v35 = vsel %vm1261_vm3, %v11456_v61, 0.0 }
 0xb5d   :  { %6391 = vadd.xlane.f32.xlu0 %v6390_v35  ;;  %6394 = vadd.xlane.f32.xlu1 %v6393_v8  ;;  %v11833_v35 = vld [vmem:[#allocation19_spill] sm:$0xff]  ;;  %v11834_v8 = vld [vmem:[#allocation24_spill] sm:$0xff] }
 0xb7d   :  { %v6311_v30 = vpop.xlane.xlu1 %6310 }
 0xb7e   :  { %v6327_v34 = vsub.f32 %v11373_v48, %v6311_v30  ;;  %v11826_v48 = vld [vmem:[#allocation8_spill] sm:$0xff] }
 0xb80   :  { %v6358_v12 = vmul.f32 1.442695, %v6327_v34  ;;  %v11836_v34 = vld [vmem:[#allocation20_spill] sm:$0xff] }
 0xb81   :  { %v6308_v1 = vpop.xlane.xlu0 %6307  ;;  %v11484_v59 = vpop.permute.xlu1 %9196 }
 0xb82   :  { %9462 = vpow2.f32 %v6358_v12  ;;  %v6326_v52 = vsub.f32 %v11376_v4, %v6308_v1  ;;  %v11827_v4 = vld [vmem:[#allocation21_spill] sm:$0xff]  ;;  %v11838_v12 = vld [vmem:[#allocation28_spill] sm:$0xff] }
 0xb84   :  { %v6356_v2 = vmul.f32 1.442695, %v6326_v52 }
 0xb86   :  { %9464 = vpow2.f32 %v6356_v2 }
 0xb8c   :  { %v11464_v16 = vpop.eup %9462 }
 0xb8d   :  { %v6405_v6 = vsel %vm1261_vm3, %v11464_v16, 0.0 }
 0xb8e   :  { %6406 = vadd.xlane.f32.xlu1 %v6405_v6 }
 0xb90   :  { %v11468_v15 = vpop.eup %9464 }
 0xb91   :  { %v6402_v19 = vsel %vm1261_vm3, %v11468_v15, 0.0 }
 0xb92   :  { %6403 = vadd.xlane.f32.xlu0 %v6402_v19 }
 0xb9f   :  { %9206 = vrot.lane.b32.xlu1 %v9939_v36, %s9532_s28  ;;  %v9192_v36 = vpop.permute.xlu0 %9191 }
 0xba0   :  { %v9194_v21 = vunpack.i.h.bf16 %v9192_v36  ;;  %v9193_v57 = vunpack.i.l.bf16 %v9192_v36 }
 0xba3   :  { %3784 = vrot.lane.b32.xlu1 %v11826_v48, %s9533_s1 }
 0xba7   :  { %5473 = vrot.lane.b32.xlu1 %v11256_v17, %s9534_s5  ;;  %v11829_v17 = vld [vmem:[#allocation17_spill] sm:$0xff] }
 0xba8   :  { %9201 = vrot.lane.b32.xlu0 %v9929_v46, %s9532_s28  ;;  %v11830_v46 = vld [vmem:[#allocation22_spill] sm:$0xff] }
 0xbab   :  { %3788 = vrot.lane.b32.xlu1 %v11827_v4, %s9533_s1  ;;  %v11841_v4 = vld [vmem:[#allocation30_spill] sm:$0xff] }
 0xbac   :  { %3782 = vrot.lane.b32.xlu0 %v11828_v26, %s9533_s1 }
 0xbaf   :  { %5477 = vrot.lane.b32.xlu1 %v11268_v27, %s9534_s5  ;;  %v11831_v27 = vld [vmem:[#allocation23_spill] sm:$0xff] }
 0xbb0   :  { %5471 = vrot.lane.b32.xlu0 %v11258_v56, %s9534_s5  ;;  %v11832_v56 = vld [vmem:[#allocation18_spill] sm:$0xff] }
 0xbb2   :  { %v6365_v37 = vpop.xlane.xlu1 %6364 }
 0xbb3   :  { %3792 = vrot.lane.b32.xlu1 %v11829_v17, %s9533_s1  ;;  %9466 = vrcp.f32 %v6365_v37  ;;  %v9199_v37 = vunpack.i.h.bf16 %v11484_v59  ;;  %v9198_v17 = vunpack.i.l.bf16 %v11484_v59 }
 0xbb4   :  { %3786 = vrot.lane.b32.xlu0 %v11830_v46, %s9533_s1 }
 0xbb6   :  { %v6362_v25 = vpop.xlane.xlu0 %6361 }
 0xbb7   :  { %9468 = vrcp.f32 %v6362_v25  ;;  %5481 = vrot.lane.b32.xlu1 %v11260_v60, %s9534_s5 }
 0xbb8   :  { %5475 = vrot.lane.b32.xlu0 %v11270_v43, %s9534_s5 }
 0xbbb   :  { %3796 = vrot.lane.b32.xlu1 %v11831_v27, %s9533_s1 }
 0xbbc   :  { %3790 = vrot.lane.b32.xlu0 %v11832_v56, %s9533_s1 }
 0xbbd   :  { %v9467_v63 = vpop.eup %9466 }
 0xbbe   :  { %v6411_v43 = vmul.f32 %v9467_v63, %v11388_v18 }
 0xbbf   :  { %5485 = vrot.lane.b32.xlu1 %v11272_v50, %s9534_s5  ;;  %v8846_v50 = vpack.c.bf16 %v9194_v21, %v9193_v57 }
 0xbc0   :  { %5479 = vrot.lane.b32.xlu0 %v11262_v38, %s9534_s5 }
 0xbc1   :  { %v9469_v49 = vpop.eup %9468 }
 0xbc2   :  { %v6409_v60 = vmul.f32 %v9469_v49, %v11392_v33  ;;  %v11835_v33 = vld [vmem:[#allocation27_spill] sm:$0xff]  ;;  %v8850_v49 = vpack.c.bf16 %v9199_v37, %v9198_v17 }
 0xbc3   :  { %3800 = vrot.lane.b32.xlu1 %v11833_v35, %s9533_s1 }
 0xbc4   :  { %3794 = vrot.lane.b32.xlu0 %v11834_v8, %s9533_s1  ;;  %v6440_v30 = vadd.f32 %v6409_v60, %v11129_v9  ;;  %8450 = vmatprep.mubr.msk.f32.mxu0 %vm1261_vm3, %v6409_v60 }
 0xbc5   :  { %8451 = vmatmul.mubr.msk.f32.vlgmr.msra.gmra.mrb[60].mxu0 %vm1261_vm3, %v6411_v43 }
 0xbc6   :  { %v7461_v38 = vmul.f32 0.25, %v6440_v30  ;;  %8841 = vmatpush3.bf16.msra.mxu0 %v11441_v40  ;;  %v11837_v40 = vld [vmem:[#allocation25_spill] sm:$0xff] }
 0xbc7   :  { %8847 = vmatprep.subr.bf16.mxu0 %v8846_v50  ;;  %5489 = vrot.lane.b32.xlu1 %v11264_v51, %s9534_s5 }
 0xbc8   :  { %7470 = vst.msk [vmem:[#allocation3] sm:$0x1] %vm7469_vm4, %v7461_v38  ;;  %5483 = vrot.lane.b32.xlu0 %v11274_v53, %s9534_s5  ;;  %v6377_v18 = vpop.xlane.xlu1 %6376 }
 0xbc9   :  { %9470 = vrcp.f32 %v6377_v18  ;;  %v6374_v9 = vpop.xlane.xlu0 %6373 }
 0xbca   :  { %9472 = vrcp.f32 %v6374_v9 }
 0xbcb   :  { %3804 = vrot.lane.b32.xlu1 %v11835_v33, %s9533_s1 }
 0xbcc   :  { %3798 = vrot.lane.b32.xlu0 %v11836_v34, %s9533_s1 }
 0xbcf   :  { %5493 = vrot.lane.b32.xlu1 %v11280_v3, %s9534_s5 }
 0xbd0   :  { %5487 = vrot.lane.b32.xlu0 %v11266_v11, %s9534_s5 }
 0xbd3   :  { %v9471_v51 = vpop.eup %9470  ;;  %3808 = vrot.lane.b32.xlu1 %v11837_v40, %s9533_s1 }
 0xbd4   :  { %v9473_v53 = vpop.eup %9472  ;;  %3802 = vrot.lane.b32.xlu0 %v11838_v12, %s9533_s1  ;;  %v6419_v52 = vmul.f32 %v9471_v51, %v11399_v42  ;;  %v11839_v42 = vld [vmem:[#allocation29_spill] sm:$0xff] }
 0xbd5   :  { %v6417_v1 = vmul.f32 %v9473_v53, %v11402_v55 }
 0xbd6   :  { %v6371_v2 = vpop.xlane.xlu1 %6370 }
 0xbd7   :  { %5497 = vrot.lane.b32.xlu1 %v11276_v58, %s9534_s5  ;;  %v6442_v3 = vadd.f32 %v6417_v1, %v11140_v24  ;;  %8464 = vmatprep.mubr.msk.f32.mxu0 %vm1261_vm3, %v6417_v1  ;;  %9474 = vrcp.f32 %v6371_v2  ;;  %v11840_v24 = vld [vmem:[#allocation26_spill] sm:$0xff] }
 0xbd8   :  { %5491 = vrot.lane.b32.xlu0 %v11282_v10, %s9534_s5  ;;  %8465 = vmatmul.mubr.msk.f32.vlgmr.msra.gmra.mrb[62].mxu0 %vm1261_vm3, %v6419_v52 }
 0xbd9   :  { %v7463_v11 = vmul.f32 0.25, %v6442_v3  ;;  %8849 = vmatpush3.bf16.msra.mxu0 %v8846_v50 }
 0xbda   :  { %v6389_v6 = vpop.xlane.xlu1 %6388  ;;  %v6368_v19 = vpop.xlane.xlu0 %6367 }
 0xbdb   :  { %7472 = vst.msk [vmem:[#allocation3 + $0x2] sm:$0x1] %vm7469_vm4, %v7463_v11  ;;  %3812 = vrot.lane.b32.xlu1 %v11839_v42, %s9533_s1  ;;  %9476 = vrcp.f32 %v6368_v19 }
 0xbdc   :  { %3806 = vrot.lane.b32.xlu0 %v11840_v24, %s9533_s1  ;;  %9478 = vrcp.f32 %v6389_v6 }
 0xbde   :  { %v6383_v58 = vpop.xlane.xlu1 %6382 }
 0xbdf   :  { %v6386_v55 = vpop.xlane.xlu0 %6385 }
 0xbe0   :  { %9480 = vrcp.f32 %v6386_v55  ;;  %5495 = vrot.lane.b32.xlu0 %v11278_v14, %s9534_s5 }
 0xbe1   :  { %9482 = vrcp.f32 %v6383_v58  ;;  %v9475_v26 = vpop.eup %9474 }
 0xbe2   :  { %v6401_v10 = vpop.xlane.xlu1 %6400  ;;  %v6415_v27 = vmul.f32 %v9475_v26, %v11413_v13 }
 0xbe3   :  { %v6380_v48 = vpop.xlane.xlu0 %6379 }
 0xbe4   :  { %9484 = vrcp.f32 %v6380_v48  ;;  %3810 = vrot.lane.b32.xlu0 %v11841_v4, %s9533_s1 }
 0xbe5   :  { %v9477_v36 = vpop.eup %9476 }
 0xbe6   :  { %v6398_v46 = vpop.xlane.xlu1 %6397  ;;  %v6413_v25 = vmul.f32 %v9477_v36, %v11421_v45  ;;  %v9479_v14 = vpop.eup %9478 }
 0xbe7   :  { %9486 = vrcp.f32 %v6398_v46  ;;  %v6427_v13 = vmul.f32 %v9479_v14, %v11417_v22 }
 0xbe8   :  { %v6441_v56 = vadd.f32 %v6413_v25, %v11160_v31  ;;  %8457 = vmatprep.mubr.msk.f32.mxu1 %vm1261_vm3, %v6413_v25 }
 0xbe9   :  { %8458 = vmatmul.mubr.msk.f32.vlgmr.msra.gmra.mrb[68].mxu1 %vm1261_vm3, %v6415_v27 }
 0xbea   :  { %v9481_v63 = vpop.eup %9480  ;;  %v6392_v21 = vpop.xlane.xlu0 %6391  ;;  %v7462_v57 = vmul.f32 0.25, %v6441_v56  ;;  %8845 = vmatpush3.bf16.msra.mxu1 %v11430_v29 }
 0xbeb   :  { %v6395_v59 = vpop.xlane.xlu1 %6394  ;;  %9488 = vrcp.f32 %v6392_v21  ;;  %v6425_v45 = vmul.f32 %v9481_v63, %v11432_v44  ;;  %8851 = vmatprep.subr.bf16.mxu1 %v8850_v49  ;;  %v9483_v60 = vpop.eup %9482 }
 0xbec   :  { %9490 = vrcp.f32 %v6395_v59  ;;  %7471 = vst.msk [vmem:[#allocation3 + $0x1] sm:$0x1] %vm7469_vm4, %v7462_v57  ;;  %v6423_v8 = vmul.f32 %v9483_v60, %v11428_v41 }
 0xbed   :  { %v6444_v31 = vadd.f32 %v6425_v45, %v11154_v54  ;;  %8478 = vmatprep.mubr.msk.f32.mxu0 %vm1261_vm3, %v6425_v45  ;;  %9492 = vrcp.f32 %v6401_v10 }
 0xbee   :  { %v9485_v43 = vpop.eup %9484  ;;  %8479 = vmatmul.mubr.msk.f32.vlgmr.msra.gmra.mrb[64].mxu0 %vm1261_vm3, %v6427_v13 }
 0xbef   :  { %v7465_v35 = vmul.f32 0.25, %v6444_v31  ;;  %v6421_v29 = vmul.f32 %v9485_v43, %v11443_v5 }
 0xbf1   :  { %7474 = vst.msk [vmem:[#allocation3 + $0x4] sm:$0x1] %vm7469_vm4, %v7465_v35  ;;  %v6443_v22 = vadd.f32 %v6421_v29, %v11173_v28  ;;  %8471 = vmatprep.mubr.msk.f32.mxu1 %vm1261_vm3, %v6421_v29  ;;  %v9487_v44 = vpop.eup %9486  ;;  %v7241_v29 = vld [vmem:[%s11773_s6] sm:$0xff] }
 0xbf2   :  { %8472 = vmatmul.mubr.msk.f32.vlgmr.msra.gmra.mrb[70].mxu1 %vm1261_vm3, %v6423_v8  ;;  %v6433_v30 = vmul.f32 %v9487_v44, %v11450_v7  ;;  %v7242_v8 = vld [vmem:[%s11773_s6 + $0x8] sm:$0xff] }
 0xbf3   :  { %v7464_v54 = vmul.f32 0.25, %v6443_v22  ;;  %8853 = vmatpush3.bf16.msra.mxu1 %v8850_v49  ;;  %v7243_v22 = vld [vmem:[%s11773_s6 + $0x10] sm:$0xff]  ;;  %v8862_v44 = vpack.c.bf16 %v7242_v8, %v7241_v29 }
 0xbf4   :  { %v6446_v5 = vadd.f32 %v6433_v30, %v11183_v47  ;;  %8492 = vmatprep.mubr.msk.f32.mxu0 %vm1261_vm3, %v6433_v30 }
 0xbf5   :  { %v9489_v50 = vpop.eup %9488  ;;  %7473 = vst.msk [vmem:[#allocation3 + $0x3] sm:$0x1] %vm7469_vm4, %v7464_v54  ;;  %v7244_v54 = vld [vmem:[%s11773_s6 + $0x18] sm:$0xff]  ;;  %s9536_s6 = smov [#allocation3]  }
 0xbf6   :  { %v9491_v41 = vpop.eup %9490  ;;  %v6429_v38 = vmul.f32 %v9489_v50, %v11456_v61  ;;  %v7467_v18 = vmul.f32 0.25, %v6446_v5  ;;  %v8866_v30 = vpack.c.bf16 %v7244_v54, %v7243_v22  ;;  %s7485_s19 = sshll.u32 %s9536_s6, 4  ;;  %s7486_s19 = int_to_ptr.vmem [resolvable:$true] %s7485_s19 }
 0xbf7   :  { %v6431_v28 = vmul.f32 %v9491_v41, %v11454_v39  ;;  %v9493_v52 = vpop.eup %9492  ;;  %s9498_s0 = scalar_lea.vmem %s7486_s19, 128  ;;  %p9503_p1 = scmp.lt.s32.totalorder %s7486_s19, %s7486_s19 }
 0xbf8   :  { %v6445_v9 = vadd.f32 %v6429_v38, %v11199_v62  ;;  %8485 = vmatprep.mubr.msk.f32.mxu1 %vm1261_vm3, %v6429_v38  ;;  %7476 = vst.msk [vmem:[#allocation3 + $0x6] sm:$0x1] %vm7469_vm4, %v7467_v18  ;;  %v6435_v19 = vmul.f32 %v9493_v52, %v11439_v0  ;;  %p9499_p0 = scmp.ne.s32.totalorder %s7486_s19, %s9498_s0  ;;  %p9504_p2 = scmp.lt.s32.totalorder %s9498_s0, %s9498_s0 }
 0xbf9   :  { %8486 = vmatmul.mubr.msk.f32.vlgmr.msra.gmra.mrb[72].mxu1 %vm1261_vm3, %v6431_v28 }
 0xbfa   :  { %v7466_v7 = vmul.f32 0.25, %v6445_v9  ;;  %p9505_p3 = por %p9504_p2, %p9503_p1 }
 0xbfc   :  { %7475 = vst.msk [vmem:[#allocation3 + $0x5] sm:$0x1] %vm7469_vm4, %v7466_v7  ;;  %p9506_p4 = pnand %p9505_p3, %p9499_p0 }
 0xc1b   :  { %v6407_v47 = vpop.xlane.xlu1 %6406 }
 0xc1c   :  { %9494 = vrcp.f32 %v6407_v47 }
 0xc1f   :  { %v9207_v33 = vpop.permute.xlu1 %9206  ;;  %v6404_v34 = vpop.xlane.xlu0 %6403 }
 0xc20   :  { %v9209_v61 = vunpack.i.h.bf16 %v9207_v33  ;;  %v9208_v51 = vunpack.i.l.bf16 %v9207_v33  ;;  %9496 = vrcp.f32 %v6404_v34 }
 0xc22   :  { %v8858_v39 = vpack.c.bf16 %v9209_v61, %v9208_v51 }
 0xc23   :  { %v3785_v62 = vpop.permute.xlu1 %3784  ;;  %v9202_v40 = vpop.permute.xlu0 %9201 }
 0xc24   :  { %3832 = vst.msk [vmem:[#allocation2 + $0x8] sm:$0xff] %vm3830_vm5, %v3785_v62  ;;  %v9204_v53 = vunpack.i.h.bf16 %v9202_v40  ;;  %v9203_v12 = vunpack.i.l.bf16 %v9202_v40  ;;  %8859 = vmatprep.subr.bf16.mxu1 %v8858_v39 }
 0xc25   :  { %8861 = vmatpush3.bf16.msra.mxu1 %v8858_v39 }
 0xc26   :  { %v8854_v1 = vpack.c.bf16 %v9204_v53, %v9203_v12  ;;  %v9495_v11 = vpop.eup %9494 }
 0xc27   :  { %v5474_v2 = vpop.permute.xlu1 %5473  ;;  %v3783_v3 = vpop.permute.xlu0 %3782  ;;  %v6439_v55 = vmul.f32 %v9495_v11, %v11464_v16 }
 0xc28   :  { %5521 = vst.msk [vmem:[#allocation2 + $0x8] sm:$0xff] %vm5519_vm6, %v5474_v2  ;;  %8855 = vmatprep.subr.bf16.mxu0 %v8854_v1 }
 0xc29   :  { %3831 = vst.msk [vmem:[#allocation2] sm:$0xff] %vm3830_vm5, %v3783_v3  ;;  %8857 = vmatpush3.bf16.msra.mxu0 %v8854_v1 }
 0xc2a   :  { %v9497_v6 = vpop.eup %9496  ;;  %8863 = vmatprep.subr.bf16.mxu0 %v8862_v44 }
 0xc2b   :  { %v3789_v42 = vpop.permute.xlu1 %3788  ;;  %v5472_v24 = vpop.permute.xlu0 %5471  ;;  %v6437_v58 = vmul.f32 %v9497_v6, %v11468_v15 }
 0xc2c   :  { %3834 = vst.msk [vmem:[#allocation2 + $0x18] sm:$0xff] %vm3830_vm5, %v3789_v42  ;;  %8493 = vmatmul.mubr.msk.f32.vlgmr.msra.gmra.mrb[66].mxu0 %vm1261_vm3, %v6435_v19 }
 0xc2d   :  { %5520 = vst.msk [vmem:[#allocation2] sm:$0xff] %vm5519_vm6, %v5472_v24  ;;  %v6447_v10 = vadd.f32 %v6437_v58, %v11222_v20  ;;  %8499 = vmatprep.mubr.msk.f32.mxu1 %vm1261_vm3, %v6437_v58  ;;  %8865 = vmatpush3.bf16.msra.mxu0 %v8862_v44 }
 0xc2e   :  { %8500 = vmatmul.mubr.msk.f32.vlgmr.msra.gmra.mrb[74].mxu1 %vm1261_vm3, %v6439_v55  ;;  %8867 = vmatprep.subr.bf16.mxu0 %v8866_v30 }
 0xc2f   :  { %v7468_v48 = vmul.f32 0.25, %v6447_v10  ;;  %v5478_v0 = vpop.permute.xlu1 %5477  ;;  %v3787_v4 = vpop.permute.xlu0 %3786 }
 0xc30   :  { %5523 = vst.msk [vmem:[#allocation2 + $0x18] sm:$0xff] %vm5519_vm6, %v5478_v0 }
 0xc31   :  { %3833 = vst.msk [vmem:[#allocation2 + $0x10] sm:$0xff] %vm3830_vm5, %v3787_v4  ;;  %8869 = vmatpush3.bf16.msra.mxu0 %v8866_v30 }
 0xc32   :  { %7477 = vst.msk [vmem:[#allocation3 + $0x7] sm:$0x1] %vm7469_vm4, %v7468_v48 }
 0xc33   :  { %v3793_v16 = vpop.permute.xlu1 %3792  ;;  %v5476_v15 = vpop.permute.xlu0 %5475 }
 0xc34   :  { %3836 = vst.msk [vmem:[#allocation2 + $0x28] sm:$0xff] %vm3830_vm5, %v3793_v16 }
 0xc35   :  { %5522 = vst.msk [vmem:[#allocation2 + $0x10] sm:$0xff] %vm5519_vm6, %v5476_v15 }
 0xc37   :  { %v5482_v20 = vpop.permute.xlu1 %5481  ;;  %v3791_v26 = vpop.permute.xlu0 %3790 }
 0xc38   :  { %5525 = vst.msk [vmem:[#allocation2 + $0x28] sm:$0xff] %vm5519_vm6, %v5482_v20 }
 0xc39   :  { %3835 = vst.msk [vmem:[#allocation2 + $0x20] sm:$0xff] %vm3830_vm5, %v3791_v26 }
 0xc3b   :  { %v3797_v36 = vpop.permute.xlu1 %3796  ;;  %v5480_v37 = vpop.permute.xlu0 %5479 }
 0xc3c   :  { %3838 = vst.msk [vmem:[#allocation2 + $0x38] sm:$0xff] %vm3830_vm5, %v3797_v36 }
 0xc3d   :  { %5524 = vst.msk [vmem:[#allocation2 + $0x20] sm:$0xff] %vm5519_vm6, %v5480_v37 }
 0xc3f   :  { %v5486_v17 = vpop.permute.xlu1 %5485  ;;  %v3795_v46 = vpop.permute.xlu0 %3794 }
 0xc40   :  { %5527 = vst.msk [vmem:[#allocation2 + $0x38] sm:$0xff] %vm5519_vm6, %v5486_v17 }
 0xc41   :  { %3837 = vst.msk [vmem:[#allocation2 + $0x30] sm:$0xff] %vm3830_vm5, %v3795_v46 }
 0xc43   :  { %v3801_v25 = vpop.permute.xlu1 %3800  ;;  %v5484_v27 = vpop.permute.xlu0 %5483 }
 0xc44   :  { %3840 = vst.msk [vmem:[#allocation2 + $0x48] sm:$0xff] %vm3830_vm5, %v3801_v25 }
 0xc45   :  { %5526 = vst.msk [vmem:[#allocation2 + $0x30] sm:$0xff] %vm5519_vm6, %v5484_v27 }
 0xc47   :  { %v5490_v14 = vpop.permute.xlu1 %5489  ;;  %v3799_v56 = vpop.permute.xlu0 %3798 }
 0xc48   :  { %5529 = vst.msk [vmem:[#allocation2 + $0x48] sm:$0xff] %vm5519_vm6, %v5490_v14 }
 0xc49   :  { %3839 = vst.msk [vmem:[#allocation2 + $0x40] sm:$0xff] %vm3830_vm5, %v3799_v56 }
 0xc4b   :  { %v3805_v63 = vpop.permute.xlu1 %3804  ;;  %v5488_v49 = vpop.permute.xlu0 %5487 }
 0xc4c   :  { %3842 = vst.msk [vmem:[#allocation2 + $0x58] sm:$0xff] %vm3830_vm5, %v3805_v63 }
 0xc4d   :  { %5528 = vst.msk [vmem:[#allocation2 + $0x40] sm:$0xff] %vm5519_vm6, %v5488_v49 }
 0xc4f   :  { %v5494_v21 = vpop.permute.xlu1 %5493  ;;  %v3803_v57 = vpop.permute.xlu0 %3802 }
 0xc50   :  { %5531 = vst.msk [vmem:[#allocation2 + $0x58] sm:$0xff] %vm5519_vm6, %v5494_v21 }
 0xc51   :  { %3841 = vst.msk [vmem:[#allocation2 + $0x50] sm:$0xff] %vm3830_vm5, %v3803_v57 }
 0xc53   :  { %v3809_v59 = vpop.permute.xlu1 %3808  ;;  %v5492_v45 = vpop.permute.xlu0 %5491 }
 0xc54   :  { %3844 = vst.msk [vmem:[#allocation2 + $0x68] sm:$0xff] %vm3830_vm5, %v3809_v59 }
 0xc55   :  { %5530 = vst.msk [vmem:[#allocation2 + $0x50] sm:$0xff] %vm5519_vm6, %v5492_v45 }
 0xc57   :  { %v5498_v13 = vpop.permute.xlu1 %5497  ;;  %v3807_v60 = vpop.permute.xlu0 %3806 }
 0xc58   :  { %5533 = vst.msk [vmem:[#allocation2 + $0x68] sm:$0xff] %vm5519_vm6, %v5498_v13 }
 0xc59   :  { %3843 = vst.msk [vmem:[#allocation2 + $0x60] sm:$0xff] %vm3830_vm5, %v3807_v60 }
 0xc5b   :  { %v3813_v31 = vpop.permute.xlu1 %3812  ;;  %v5496_v43 = vpop.permute.xlu0 %5495 }
 0xc5c   :  { %3846 = vst.msk [vmem:[#allocation2 + $0x78] sm:$0xff] %vm3830_vm5, %v3813_v31 }
 0xc5d   :  { %5532 = vst.msk [vmem:[#allocation2 + $0x60] sm:$0xff] %vm5519_vm6, %v5496_v43 }
 0xc5f   :  { %v3811_v35 = vpop.permute.xlu0 %3810 }
 0xc60   :  { %3845 = vst.msk [vmem:[#allocation2 + $0x70] sm:$0xff] %vm3830_vm5, %v3811_v35 }
 0xc98   :  { %v8452_v50 = vpop.f32.mrb[60].mxu0 }
 0xc99   :  { %7162 = vrot.lane.b32.xlu1 %v8452_v50, %s9535_s18  ;;  %v6526_v5 = vpop.f32.mrb[61].mxu0 }
 0xc9a   :  { %7160 = vrot.lane.b32.xlu0 %v6526_v5, %s9535_s18 }
 0xcab   :  { %v8466_v41 = vpop.f32.mrb[62].mxu0 }
 0xcac   :  { %7170 = vrot.lane.b32.xlu1 %v8466_v41, %s9535_s18  ;;  %v6700_v38 = vpop.f32.mrb[63].mxu0 }
 0xcad   :  { %7168 = vrot.lane.b32.xlu0 %v6700_v38, %s9535_s18 }
 0xcbc   :  { %v8459_v28 = vpop.f32.mrb[68].mxu1 }
 0xcbd   :  { %v6613_v18 = vpop.f32.mrb[69].mxu1  ;;  %7166 = vrot.lane.b32.xlu1 %v8459_v28, %s9535_s18 }
 0xcbe   :  { %7164 = vrot.lane.b32.xlu0 %v6613_v18, %s9535_s18 }
 0xcc1   :  { %v8480_v9 = vpop.f32.mrb[64].mxu0 }
 0xcc2   :  { %7178 = vrot.lane.b32.xlu1 %v8480_v9, %s9535_s18  ;;  %v6874_v7 = vpop.f32.mrb[65].mxu0 }
 0xcc3   :  { %7176 = vrot.lane.b32.xlu0 %v6874_v7, %s9535_s18 }
 0xcc5   :  { %v8473_v47 = vpop.f32.mrb[70].mxu1 }
 0xcc6   :  { %v6787_v33 = vpop.f32.mrb[71].mxu1  ;;  %7174 = vrot.lane.b32.xlu1 %v8473_v47, %s9535_s18 }
 0xcc7   :  { %7172 = vrot.lane.b32.xlu0 %v6787_v33, %s9535_s18 }
 0xccc   :  { %v8487_v34 = vpop.f32.mrb[72].mxu1 }
 0xccd   :  { %v6961_v61 = vpop.f32.mrb[73].mxu1 }
 0xcff   :  { %v8494_v51 = vpop.f32.mrb[66].mxu0 }
 0xd00   :  { %7186 = vrot.lane.b32.xlu1 %v8494_v51, %s9535_s18  ;;  %v7048_v39 = vpop.f32.mrb[67].mxu0 }
 0xd01   :  { %v8501_v62 = vpop.f32.mrb[74].mxu1  ;;  %7184 = vrot.lane.b32.xlu0 %v7048_v39, %s9535_s18 }
 0xd02   :  { %v7135_v40 = vpop.f32.mrb[75].mxu1 }
 0xd04   :  { %7182 = vrot.lane.b32.xlu1 %v8487_v34, %s9535_s18 }
 0xd05   :  { %7180 = vrot.lane.b32.xlu0 %v6961_v61, %s9535_s18 }
 0xd08   :  { %5501 = vrot.lane.b32.xlu1 %v11314_v23, %s9534_s5 }
 0xd09   :  { %5499 = vrot.lane.b32.xlu0 %v11316_v32, %s9534_s5 }
 0xd0b   :  { %v7163_v53 = vpop.permute.xlu1 %7162 }
 0xd0c   :  { %7210 = vst.msk [vmem:[#allocation2 + $0x8] sm:$0xff] %vm7208_vm7, %v7163_v53  ;;  %v7161_v12 = vpop.permute.xlu0 %7160  ;;  %7190 = vrot.lane.b32.xlu1 %v8501_v62, %s9535_s18 }
 0xd0d   :  { %7209 = vst.msk [vmem:[#allocation2] sm:$0xff] %vm7208_vm7, %v7161_v12  ;;  %7188 = vrot.lane.b32.xlu0 %v7135_v40, %s9535_s18 }
 0xd13   :  { %v7226_v52 = vld [vmem:[#allocation2 + $0x8] sm:$0xff] }
 0xd14   :  { %v7225_v1 = vld [vmem:[#allocation2] sm:$0xff] }
 0xd15   :  { %8510 = vmatprep.mubr.msk.f32.mxu0 %vm48_vm0, %v7225_v1 }
 0xd16   :  { %8511 = vmatmul.mubr.msk.f32.vlgmr.msra.gmra.mrb[68].mxu0 %vm48_vm0, %v7226_v52 }
 0xd1e   :  { %v7171_v23 = vpop.permute.xlu1 %7170 }
 0xd1f   :  { %7214 = vst.msk [vmem:[#allocation2 + $0x28] sm:$0xff] %vm7208_vm7, %v7171_v23  ;;  %v7169_v32 = vpop.permute.xlu0 %7168 }
 0xd20   :  { %7213 = vst.msk [vmem:[#allocation2 + $0x20] sm:$0xff] %vm7208_vm7, %v7169_v32 }
 0xd26   :  { %v7230_v10 = vld [vmem:[#allocation2 + $0x28] sm:$0xff] }
 0xd27   :  { %v7229_v55 = vld [vmem:[#allocation2 + $0x20] sm:$0xff] }
 0xd2f   :  { %v7167_v2 = vpop.permute.xlu1 %7166 }
 0xd30   :  { %7212 = vst.msk [vmem:[#allocation2 + $0x18] sm:$0xff] %vm7208_vm7, %v7167_v2  ;;  %v7165_v3 = vpop.permute.xlu0 %7164 }
 0xd31   :  { %7211 = vst.msk [vmem:[#allocation2 + $0x10] sm:$0xff] %vm7208_vm7, %v7165_v3 }
 0xd34   :  { %v7179_v11 = vpop.permute.xlu1 %7178 }
 0xd35   :  { %7218 = vst.msk [vmem:[#allocation2 + $0x48] sm:$0xff] %vm7208_vm7, %v7179_v11  ;;  %v7177_v6 = vpop.permute.xlu0 %7176 }
 0xd36   :  { %7217 = vst.msk [vmem:[#allocation2 + $0x40] sm:$0xff] %vm7208_vm7, %v7177_v6 }
 0xd37   :  { %v7228_v58 = vld [vmem:[#allocation2 + $0x18] sm:$0xff] }
 0xd38   :  { %v7175_v19 = vpop.permute.xlu1 %7174  ;;  %v7227_v24 = vld [vmem:[#allocation2 + $0x10] sm:$0xff] }
 0xd39   :  { %7216 = vst.msk [vmem:[#allocation2 + $0x38] sm:$0xff] %vm7208_vm7, %v7175_v19  ;;  %v7173_v42 = vpop.permute.xlu0 %7172  ;;  %8513 = vmatprep.mubr.msk.f32.mxu0 %vm48_vm0, %v7227_v24 }
 0xd3a   :  { %7215 = vst.msk [vmem:[#allocation2 + $0x30] sm:$0xff] %vm7208_vm7, %v7173_v42  ;;  %8514 = vmatmul.mubr.msk.f32.gmra.mrb[70].mxu0 %vm48_vm0, %v7228_v58 }
 0xd3b   :  { %8516 = vmatprep.mubr.msk.f32.mxu0 %vm48_vm0, %v7229_v55 }
 0xd3c   :  { %v7234_v16 = vld [vmem:[#allocation2 + $0x48] sm:$0xff] }
 0xd3d   :  { %v7233_v4 = vld [vmem:[#allocation2 + $0x40] sm:$0xff] }
 0xd3e   :  { %8517 = vmatmul.mubr.msk.f32.gmra.mrb[72].mxu0 %vm48_vm0, %v7230_v10 }
 0xd40   :  { %v7232_v0 = vld [vmem:[#allocation2 + $0x38] sm:$0xff] }
 0xd41   :  { %v7231_v48 = vld [vmem:[#allocation2 + $0x30] sm:$0xff] }
 0xd42   :  { %8519 = vmatprep.mubr.msk.f32.mxu0 %vm48_vm0, %v7231_v48 }
 0xd43   :  { %8520 = vmatmul.mubr.msk.f32.gmra.mrb[74].mxu0 %vm48_vm0, %v7232_v0 }
 0xd44   :  { %8522 = vmatprep.mubr.msk.f32.mxu0 %vm48_vm0, %v7233_v4 }
 0xd47   :  { %8523 = vmatmul.mubr.msk.f32.gmra.mrb[76].mxu0 %vm48_vm0, %v7234_v16 }
 0xd72   :  { %v7187_v15 = vpop.permute.xlu1 %7186 }
 0xd73   :  { %7222 = vst.msk [vmem:[#allocation2 + $0x68] sm:$0xff] %vm7208_vm7, %v7187_v15  ;;  %v7185_v20 = vpop.permute.xlu0 %7184 }
 0xd74   :  { %7221 = vst.msk [vmem:[#allocation2 + $0x60] sm:$0xff] %vm7208_vm7, %v7185_v20 }
 0xd76   :  { %v7183_v26 = vpop.permute.xlu1 %7182 }
 0xd77   :  { %7220 = vst.msk [vmem:[#allocation2 + $0x58] sm:$0xff] %vm7208_vm7, %v7183_v26  ;;  %v7181_v36 = vpop.permute.xlu0 %7180 }
 0xd78   :  { %7219 = vst.msk [vmem:[#allocation2 + $0x50] sm:$0xff] %vm7208_vm7, %v7181_v36 }
 0xd7a   :  { %v5502_v37 = vpop.permute.xlu1 %5501  ;;  %v7238_v63 = vld [vmem:[#allocation2 + $0x68] sm:$0xff] }
 0xd7b   :  { %5535 = vst.msk [vmem:[#allocation2 + $0x78] sm:$0xff] %vm5519_vm6, %v5502_v37  ;;  %v5500_v17 = vpop.permute.xlu0 %5499  ;;  %v7237_v56 = vld [vmem:[#allocation2 + $0x60] sm:$0xff] }
 0xd7c   :  { %5534 = vst.msk [vmem:[#allocation2 + $0x70] sm:$0xff] %vm5519_vm6, %v5500_v17 }
 0xd7e   :  { %v7191_v46 = vpop.permute.xlu1 %7190  ;;  %v7236_v14 = vld [vmem:[#allocation2 + $0x58] sm:$0xff] }
 0xd7f   :  { %7224 = vst.msk [vmem:[#allocation2 + $0x78] sm:$0xff] %vm7208_vm7, %v7191_v46  ;;  %v7189_v25 = vpop.permute.xlu0 %7188  ;;  %v7235_v27 = vld [vmem:[#allocation2 + $0x50] sm:$0xff] }
 0xd80   :  { %7223 = vst.msk [vmem:[#allocation2 + $0x70] sm:$0xff] %vm7208_vm7, %v7189_v25  ;;  %8525 = vmatprep.mubr.msk.f32.mxu0 %vm48_vm0, %v7235_v27 }
 0xd81   :  { %8526 = vmatmul.mubr.msk.f32.gmra.mrb[78].mxu0 %vm48_vm0, %v7236_v14 }
 0xd82   :  { %8528 = vmatprep.mubr.msk.f32.mxu0 %vm48_vm0, %v7237_v56 }
 0xd85   :  { %8529 = vmatmul.mubr.msk.f32.gmra.mrb[80].mxu0 %vm48_vm0, %v7238_v63 }
 0xd86   :  { %v7240_v21 = vld [vmem:[#allocation2 + $0x78] sm:$0xff] }
 0xd87   :  { %v7239_v49 = vld [vmem:[#allocation2 + $0x70] sm:$0xff] }
 0xd88   :  { %8531 = vmatprep.mubr.msk.f32.mxu0 %vm48_vm0, %v7239_v49 }
 0xd89   :  { %8532 = vmatmul.mubr.msk.f32.gmra.mrb[82].mxu0 %vm48_vm0, %v7240_v21 }
 0xd8a   :  { %9509 = shalt.err (!%p9506_p4)
}
 0xd8b   :  { %s9510_s22 = scalar_lea.hbm %s11776_s9, 128 }
 0xd8c   :  { %p9511_p5 = scmp.ne.s32.totalorder %s11776_s9, %s9510_s22  ;;  %p9514_p6 = scmp.lt.u32.totalorder %s9510_s22, %s11776_s9 }
 0xd8e   :  { %p9516_p7 = pnand %p9514_p6, %p9511_p5 }
 0xd90   :  { %9519 = shalt.err (!%p9516_p7)
}
 0xd91   :  { %s9537_s4 = smov 1   ;;  %v7709_v57 = vld [vmem:[%s11774_s7] ss:$0 sm:$0xff] }
 0xd92   :  { %7491 = dma.vmem_to_hbm [thread:$0]  %s7486_s19, 128, %s11776_s9, [#allocation4], %s9534_s5, %s9534_s5, %s9537_s4  }
 0xde9   :  { %v8512_v59 = vpop.f32.mrb[68].mxu0 }
 0xdea   :  { %v7372_v45 = vadd.f32 %v8512_v59, %v7709_v57  ;;  %v7366_v13 = vpop.f32.mrb[69].mxu0 }
 0xdeb   :  { %v7367_v60 = vadd.f32 %v7709_v57, %v7366_v13 }
 0xdec   :  { %7446 = vst.msk [vmem:[%s11775_s8 + $0x8] sm:$0xff] %vm48_vm0, %v7372_v45 }
 0xded   :  { %7445 = vst.msk [vmem:[%s11775_s8] sm:$0xff] %vm48_vm0, %v7367_v60 }
 0xe0d   :  { %v8515_v31 = vpop.f32.mrb[70].mxu0 }
 0xe0e   :  { %v7382_v43 = vadd.f32 %v8515_v31, %v7709_v57  ;;  %v7376_v35 = vpop.f32.mrb[71].mxu0 }
 0xe0f   :  { %v7377_v29 = vadd.f32 %v7709_v57, %v7376_v35 }
 0xe10   :  { %7448 = vst.msk [vmem:[%s11775_s8 + $0x18] sm:$0xff] %vm48_vm0, %v7382_v43 }
 0xe11   :  { %7447 = vst.msk [vmem:[%s11775_s8 + $0x10] sm:$0xff] %vm48_vm0, %v7377_v29  ;;  %v8518_v8 = vpop.f32.mrb[72].mxu0 }
 0xe12   :  { %v7392_v22 = vadd.f32 %v8518_v8, %v7709_v57  ;;  %v7386_v44 = vpop.f32.mrb[73].mxu0 }
 0xe13   :  { %v7387_v54 = vadd.f32 %v7709_v57, %v7386_v44 }
 0xe14   :  { %7450 = vst.msk [vmem:[%s11775_s8 + $0x28] sm:$0xff] %vm48_vm0, %v7392_v22 }
 0xe15   :  { %7449 = vst.msk [vmem:[%s11775_s8 + $0x20] sm:$0xff] %vm48_vm0, %v7387_v54 }
 0xe16   :  { %v8521_v30 = vpop.f32.mrb[74].mxu0 }
 0xe17   :  { %v7402_v50 = vadd.f32 %v8521_v30, %v7709_v57  ;;  %v7396_v5 = vpop.f32.mrb[75].mxu0 }
 0xe18   :  { %v7397_v41 = vadd.f32 %v7709_v57, %v7396_v5 }
 0xe19   :  { %7452 = vst.msk [vmem:[%s11775_s8 + $0x38] sm:$0xff] %vm48_vm0, %v7402_v50 }
 0xe1a   :  { %7451 = vst.msk [vmem:[%s11775_s8 + $0x30] sm:$0xff] %vm48_vm0, %v7397_v41  ;;  %v8524_v38 = vpop.f32.mrb[76].mxu0 }
 0xe1b   :  { %v7412_v28 = vadd.f32 %v8524_v38, %v7709_v57  ;;  %v7406_v18 = vpop.f32.mrb[77].mxu0 }
 0xe1c   :  { %v7407_v9 = vadd.f32 %v7709_v57, %v7406_v18 }
 0xe1d   :  { %7454 = vst.msk [vmem:[%s11775_s8 + $0x48] sm:$0xff] %vm48_vm0, %v7412_v28 }
 0xe1e   :  { %7453 = vst.msk [vmem:[%s11775_s8 + $0x40] sm:$0xff] %vm48_vm0, %v7407_v9 }
 0xe54   :  { %v8527_v7 = vpop.f32.mrb[78].mxu0 }
 0xe55   :  { %v7422_v47 = vadd.f32 %v8527_v7, %v7709_v57  ;;  %v7416_v33 = vpop.f32.mrb[79].mxu0 }
 0xe56   :  { %v7417_v34 = vadd.f32 %v7709_v57, %v7416_v33 }
 0xe57   :  { %7456 = vst.msk [vmem:[%s11775_s8 + $0x58] sm:$0xff] %vm48_vm0, %v7422_v47 }
 0xe58   :  { %7455 = vst.msk [vmem:[%s11775_s8 + $0x50] sm:$0xff] %vm48_vm0, %v7417_v34  ;;  %v8530_v61 = vpop.f32.mrb[80].mxu0 }
 0xe59   :  { %v7432_v51 = vadd.f32 %v8530_v61, %v7709_v57  ;;  %v7426_v39 = vpop.f32.mrb[81].mxu0 }
 0xe5a   :  { %v7427_v62 = vadd.f32 %v7709_v57, %v7426_v39 }
 0xe5b   :  { %7458 = vst.msk [vmem:[%s11775_s8 + $0x68] sm:$0xff] %vm48_vm0, %v7432_v51 }
 0xe5c   :  { %7457 = vst.msk [vmem:[%s11775_s8 + $0x60] sm:$0xff] %vm48_vm0, %v7427_v62  ;;  %v8533_v40 = vpop.f32.mrb[82].mxu0 }
 0xe5d   :  { %v7442_v53 = vadd.f32 %v8533_v40, %v7709_v57  ;;  %v7436_v12 = vpop.f32.mrb[83].mxu0 }
 0xe5e   :  { %v7437_v1 = vadd.f32 %v7709_v57, %v7436_v12 }
 0xe5f   :  { %7460 = vst.msk [vmem:[%s11775_s8 + $0x78] sm:$0xff] %vm48_vm0, %v7442_v53 }
 0xe60   :  { %7459 = vst.msk [vmem:[%s11775_s8 + $0x70] sm:$0xff] %vm48_vm0, %v7437_v1 }
 0xe61   :  { %9520 = dma.done.wait [#allocation4], 128  }
 0xe62   :  { %9521 = vsyncadd [#allocation4], 4294967168 }
 0xe63   :  { %7497 = vsyncpa [#allocation4], 1 }

</bundles_post_ra>
